<compile_context>
chip_gen: v7x
topology: tpu7x:2x2x1
jax: 0.10.0
libtpu: 0.0.40
codegen_flags: <defaults>
</compile_context>

<pallas_src>
import functools

import jax
import jax.numpy as jnp
from jax.experimental import pallas as pl
from jax.experimental.pallas import tpu as pltpu

CPAD = 128  # all channel dims padded to one lane-width


def _round_up(x, m):
    return ((x + m - 1) // m) * m


# ----------------------------------------------------------------------------
# Kernel 1: tiled fused (im2col) matmul  ->  scale/shift  ->  optional ReLU
# ----------------------------------------------------------------------------
def _mm_kernel(x_ref, w_ref, scale_ref, shift_ref, o_ref, *, relu):
    acc = jnp.dot(x_ref[...], w_ref[...], preferred_element_type=jnp.float32)
    acc = acc * scale_ref[...] + shift_ref[...]          # bias + BN folded
    if relu:
        acc = jnp.maximum(acc, 0.0)
    o_ref[...] = acc.astype(o_ref.dtype)


def fused_matmul(x, w, scale, shift, relu):
    """out = maybe_relu((x @ w) * scale + shift), M-tiled / double-buffered.

    x: [M, K] bf16, w: [K, N] bf16 (N multiple of 128), scale/shift: [1, N] f32.
    """
    M, K = x.shape
    N = w.shape[1]
    TILE_M = 256 if M >= 256 else _round_up(M, 8)
    Mp = _round_up(M, TILE_M)
    if Mp != M:
        x = jnp.pad(x, ((0, Mp - M), (0, 0)))
    grid = (Mp // TILE_M,)

    out = pl.pallas_call(
        functools.partial(_mm_kernel, relu=relu),
        out_shape=jax.ShapeDtypeStruct((Mp, N), jnp.float32),
        grid_spec=pltpu.PrefetchScalarGridSpec(
            num_scalar_prefetch=0,
            grid=grid,
            in_specs=[
                pl.BlockSpec((TILE_M, K), lambda i: (i, 0)),   # patch tile
                pl.BlockSpec((K, N), lambda i: (0, 0)),        # weights (resident)
                pl.BlockSpec((1, N), lambda i: (0, 0)),        # scale
                pl.BlockSpec((1, N), lambda i: (0, 0)),        # shift
            ],
            out_specs=pl.BlockSpec((TILE_M, N), lambda i: (i, 0)),
        ),
        compiler_params=pltpu.CompilerParams(
            dimension_semantics=("parallel",)),
    )(x, w, scale, shift)
    return out[:M]


# ----------------------------------------------------------------------------
# Kernel 2: fused residual trunk (all blocks) + classifier head
# ----------------------------------------------------------------------------
def _make_trunk_kernel(*, Mp, marg, Wp, KH, KW, Cp, n_conv):
    def kernel(x0_ref, w_ref, scale_ref, shift_ref, mask_ref, pool_ref,
               bns_ref, bnt_ref, fcw_ref, fcb_ref, out_ref, act_ref, res_ref):
        c = pl.program_id(0)                     # conv index, 0 .. n_conv-1

        # Load the initial activation into the padded VMEM-resident buffer.
        @pl.when(c == 0)
        def _():
            act_ref[...] = jnp.zeros_like(act_ref)
            act_ref[marg:marg + Mp, :] = x0_ref[...]

        # First conv of a residual block: save the identity.
        @pl.when(c % 2 == 0)
        def _():
            res_ref[...] = act_ref[marg:marg + Mp, :]

        # 3x3 conv (pad=1, stride=1) as an accumulation over the 9 taps of
        # statically shifted row-slices of the flattened padded activation.
        acc = jnp.zeros((Mp, Cp), jnp.float32)
        for ki in range(KH):
            for kj in range(KW):
                off = (ki - KH // 2) * Wp + (kj - KW // 2)
                lo = marg + off
                patch = act_ref[lo:lo + Mp, :].astype(jnp.bfloat16)
                acc = acc + jnp.dot(patch, w_ref[0, ki * KW + kj],
                                    preferred_element_type=jnp.float32)

        # bias + BN folded into scale/shift; residual add on the 2nd conv.
        y = acc * scale_ref[0] + shift_ref[0]
        res_gate = (c % 2).astype(jnp.float32)
        y = y + res_gate * res_ref[...]
        # ReLU, then re-zero the spatial-padding rows (they are next conv's
        # zero padding).
        y = jnp.maximum(y, 0.0) * mask_ref[...]
        act_ref[marg:marg + Mp, :] = y

        # Classifier head, fused into the last grid step.
        @pl.when(c == n_conv - 1)
        def _():
            f = jnp.maximum(y * bns_ref[...] + bnt_ref[...], 0.0)   # BN + ReLU
            pooled = jnp.dot(pool_ref[...], f,
                             preferred_element_type=jnp.float32)    # avg pool
            out_ref[...] = (jnp.dot(pooled, fcw_ref[...],
                                    preferred_element_type=jnp.float32)
                            + fcb_ref[...]).astype(out_ref.dtype)

    return kernel


# ----------------------------------------------------------------------------
# JAX-side glue
# ----------------------------------------------------------------------------
def _im2col(x_nhwc, kh, kw, stride, pad):
    B, H, W, C = x_nhwc.shape
    xp = jnp.pad(x_nhwc, ((0, 0), (pad, pad), (pad, pad), (0, 0)))
    Ho = (H + 2 * pad - kh) // stride + 1
    Wo = (W + 2 * pad - kw) // stride + 1
    cols = []
    for i in range(kh):
        for j in range(kw):
            cols.append(
                xp[:, i: i + stride * (Ho - 1) + 1: stride,
                      j: j + stride * (Wo - 1) + 1: stride, :])
    patches = jnp.stack(cols, axis=3)            # [B, Ho, Wo, kh*kw, C]
    return patches.reshape(B, Ho, Wo, kh * kw * C), Ho, Wo


def _mask_and_pool(B, H, W):
    """Interior mask [B*Hp*Wp, 1] and avg-pool matrix [B, B*Hp*Wp]."""
    Hp, Wp = H + 2, W + 2
    interior = jnp.zeros((B, Hp, Wp), jnp.float32).at[:, 1:1 + H, 1:1 + W].set(1.0)
    mask = interior.reshape(B * Hp * Wp, 1)
    eye = jnp.eye(B, dtype=jnp.float32)
    pool = (eye[:, :, None, None] * interior[None] / float(H * W))
    return mask, pool.reshape(B, B * Hp * Wp)


# ----------------------------------------------------------------------------
# Parameters (deterministic synthetic init, matching the PyTorch module)
# ----------------------------------------------------------------------------
def init_params(key, num_res_blocks=6, num_channels=1, out_dim=10):
    keys = iter(jax.random.split(key, 128))

    def conv(o, c, k):
        fan_in = c * k * k
        w = jax.random.normal(next(keys), (o, c, k, k), jnp.float32) / jnp.sqrt(fan_in)
        b = 0.01 * jax.random.normal(next(keys), (o,), jnp.float32)
        return w, b

    def bn_params(c):
        gamma = 1.0 + 0.1 * jax.random.normal(next(keys), (c,), jnp.float32)
        beta = 0.1 * jax.random.normal(next(keys), (c,), jnp.float32)
        mean = 0.1 * jax.random.normal(next(keys), (c,), jnp.float32)
        var = jnp.abs(1.0 + 0.1 * jax.random.normal(next(keys), (c,), jnp.float32))
        return (gamma, beta, mean, var, 1e-5)

    params = {}
    params["dw1"], params["db1"] = conv(64, num_channels, 3)
    params["dw2"], params["db2"] = conv(64, 64, 4)
    params["dw3"], params["db3"] = conv(64, 64, 4)
    params["bn"] = bn_params(64)                 # the shared self.bn

    blocks = []
    for _ in range(num_res_blocks):
        w1, b1 = conv(64, 64, 3)
        bn1 = bn_params(64)
        w2, b2 = conv(64, 64, 3)
        bn2 = bn_params(64)
        blocks.append({"w1": w1, "b1": b1, "bn1": bn1,
                       "w2": w2, "b2": b2, "bn2": bn2})
    params["blocks"] = blocks

    params["fc_w"] = jax.random.normal(next(keys), (out_dim, 64), jnp.float32) / jnp.sqrt(64.0)
    params["fc_b"] = 0.01 * jax.random.normal(next(keys), (out_dim,), jnp.float32)
    return params


def prepare_params(params):
    """Fold BN, transpose / pad weights to kernel-ready layouts (done once)."""
    def fold(bias, bn):
        gamma, beta, mean, var, eps = bn
        s = gamma * jax.lax.rsqrt(var + eps)
        return s, bias * s + beta - mean * s

    def pad_vec(v):
        return jnp.pad(v, (0, CPAD - v.shape[0])).reshape(1, CPAD)

    def ds_weight(w):                              # [O,C,kh,kw] -> [kh*kw*C, CPAD]
        O, C, kh, kw = w.shape
        wm = jnp.transpose(w, (2, 3, 1, 0)).reshape(kh * kw * C, O)
        return jnp.pad(wm, ((0, 0), (0, CPAD - O))).astype(jnp.bfloat16)

    bn = params["bn"]
    prep = {}
    s1, t1 = fold(params["db1"], bn)
    prep["w1"], prep["s1"], prep["t1"] = ds_weight(params["dw1"]), pad_vec(s1), pad_vec(t1)
    s2, t2 = fold(params["db2"], bn)
    prep["w2"], prep["s2"], prep["t2"] = ds_weight(params["dw2"]), pad_vec(s2), pad_vec(t2)
    prep["w3"] = ds_weight(params["dw3"])
    prep["s3"] = pad_vec(jnp.ones((64,), jnp.float32))
    prep["t3"] = pad_vec(params["db3"])

    # Residual trunk: stack the 2*num_blocks conv weights / scale / shift.
    ws, ss, ts = [], [], []
    for blk in params["blocks"]:
        for (w, b, bnp_) in ((blk["w1"], blk["b1"], blk["bn1"]),
                             (blk["w2"], blk["b2"], blk["bn2"])):
            O, C, kh, kw = w.shape
            wt = jnp.transpose(w, (2, 3, 1, 0))                     # [kh,kw,C,O]
            wt = jnp.pad(wt, ((0, 0), (0, 0), (0, CPAD - C), (0, CPAD - O)))
            ws.append(wt.reshape(kh * kw, CPAD, CPAD))
            s, t = fold(b, bnp_)
            ss.append(pad_vec(s))
            ts.append(pad_vec(t))
    prep["trunk_w"] = jnp.stack(ws).astype(jnp.bfloat16)            # [2n,9,128,128]
    prep["trunk_s"] = jnp.stack(ss)                                 # [2n,1,128]
    prep["trunk_t"] = jnp.stack(ts)

    # Head: shared BN + FC (padded to lane width).
    sh, th = fold(jnp.zeros((64,), jnp.float32), bn)
    prep["bnh_s"], prep["bnh_t"] = pad_vec(sh), pad_vec(th)
    fcw = params["fc_w"].T                                          # [64, out_dim]
    out_dim = fcw.shape[1]
    assert out_dim <= CPAD
    prep["fc_w"] = jnp.pad(fcw, ((0, CPAD - fcw.shape[0]), (0, CPAD - out_dim)))
    prep["fc_b"] = jnp.pad(params["fc_b"], (0, CPAD - out_dim)).reshape(1, CPAD)
    return prep


# ----------------------------------------------------------------------------
# Full forward pass
# ----------------------------------------------------------------------------
def resnet_forward(x_nchw, prep, out_dim=10):
    x = jnp.transpose(x_nchw, (0, 2, 3, 1)).astype(jnp.float32)     # NCHW -> NHWC
    B = x.shape[0]

    def ds_conv(x_nhwc, w, s, t, kh, kw, stride, pad, relu):
        patches, Ho, Wo = _im2col(x_nhwc, kh, kw, stride, pad)
        xm = patches.reshape(B * Ho * Wo, -1).astype(jnp.bfloat16)
        y = fused_matmul(xm, w, s, t, relu=relu)
        return y.reshape(B, Ho, Wo, CPAD)

    # downsampling_layer: conv(1,64,3,1)+bn+relu, conv(64,64,4,2,1)+bn+relu,
    #                     conv(64,64,4,2,1)
    y = ds_conv(x, prep["w1"], prep["s1"], prep["t1"], 3, 3, 1, 0, True)[..., :64]
    y = ds_conv(y, prep["w2"], prep["s2"], prep["t2"], 4, 4, 2, 1, True)[..., :64]
    y = ds_conv(y, prep["w3"], prep["s3"], prep["t3"], 4, 4, 2, 1, False)

    _, H, W, _ = y.shape
    Hp, Wp = H + 2, W + 2
    Mp = B * Hp * Wp
    KH = KW = 3
    marg = (KH // 2) * Wp + (KW // 2)

    # Flatten to padded layout [B*Hp*Wp, 128] with zero spatial-padding rows.
    x0 = jnp.pad(y, ((0, 0), (1, 1), (1, 1), (0, 0))).reshape(Mp, CPAD)
    mask, pool = _mask_and_pool(B, H, W)

    n_conv = prep["trunk_w"].shape[0]
    kernel = _make_trunk_kernel(Mp=Mp, marg=marg, Wp=Wp, KH=KH, KW=KW,
                                Cp=CPAD, n_conv=n_conv)

    logits = pl.pallas_call(
        kernel,
        out_shape=jax.ShapeDtypeStruct((B, CPAD), jnp.float32),
        grid_spec=pltpu.PrefetchScalarGridSpec(
            num_scalar_prefetch=0,
            grid=(n_conv,),
            in_specs=[
                pl.BlockSpec((Mp, CPAD), lambda c: (0, 0)),              # x0
                pl.BlockSpec((1, KH * KW, CPAD, CPAD),
                             lambda c: (c, 0, 0, 0)),                    # weights
                pl.BlockSpec((1, 1, CPAD), lambda c: (c, 0, 0)),         # scale
                pl.BlockSpec((1, 1, CPAD), lambda c: (c, 0, 0)),         # shift
                pl.BlockSpec((Mp, 1), lambda c: (0, 0)),                 # interior mask
                pl.BlockSpec((B, Mp), lambda c: (0, 0)),                 # pool matrix
                pl.BlockSpec((1, CPAD), lambda c: (0, 0)),               # head BN scale
                pl.BlockSpec((1, CPAD), lambda c: (0, 0)),               # head BN shift
                pl.BlockSpec((CPAD, CPAD), lambda c: (0, 0)),            # fc weight
                pl.BlockSpec((1, CPAD), lambda c: (0, 0)),               # fc bias
            ],
            out_specs=pl.BlockSpec((B, CPAD), lambda c: (0, 0)),
            scratch_shapes=[
                pltpu.VMEM((Mp + 2 * marg, CPAD), jnp.float32),          # activation
                pltpu.VMEM((Mp, CPAD), jnp.float32),                     # residual
            ],
        ),
        compiler_params=pltpu.CompilerParams(
            dimension_semantics=("arbitrary",)),
    )(x0, prep["trunk_w"], prep["trunk_s"], prep["trunk_t"],
      mask, pool, prep["bnh_s"], prep["bnh_t"], prep["fc_w"], prep["fc_b"])

    return logits[:, :out_dim]


# ----------------------------------------------------------------------------
if __name__ == "__main__":
    key = jax.random.PRNGKey(0)
    k_x, k_p = jax.random.split(key)

    # Module default: 1 input channel; batch=2, 16x16 spatial.
    x = jax.random.normal(k_x, (2, 1, 16, 16), jnp.float32)
    params = init_params(k_p)
    prep = prepare_params(params)          # BN folding / layout prep, done once

    fwd = jax.jit(functools.partial(resnet_forward, prep=prep, out_dim=10))
    out = jax.block_until_ready(fwd(x))

    assert out.shape == (2, 10), out.shape
    assert bool(jnp.all(jnp.isfinite(out))), "non-finite output"
    print("KERNEL_OK")
</pallas_src>

<mosaic_0001>
module attributes {stable_mosaic.version = 11 : i64} {
  func.func @_mm_kernel(%arg0: i32, %arg1: memref<256x9xbf16, #tpu.memory_space<vmem>>, %arg2: memref<9x128xbf16, #tpu.memory_space<vmem>>, %arg3: memref<1x128xf32, #tpu.memory_space<vmem>>, %arg4: memref<1x128xf32, #tpu.memory_space<vmem>>, %arg5: memref<256x128xf32, #tpu.memory_space<vmem>>) attributes {dimension_semantics = [#tpu.dimension_semantics<parallel>], iteration_bounds = array<i64: 2>, scalar_prefetch = 0 : i64, scratch_operands = 0 : i64, tpu.core_type = #tpu.core_type<tc>, window_params = [{transform_indices = @transform_0, window_bounds = array<i64: 256, 9>}, {pipeline_mode = #tpu.pipeline_mode<synchronous>, transform_indices = @transform_1, window_bounds = array<i64: 9, 128>}, {pipeline_mode = #tpu.pipeline_mode<synchronous>, transform_indices = @transform_2, window_bounds = array<i64: 1, 128>}, {pipeline_mode = #tpu.pipeline_mode<synchronous>, transform_indices = @transform_3, window_bounds = array<i64: 1, 128>}, {transform_indices = @transform_4, window_bounds = array<i64: 256, 128>}]} {
    %c0 = arith.constant 0 : index
    %c0_0 = arith.constant 0 : index
    %0 = vector.load %arg1[%c0, %c0_0] : memref<256x9xbf16, #tpu.memory_space<vmem>>, vector<256x9xbf16>
    %c0_1 = arith.constant 0 : index
    %c0_2 = arith.constant 0 : index
    %1 = vector.load %arg2[%c0_1, %c0_2] : memref<9x128xbf16, #tpu.memory_space<vmem>>, vector<9x128xbf16>
    %cst = arith.constant dense<0.000000e+00> : vector<256x128xf32>
    %2 = tpu.matmul %0, %1, %cst {dimension_numbers = #tpu.dot_dimension_numbers<[1], [0], [0], [1], [0, 0, 1, 1], [], []>} : vector<256x9xbf16>, vector<9x128xbf16>, vector<256x128xf32> -> vector<256x128xf32>
    %c0_3 = arith.constant 0 : index
    %c0_4 = arith.constant 0 : index
    %3 = vector.load %arg3[%c0_3, %c0_4] : memref<1x128xf32, #tpu.memory_space<vmem>>, vector<1x128xf32>
    %4 = vector.broadcast %3 : vector<1x128xf32> to vector<256x128xf32>
    %5 = arith.mulf %2, %4 : vector<256x128xf32>
    %c0_5 = arith.constant 0 : index
    %c0_6 = arith.constant 0 : index
    %6 = vector.load %arg4[%c0_5, %c0_6] : memref<1x128xf32, #tpu.memory_space<vmem>>, vector<1x128xf32>
    %7 = vector.broadcast %6 : vector<1x128xf32> to vector<256x128xf32>
    %8 = arith.addf %5, %7 : vector<256x128xf32>
    %cst_7 = arith.constant 0.000000e+00 : f32
    %9 = vector.broadcast %cst_7 : f32 to vector<256x128xf32>
    %10 = arith.maximumf %8, %9 : vector<256x128xf32>
    %c0_8 = arith.constant 0 : index
    %c0_9 = arith.constant 0 : index
    %11 = vector.load %arg5[%c0_8, %c0_9] : memref<256x128xf32, #tpu.memory_space<vmem>>, vector<256x128xf32>
    tpu.vector_store %arg5[%c0_8, %c0_9], %10 {strides = array<i32>} : memref<256x128xf32, #tpu.memory_space<vmem>>, vector<256x128xf32>,
    return
  }
  func.func @transform_0(%arg0: i32) -> (i32, i32) {
    %c0_i32 = arith.constant 0 : i32
    %c0_i32_0 = arith.constant 0 : i32
    return %arg0, %c0_i32 : i32, i32
  }
  func.func @transform_1(%arg0: i32) -> (i32, i32) {
    %c0_i32 = arith.constant 0 : i32
    %c0_i32_0 = arith.constant 0 : i32
    %c0_i32_1 = arith.constant 0 : i32
    return %c0_i32, %c0_i32_0 : i32, i32
  }
  func.func @transform_2(%arg0: i32) -> (i32, i32) {
    %c0_i32 = arith.constant 0 : i32
    %c0_i32_0 = arith.constant 0 : i32
    %c0_i32_1 = arith.constant 0 : i32
    return %c0_i32, %c0_i32_0 : i32, i32
  }
  func.func @transform_3(%arg0: i32) -> (i32, i32) {
    %c0_i32 = arith.constant 0 : i32
    %c0_i32_0 = arith.constant 0 : i32
    %c0_i32_1 = arith.constant 0 : i32
    return %c0_i32, %c0_i32_0 : i32, i32
  }
  func.func @transform_4(%arg0: i32) -> (i32, i32) {
    %c0_i32 = arith.constant 0 : i32
    %c0_i32_0 = arith.constant 0 : i32
    return %arg0, %c0_i32 : i32, i32
  }
}

module attributes {stable_mosaic.version = 11 : i64} {
  func.func @_mm_kernel(%arg0: i32, %arg1: memref<104x1024xbf16, #tpu.memory_space<vmem>>, %arg2: memref<1024x128xbf16, #tpu.memory_space<vmem>>, %arg3: memref<1x128xf32, #tpu.memory_space<vmem>>, %arg4: memref<1x128xf32, #tpu.memory_space<vmem>>, %arg5: memref<104x128xf32, #tpu.memory_space<vmem>>) attributes {dimension_semantics = [#tpu.dimension_semantics<parallel>], iteration_bounds = array<i64: 1>, scalar_prefetch = 0 : i64, scratch_operands = 0 : i64, tpu.core_type = #tpu.core_type<tc>, window_params = [{transform_indices = @transform_0, window_bounds = array<i64: 104, 1024>}, {pipeline_mode = #tpu.pipeline_mode<synchronous>, transform_indices = @transform_1, window_bounds = array<i64: 1024, 128>}, {pipeline_mode = #tpu.pipeline_mode<synchronous>, transform_indices = @transform_2, window_bounds = array<i64: 1, 128>}, {pipeline_mode = #tpu.pipeline_mode<synchronous>, transform_indices = @transform_3, window_bounds = array<i64: 1, 128>}, {transform_indices = @transform_4, window_bounds = array<i64: 104, 128>}]} {
    %c0 = arith.constant 0 : index
    %c0_0 = arith.constant 0 : index
    %0 = vector.load %arg1[%c0, %c0_0] : memref<104x1024xbf16, #tpu.memory_space<vmem>>, vector<104x1024xbf16>
    %c0_1 = arith.constant 0 : index
    %c0_2 = arith.constant 0 : index
    %1 = vector.load %arg2[%c0_1, %c0_2] : memref<1024x128xbf16, #tpu.memory_space<vmem>>, vector<1024x128xbf16>
    %cst = arith.constant dense<0.000000e+00> : vector<104x128xf32>
    %2 = tpu.matmul %0, %1, %cst {dimension_numbers = #tpu.dot_dimension_numbers<[1], [0], [0], [1], [0, 0, 1, 1], [], []>} : vector<104x1024xbf16>, vector<1024x128xbf16>, vector<104x128xf32> -> vector<104x128xf32>
    %c0_3 = arith.constant 0 : index
    %c0_4 = arith.constant 0 : index
    %3 = vector.load %arg3[%c0_3, %c0_4] : memref<1x128xf32, #tpu.memory_space<vmem>>, vector<1x128xf32>
    %4 = vector.broadcast %3 : vector<1x128xf32> to vector<104x128xf32>
    %5 = arith.mulf %2, %4 : vector<104x128xf32>
    %c0_5 = arith.constant 0 : index
    %c0_6 = arith.constant 0 : index
    %6 = vector.load %arg4[%c0_5, %c0_6] : memref<1x128xf32, #tpu.memory_space<vmem>>, vector<1x128xf32>
    %7 = vector.broadcast %6 : vector<1x128xf32> to vector<104x128xf32>
    %8 = arith.addf %5, %7 : vector<104x128xf32>
    %cst_7 = arith.constant 0.000000e+00 : f32
    %9 = vector.broadcast %cst_7 : f32 to vector<104x128xf32>
    %10 = arith.maximumf %8, %9 : vector<104x128xf32>
    %c0_8 = arith.constant 0 : index
    %c0_9 = arith.constant 0 : index
    %11 = vector.load %arg5[%c0_8, %c0_9] : memref<104x128xf32, #tpu.memory_space<vmem>>, vector<104x128xf32>
    tpu.vector_store %arg5[%c0_8, %c0_9], %10 {strides = array<i32>} : memref<104x128xf32, #tpu.memory_space<vmem>>, vector<104x128xf32>,
    return
  }
  func.func @transform_0(%arg0: i32) -> (i32, i32) {
    %c0_i32 = arith.constant 0 : i32
    %c0_i32_0 = arith.constant 0 : i32
    return %arg0, %c0_i32 : i32, i32
  }
  func.func @transform_1(%arg0: i32) -> (i32, i32) {
    %c0_i32 = arith.constant 0 : i32
    %c0_i32_0 = arith.constant 0 : i32
    %c0_i32_1 = arith.constant 0 : i32
    return %c0_i32, %c0_i32_0 : i32, i32
  }
  func.func @transform_2(%arg0: i32) -> (i32, i32) {
    %c0_i32 = arith.constant 0 : i32
    %c0_i32_0 = arith.constant 0 : i32
    %c0_i32_1 = arith.constant 0 : i32
    return %c0_i32, %c0_i32_0 : i32, i32
  }
  func.func @transform_3(%arg0: i32) -> (i32, i32) {
    %c0_i32 = arith.constant 0 : i32
    %c0_i32_0 = arith.constant 0 : i32
    %c0_i32_1 = arith.constant 0 : i32
    return %c0_i32, %c0_i32_0 : i32, i32
  }
  func.func @transform_4(%arg0: i32) -> (i32, i32) {
    %c0_i32 = arith.constant 0 : i32
    %c0_i32_0 = arith.constant 0 : i32
    return %arg0, %c0_i32 : i32, i32
  }
}

module attributes {stable_mosaic.version = 11 : i64} {
  func.func @kernel(%arg0: i32, %arg1: memref<50x128xf32, #tpu.memory_space<vmem>>, %arg2: memref<1x9x128x128xbf16, #tpu.memory_space<vmem>>, %arg3: memref<1x1x128xf32, #tpu.memory_space<vmem>>, %arg4: memref<1x1x128xf32, #tpu.memory_space<vmem>>, %arg5: memref<50x1xf32, #tpu.memory_space<vmem>>, %arg6: memref<2x50xf32, #tpu.memory_space<vmem>>, %arg7: memref<1x128xf32, #tpu.memory_space<vmem>>, %arg8: memref<1x128xf32, #tpu.memory_space<vmem>>, %arg9: memref<128x128xf32, #tpu.memory_space<vmem>>, %arg10: memref<1x128xf32, #tpu.memory_space<vmem>>, %arg11: memref<2x128xf32, #tpu.memory_space<vmem>>, %arg12: memref<62x128xf32, #tpu.memory_space<vmem>>, %arg13: memref<50x128xf32, #tpu.memory_space<vmem>>) attributes {dimension_semantics = [#tpu.dimension_semantics<arbitrary>], iteration_bounds = array<i64: 12>, scalar_prefetch = 0 : i64, scratch_operands = 2 : i64, tpu.core_type = #tpu.core_type<tc>, window_params = [{pipeline_mode = #tpu.pipeline_mode<synchronous>, transform_indices = @transform_0, window_bounds = array<i64: 50, 128>}, {transform_indices = @transform_1, window_bounds = array<i64: 1, 9, 128, 128>}, {transform_indices = @transform_2, window_bounds = array<i64: 1, 1, 128>}, {transform_indices = @transform_3, window_bounds = array<i64: 1, 1, 128>}, {pipeline_mode = #tpu.pipeline_mode<synchronous>, transform_indices = @transform_4, window_bounds = array<i64: 50, 1>}, {pipeline_mode = #tpu.pipeline_mode<synchronous>, transform_indices = @transform_5, window_bounds = array<i64: 2, 50>}, {pipeline_mode = #tpu.pipeline_mode<synchronous>, transform_indices = @transform_6, window_bounds = array<i64: 1, 128>}, {pipeline_mode = #tpu.pipeline_mode<synchronous>, transform_indices = @transform_7, window_bounds = array<i64: 1, 128>}, {pipeline_mode = #tpu.pipeline_mode<synchronous>, transform_indices = @transform_8, window_bounds = array<i64: 128, 128>}, {pipeline_mode = #tpu.pipeline_mode<synchronous>, transform_indices = @transform_9, window_bounds = array<i64: 1, 128>}, {pipeline_mode = #tpu.pipeline_mode<synchronous>, transform_indices = @transform_10, window_bounds = array<i64: 2, 128>}]} {
    %c0_i32 = arith.constant 0 : i32
    %0 = arith.cmpi eq, %arg0, %c0_i32 : i32
    %1 = arith.extui %0 : i1 to i32
    %c0_i32_0 = arith.constant 0 : i32
    %2 = arith.cmpi ne, %1, %c0_i32_0 : i32
    scf.if %2 {
      %cst_78 = arith.constant 0.000000e+00 : f32
      %103 = vector.broadcast %cst_78 : f32 to vector<62x128xf32>
      %c0_79 = arith.constant 0 : index
      %c0_80 = arith.constant 0 : index
      %104 = vector.load %arg12[%c0_79, %c0_80] : memref<62x128xf32, #tpu.memory_space<vmem>>, vector<62x128xf32>
      tpu.vector_store %arg12[%c0_79, %c0_80], %103 {strides = array<i32>} : memref<62x128xf32, #tpu.memory_space<vmem>>, vector<62x128xf32>,
      %c0_81 = arith.constant 0 : index
      %c0_82 = arith.constant 0 : index
      %105 = vector.load %arg1[%c0_81, %c0_82] : memref<50x128xf32, #tpu.memory_space<vmem>>, vector<50x128xf32>
      %c6_83 = arith.constant 6 : index
      %c0_84 = arith.constant 0 : index
      %106 = vector.load %arg12[%c6_83, %c0_84] : memref<62x128xf32, #tpu.memory_space<vmem>>, vector<50x128xf32>
      tpu.vector_store %arg12[%c6_83, %c0_84], %105 {strides = array<i32>} : memref<62x128xf32, #tpu.memory_space<vmem>>, vector<50x128xf32>,
    } else {
    }
    %c2_i32 = arith.constant 2 : i32
    %c0_i32_1 = arith.constant 0 : i32
    %3 = arith.cmpi eq, %c2_i32, %c0_i32_1 : i32
    %c1_i32 = arith.constant 1 : i32
    %4 = arith.select %3, %c1_i32, %c2_i32 : i32
    %5 = arith.remsi %arg0, %4 : i32
    %c0_i32_2 = arith.constant 0 : i32
    %6 = arith.cmpi ne, %5, %c0_i32_2 : i32
    %c0_i32_3 = arith.constant 0 : i32
    %7 = arith.cmpi slt, %5, %c0_i32_3 : i32
    %c0_i32_4 = arith.constant 0 : i32
    %8 = arith.cmpi slt, %4, %c0_i32_4 : i32
    %9 = arith.xori %7, %8 : i1
    %10 = arith.andi %9, %6 : i1
    %11 = arith.addi %5, %4 : i32
    %12 = arith.select %10, %11, %5 : i32
    %c0_i32_5 = arith.constant 0 : i32
    %13 = arith.cmpi eq, %12, %c0_i32_5 : i32
    %14 = arith.extui %13 : i1 to i32
    %c0_i32_6 = arith.constant 0 : i32
    %15 = arith.cmpi ne, %14, %c0_i32_6 : i32
    scf.if %15 {
      %c6_78 = arith.constant 6 : index
      %c0_79 = arith.constant 0 : index
      %103 = vector.load %arg12[%c6_78, %c0_79] : memref<62x128xf32, #tpu.memory_space<vmem>>, vector<50x128xf32>
      %c0_80 = arith.constant 0 : index
      %c0_81 = arith.constant 0 : index
      %104 = vector.load %arg13[%c0_80, %c0_81] : memref<50x128xf32, #tpu.memory_space<vmem>>, vector<50x128xf32>
      tpu.vector_store %arg13[%c0_80, %c0_81], %103 {strides = array<i32>} : memref<50x128xf32, #tpu.memory_space<vmem>>, vector<50x128xf32>,
    } else {
    }
    %cst = arith.constant 0.000000e+00 : f32
    %16 = vector.broadcast %cst : f32 to vector<50x128xf32>
    %c0 = arith.constant 0 : index
    %c0_7 = arith.constant 0 : index
    %17 = vector.load %arg12[%c0, %c0_7] : memref<62x128xf32, #tpu.memory_space<vmem>>, vector<50x128xf32>
    %18 = arith.truncf %17 : vector<50x128xf32> to vector<50x128xbf16>
    %c0_8 = arith.constant 0 : index
    %c0_9 = arith.constant 0 : index
    %c0_10 = arith.constant 0 : index
    %c0_11 = arith.constant 0 : index
    %19 = vector.load %arg2[%c0_8, %c0_9, %c0_10, %c0_11] : memref<1x9x128x128xbf16, #tpu.memory_space<vmem>>, vector<1x1x128x128xbf16>
    %20 = vector.shape_cast %19 : vector<1x1x128x128xbf16> to vector<128x128xbf16>
    %cst_12 = arith.constant dense<0.000000e+00> : vector<50x128xf32>
    %21 = tpu.matmul %18, %20, %cst_12 {dimension_numbers = #tpu.dot_dimension_numbers<[1], [0], [0], [1], [0, 0, 1, 1], [], []>} : vector<50x128xbf16>, vector<128x128xbf16>, vector<50x128xf32> -> vector<50x128xf32>
    %22 = arith.addf %16, %21 : vector<50x128xf32>
    %c1 = arith.constant 1 : index
    %c0_13 = arith.constant 0 : index
    %23 = vector.load %arg12[%c1, %c0_13] : memref<62x128xf32, #tpu.memory_space<vmem>>, vector<50x128xf32>
    %24 = arith.truncf %23 : vector<50x128xf32> to vector<50x128xbf16>
    %c0_14 = arith.constant 0 : index
    %c1_15 = arith.constant 1 : index
    %c0_16 = arith.constant 0 : index
    %c0_17 = arith.constant 0 : index
    %25 = vector.load %arg2[%c0_14, %c1_15, %c0_16, %c0_17] : memref<1x9x128x128xbf16, #tpu.memory_space<vmem>>, vector<1x1x128x128xbf16>
    %26 = vector.shape_cast %25 : vector<1x1x128x128xbf16> to vector<128x128xbf16>
    %cst_18 = arith.constant dense<0.000000e+00> : vector<50x128xf32>
    %27 = tpu.matmul %24, %26, %cst_18 {dimension_numbers = #tpu.dot_dimension_numbers<[1], [0], [0], [1], [0, 0, 1, 1], [], []>} : vector<50x128xbf16>, vector<128x128xbf16>, vector<50x128xf32> -> vector<50x128xf32>
    %28 = arith.addf %22, %27 : vector<50x128xf32>
    %c2 = arith.constant 2 : index
    %c0_19 = arith.constant 0 : index
    %29 = vector.load %arg12[%c2, %c0_19] : memref<62x128xf32, #tpu.memory_space<vmem>>, vector<50x128xf32>
    %30 = arith.truncf %29 : vector<50x128xf32> to vector<50x128xbf16>
    %c0_20 = arith.constant 0 : index
    %c2_21 = arith.constant 2 : index
    %c0_22 = arith.constant 0 : index
    %c0_23 = arith.constant 0 : index
    %31 = vector.load %arg2[%c0_20, %c2_21, %c0_22, %c0_23] : memref<1x9x128x128xbf16, #tpu.memory_space<vmem>>, vector<1x1x128x128xbf16>
    %32 = vector.shape_cast %31 : vector<1x1x128x128xbf16> to vector<128x128xbf16>
    %cst_24 = arith.constant dense<0.000000e+00> : vector<50x128xf32>
    %33 = tpu.matmul %30, %32, %cst_24 {dimension_numbers = #tpu.dot_dimension_numbers<[1], [0], [0], [1], [0, 0, 1, 1], [], []>} : vector<50x128xbf16>, vector<128x128xbf16>, vector<50x128xf32> -> vector<50x128xf32>
    %34 = arith.addf %28, %33 : vector<50x128xf32>
    %c5 = arith.constant 5 : index
    %c0_25 = arith.constant 0 : index
    %35 = vector.load %arg12[%c5, %c0_25] : memref<62x128xf32, #tpu.memory_space<vmem>>, vector<50x128xf32>
    %36 = arith.truncf %35 : vector<50x128xf32> to vector<50x128xbf16>
    %c0_26 = arith.constant 0 : index
    %c3 = arith.constant 3 : index
    %c0_27 = arith.constant 0 : index
    %c0_28 = arith.constant 0 : index
    %37 = vector.load %arg2[%c0_26, %c3, %c0_27, %c0_28] : memref<1x9x128x128xbf16, #tpu.memory_space<vmem>>, vector<1x1x128x128xbf16>
    %38 = vector.shape_cast %37 : vector<1x1x128x128xbf16> to vector<128x128xbf16>
    %cst_29 = arith.constant dense<0.000000e+00> : vector<50x128xf32>
    %39 = tpu.matmul %36, %38, %cst_29 {dimension_numbers = #tpu.dot_dimension_numbers<[1], [0], [0], [1], [0, 0, 1, 1], [], []>} : vector<50x128xbf16>, vector<128x128xbf16>, vector<50x128xf32> -> vector<50x128xf32>
    %40 = arith.addf %34, %39 : vector<50x128xf32>
    %c6 = arith.constant 6 : index
    %c0_30 = arith.constant 0 : index
    %41 = vector.load %arg12[%c6, %c0_30] : memref<62x128xf32, #tpu.memory_space<vmem>>, vector<50x128xf32>
    %42 = arith.truncf %41 : vector<50x128xf32> to vector<50x128xbf16>
    %c0_31 = arith.constant 0 : index
    %c4 = arith.constant 4 : index
    %c0_32 = arith.constant 0 : index
    %c0_33 = arith.constant 0 : index
    %43 = vector.load %arg2[%c0_31, %c4, %c0_32, %c0_33] : memref<1x9x128x128xbf16, #tpu.memory_space<vmem>>, vector<1x1x128x128xbf16>
    %44 = vector.shape_cast %43 : vector<1x1x128x128xbf16> to vector<128x128xbf16>
    %cst_34 = arith.constant dense<0.000000e+00> : vector<50x128xf32>
    %45 = tpu.matmul %42, %44, %cst_34 {dimension_numbers = #tpu.dot_dimension_numbers<[1], [0], [0], [1], [0, 0, 1, 1], [], []>} : vector<50x128xbf16>, vector<128x128xbf16>, vector<50x128xf32> -> vector<50x128xf32>
    %46 = arith.addf %40, %45 : vector<50x128xf32>
    %c7 = arith.constant 7 : index
    %c0_35 = arith.constant 0 : index
    %47 = vector.load %arg12[%c7, %c0_35] : memref<62x128xf32, #tpu.memory_space<vmem>>, vector<50x128xf32>
    %48 = arith.truncf %47 : vector<50x128xf32> to vector<50x128xbf16>
    %c0_36 = arith.constant 0 : index
    %c5_37 = arith.constant 5 : index
    %c0_38 = arith.constant 0 : index
    %c0_39 = arith.constant 0 : index
    %49 = vector.load %arg2[%c0_36, %c5_37, %c0_38, %c0_39] : memref<1x9x128x128xbf16, #tpu.memory_space<vmem>>, vector<1x1x128x128xbf16>
    %50 = vector.shape_cast %49 : vector<1x1x128x128xbf16> to vector<128x128xbf16>
    %cst_40 = arith.constant dense<0.000000e+00> : vector<50x128xf32>
    %51 = tpu.matmul %48, %50, %cst_40 {dimension_numbers = #tpu.dot_dimension_numbers<[1], [0], [0], [1], [0, 0, 1, 1], [], []>} : vector<50x128xbf16>, vector<128x128xbf16>, vector<50x128xf32> -> vector<50x128xf32>
    %52 = arith.addf %46, %51 : vector<50x128xf32>
    %c10 = arith.constant 10 : index
    %c0_41 = arith.constant 0 : index
    %53 = vector.load %arg12[%c10, %c0_41] : memref<62x128xf32, #tpu.memory_space<vmem>>, vector<50x128xf32>
    %54 = arith.truncf %53 : vector<50x128xf32> to vector<50x128xbf16>
    %c0_42 = arith.constant 0 : index
    %c6_43 = arith.constant 6 : index
    %c0_44 = arith.constant 0 : index
    %c0_45 = arith.constant 0 : index
    %55 = vector.load %arg2[%c0_42, %c6_43, %c0_44, %c0_45] : memref<1x9x128x128xbf16, #tpu.memory_space<vmem>>, vector<1x1x128x128xbf16>
    %56 = vector.shape_cast %55 : vector<1x1x128x128xbf16> to vector<128x128xbf16>
    %cst_46 = arith.constant dense<0.000000e+00> : vector<50x128xf32>
    %57 = tpu.matmul %54, %56, %cst_46 {dimension_numbers = #tpu.dot_dimension_numbers<[1], [0], [0], [1], [0, 0, 1, 1], [], []>} : vector<50x128xbf16>, vector<128x128xbf16>, vector<50x128xf32> -> vector<50x128xf32>
    %58 = arith.addf %52, %57 : vector<50x128xf32>
    %c11 = arith.constant 11 : index
    %c0_47 = arith.constant 0 : index
    %59 = vector.load %arg12[%c11, %c0_47] : memref<62x128xf32, #tpu.memory_space<vmem>>, vector<50x128xf32>
    %60 = arith.truncf %59 : vector<50x128xf32> to vector<50x128xbf16>
    %c0_48 = arith.constant 0 : index
    %c7_49 = arith.constant 7 : index
    %c0_50 = arith.constant 0 : index
    %c0_51 = arith.constant 0 : index
    %61 = vector.load %arg2[%c0_48, %c7_49, %c0_50, %c0_51] : memref<1x9x128x128xbf16, #tpu.memory_space<vmem>>, vector<1x1x128x128xbf16>
    %62 = vector.shape_cast %61 : vector<1x1x128x128xbf16> to vector<128x128xbf16>
    %cst_52 = arith.constant dense<0.000000e+00> : vector<50x128xf32>
    %63 = tpu.matmul %60, %62, %cst_52 {dimension_numbers = #tpu.dot_dimension_numbers<[1], [0], [0], [1], [0, 0, 1, 1], [], []>} : vector<50x128xbf16>, vector<128x128xbf16>, vector<50x128xf32> -> vector<50x128xf32>
    %64 = arith.addf %58, %63 : vector<50x128xf32>
    %c12 = arith.constant 12 : index
    %c0_53 = arith.constant 0 : index
    %65 = vector.load %arg12[%c12, %c0_53] : memref<62x128xf32, #tpu.memory_space<vmem>>, vector<50x128xf32>
    %66 = arith.truncf %65 : vector<50x128xf32> to vector<50x128xbf16>
    %c0_54 = arith.constant 0 : index
    %c8 = arith.constant 8 : index
    %c0_55 = arith.constant 0 : index
    %c0_56 = arith.constant 0 : index
    %67 = vector.load %arg2[%c0_54, %c8, %c0_55, %c0_56] : memref<1x9x128x128xbf16, #tpu.memory_space<vmem>>, vector<1x1x128x128xbf16>
    %68 = vector.shape_cast %67 : vector<1x1x128x128xbf16> to vector<128x128xbf16>
    %cst_57 = arith.constant dense<0.000000e+00> : vector<50x128xf32>
    %69 = tpu.matmul %66, %68, %cst_57 {dimension_numbers = #tpu.dot_dimension_numbers<[1], [0], [0], [1], [0, 0, 1, 1], [], []>} : vector<50x128xbf16>, vector<128x128xbf16>, vector<50x128xf32> -> vector<50x128xf32>
    %70 = arith.addf %64, %69 : vector<50x128xf32>
    %c0_58 = arith.constant 0 : index
    %c0_59 = arith.constant 0 : index
    %c0_60 = arith.constant 0 : index
    %71 = vector.load %arg3[%c0_58, %c0_59, %c0_60] : memref<1x1x128xf32, #tpu.memory_space<vmem>>, vector<1x1x128xf32>
    %72 = vector.shape_cast %71 : vector<1x1x128xf32> to vector<1x128xf32>
    %73 = vector.broadcast %72 : vector<1x128xf32> to vector<50x128xf32>
    %74 = arith.mulf %70, %73 : vector<50x128xf32>
    %c0_61 = arith.constant 0 : index
    %c0_62 = arith.constant 0 : index
    %c0_63 = arith.constant 0 : index
    %75 = vector.load %arg4[%c0_61, %c0_62, %c0_63] : memref<1x1x128xf32, #tpu.memory_space<vmem>>, vector<1x1x128xf32>
    %76 = vector.shape_cast %75 : vector<1x1x128xf32> to vector<1x128xf32>
    %77 = vector.broadcast %76 : vector<1x128xf32> to vector<50x128xf32>
    %78 = arith.addf %74, %77 : vector<50x128xf32>
    %c2_i32_64 = arith.constant 2 : i32
    %c0_i32_65 = arith.constant 0 : i32
    %79 = arith.cmpi eq, %c2_i32_64, %c0_i32_65 : i32
    %c1_i32_66 = arith.constant 1 : i32
    %80 = arith.select %79, %c1_i32_66, %c2_i32_64 : i32
    %81 = arith.remsi %arg0, %80 : i32
    %c0_i32_67 = arith.constant 0 : i32
    %82 = arith.cmpi ne, %81, %c0_i32_67 : i32
    %c0_i32_68 = arith.constant 0 : i32
    %83 = arith.cmpi slt, %81, %c0_i32_68 : i32
    %c0_i32_69 = arith.constant 0 : i32
    %84 = arith.cmpi slt, %80, %c0_i32_69 : i32
    %85 = arith.xori %83, %84 : i1
    %86 = arith.andi %85, %82 : i1
    %87 = arith.addi %81, %80 : i32
    %88 = arith.select %86, %87, %81 : i32
    %89 = arith.sitofp %88 : i32 to f32
    %c0_70 = arith.constant 0 : index
    %c0_71 = arith.constant 0 : index
    %90 = vector.load %arg13[%c0_70, %c0_71] : memref<50x128xf32, #tpu.memory_space<vmem>>, vector<50x128xf32>
    %91 = vector.broadcast %89 : f32 to vector<50x128xf32>
    %92 = arith.mulf %91, %90 : vector<50x128xf32>
    %93 = arith.addf %78, %92 : vector<50x128xf32>
    %cst_72 = arith.constant 0.000000e+00 : f32
    %94 = vector.broadcast %cst_72 : f32 to vector<50x128xf32>
    %95 = arith.maximumf %93, %94 : vector<50x128xf32>
    %c0_73 = arith.constant 0 : index
    %c0_74 = arith.constant 0 : index
    %96 = vector.load %arg5[%c0_73, %c0_74] : memref<50x1xf32, #tpu.memory_space<vmem>>, vector<50x1xf32>
    %97 = vector.broadcast %96 : vector<50x1xf32> to vector<50x128xf32>
    %98 = arith.mulf %95, %97 : vector<50x128xf32>
    %c6_75 = arith.constant 6 : index
    %c0_76 = arith.constant 0 : index
    %99 = vector.load %arg12[%c6_75, %c0_76] : memref<62x128xf32, #tpu.memory_space<vmem>>, vector<50x128xf32>
    tpu.vector_store %arg12[%c6_75, %c0_76], %98 {strides = array<i32>} : memref<62x128xf32, #tpu.memory_space<vmem>>, vector<50x128xf32>,
    %c11_i32 = arith.constant 11 : i32
    %100 = arith.cmpi eq, %arg0, %c11_i32 : i32
    %101 = arith.extui %100 : i1 to i32
    %c0_i32_77 = arith.constant 0 : i32
    %102 = arith.cmpi ne, %101, %c0_i32_77 : i32
    scf.if %102 {
      %c0_78 = arith.constant 0 : index
      %c0_79 = arith.constant 0 : index
      %103 = vector.load %arg7[%c0_78, %c0_79] : memref<1x128xf32, #tpu.memory_space<vmem>>, vector<1x128xf32>
      %104 = vector.broadcast %103 : vector<1x128xf32> to vector<50x128xf32>
      %105 = arith.mulf %98, %104 : vector<50x128xf32>
      %c0_80 = arith.constant 0 : index
      %c0_81 = arith.constant 0 : index
      %106 = vector.load %arg8[%c0_80, %c0_81] : memref<1x128xf32, #tpu.memory_space<vmem>>, vector<1x128xf32>
      %107 = vector.broadcast %106 : vector<1x128xf32> to vector<50x128xf32>
      %108 = arith.addf %105, %107 : vector<50x128xf32>
      %cst_82 = arith.constant 0.000000e+00 : f32
      %109 = vector.broadcast %cst_82 : f32 to vector<50x128xf32>
      %110 = arith.maximumf %108, %109 : vector<50x128xf32>
      %c0_83 = arith.constant 0 : index
      %c0_84 = arith.constant 0 : index
      %111 = vector.load %arg6[%c0_83, %c0_84] : memref<2x50xf32, #tpu.memory_space<vmem>>, vector<2x50xf32>
      %cst_85 = arith.constant dense<0.000000e+00> : vector<2x128xf32>
      %112 = tpu.matmul %111, %110, %cst_85 {dimension_numbers = #tpu.dot_dimension_numbers<[1], [0], [0], [1], [0, 0, 1, 1], [], []>} : vector<2x50xf32>, vector<50x128xf32>, vector<2x128xf32> -> vector<2x128xf32>
      %c0_86 = arith.constant 0 : index
      %c0_87 = arith.constant 0 : index
      %113 = vector.load %arg9[%c0_86, %c0_87] : memref<128x128xf32, #tpu.memory_space<vmem>>, vector<128x128xf32>
      %cst_88 = arith.constant dense<0.000000e+00> : vector<2x128xf32>
      %114 = tpu.matmul %112, %113, %cst_88 {dimension_numbers = #tpu.dot_dimension_numbers<[1], [0], [0], [1], [0, 0, 1, 1], [], []>} : vector<2x128xf32>, vector<128x128xf32>, vector<2x128xf32> -> vector<2x128xf32>
      %c0_89 = arith.constant 0 : index
      %c0_90 = arith.constant 0 : index
      %115 = vector.load %arg10[%c0_89, %c0_90] : memref<1x128xf32, #tpu.memory_space<vmem>>, vector<1x128xf32>
      %116 = vector.broadcast %115 : vector<1x128xf32> to vector<2x128xf32>
      %117 = arith.addf %114, %116 : vector<2x128xf32>
      %c0_91 = arith.constant 0 : index
      %c0_92 = arith.constant 0 : index
      %118 = vector.load %arg11[%c0_91, %c0_92] : memref<2x128xf32, #tpu.memory_space<vmem>>, vector<2x128xf32>
      tpu.vector_store %arg11[%c0_91, %c0_92], %117 {strides = array<i32>} : memref<2x128xf32, #tpu.memory_space<vmem>>, vector<2x128xf32>,
    } else {
    }
    return
  }
  func.func @transform_0(%arg0: i32) -> (i32, i32) {
    %c0_i32 = arith.constant 0 : i32
    %c0_i32_0 = arith.constant 0 : i32
    %c0_i32_1 = arith.constant 0 : i32
    return %c0_i32, %c0_i32_0 : i32, i32
  }
  func.func @transform_1(%arg0: i32) -> (i32, i32, i32, i32) {
    %c0_i32 = arith.constant 0 : i32
    %c0_i32_0 = arith.constant 0 : i32
    %c0_i32_1 = arith.constant 0 : i32
    %c0_i32_2 = arith.constant 0 : i32
    return %arg0, %c0_i32, %c0_i32_0, %c0_i32_1 : i32, i32, i32, i32
  }
  func.func @transform_2(%arg0: i32) -> (i32, i32, i32) {
    %c0_i32 = arith.constant 0 : i32
    %c0_i32_0 = arith.constant 0 : i32
    %c0_i32_1 = arith.constant 0 : i32
    return %arg0, %c0_i32, %c0_i32_0 : i32, i32, i32
  }
  func.func @transform_3(%arg0: i32) -> (i32, i32, i32) {
    %c0_i32 = arith.constant 0 : i32
    %c0_i32_0 = arith.constant 0 : i32
    %c0_i32_1 = arith.constant 0 : i32
    return %arg0, %c0_i32, %c0_i32_0 : i32, i32, i32
  }
  func.func @transform_4(%arg0: i32) -> (i32, i32) {
    %c0_i32 = arith.constant 0 : i32
    %c0_i32_0 = arith.constant 0 : i32
    %c0_i32_1 = arith.constant 0 : i32
    return %c0_i32, %c0_i32_0 : i32, i32
  }
  func.func @transform_5(%arg0: i32) -> (i32, i32) {
    %c0_i32 = arith.constant 0 : i32
    %c0_i32_0 = arith.constant 0 : i32
    %c0_i32_1 = arith.constant 0 : i32
    return %c0_i32, %c0_i32_0 : i32, i32
  }
  func.func @transform_6(%arg0: i32) -> (i32, i32) {
    %c0_i32 = arith.constant 0 : i32
    %c0_i32_0 = arith.constant 0 : i32
    %c0_i32_1 = arith.constant 0 : i32
    return %c0_i32, %c0_i32_0 : i32, i32
  }
  func.func @transform_7(%arg0: i32) -> (i32, i32) {
    %c0_i32 = arith.constant 0 : i32
    %c0_i32_0 = arith.constant 0 : i32
    %c0_i32_1 = arith.constant 0 : i32
    return %c0_i32, %c0_i32_0 : i32, i32
  }
  func.func @transform_8(%arg0: i32) -> (i32, i32) {
    %c0_i32 = arith.constant 0 : i32
    %c0_i32_0 = arith.constant 0 : i32
    %c0_i32_1 = arith.constant 0 : i32
    return %c0_i32, %c0_i32_0 : i32, i32
  }
  func.func @transform_9(%arg0: i32) -> (i32, i32) {
    %c0_i32 = arith.constant 0 : i32
    %c0_i32_0 = arith.constant 0 : i32
    %c0_i32_1 = arith.constant 0 : i32
    return %c0_i32, %c0_i32_0 : i32, i32
  }
  func.func @transform_10(%arg0: i32) -> (i32, i32) {
    %c0_i32 = arith.constant 0 : i32
    %c0_i32_0 = arith.constant 0 : i32
    %c0_i32_1 = arith.constant 0 : i32
    return %c0_i32, %c0_i32_0 : i32, i32
  }
}

module attributes {stable_mosaic.version = 11 : i64} {
  func.func @_mm_kernel(%arg0: i32, %arg1: memref<24x1024xbf16, #tpu.memory_space<vmem>>, %arg2: memref<1024x128xbf16, #tpu.memory_space<vmem>>, %arg3: memref<1x128xf32, #tpu.memory_space<vmem>>, %arg4: memref<1x128xf32, #tpu.memory_space<vmem>>, %arg5: memref<24x128xf32, #tpu.memory_space<vmem>>) attributes {dimension_semantics = [#tpu.dimension_semantics<parallel>], iteration_bounds = array<i64: 1>, scalar_prefetch = 0 : i64, scratch_operands = 0 : i64, tpu.core_type = #tpu.core_type<tc>, window_params = [{transform_indices = @transform_0, window_bounds = array<i64: 24, 1024>}, {pipeline_mode = #tpu.pipeline_mode<synchronous>, transform_indices = @transform_1, window_bounds = array<i64: 1024, 128>}, {pipeline_mode = #tpu.pipeline_mode<synchronous>, transform_indices = @transform_2, window_bounds = array<i64: 1, 128>}, {pipeline_mode = #tpu.pipeline_mode<synchronous>, transform_indices = @transform_3, window_bounds = array<i64: 1, 128>}, {transform_indices = @transform_4, window_bounds = array<i64: 24, 128>}]} {
    %c0 = arith.constant 0 : index
    %c0_0 = arith.constant 0 : index
    %0 = vector.load %arg1[%c0, %c0_0] : memref<24x1024xbf16, #tpu.memory_space<vmem>>, vector<24x1024xbf16>
    %c0_1 = arith.constant 0 : index
    %c0_2 = arith.constant 0 : index
    %1 = vector.load %arg2[%c0_1, %c0_2] : memref<1024x128xbf16, #tpu.memory_space<vmem>>, vector<1024x128xbf16>
    %cst = arith.constant dense<0.000000e+00> : vector<24x128xf32>
    %2 = tpu.matmul %0, %1, %cst {dimension_numbers = #tpu.dot_dimension_numbers<[1], [0], [0], [1], [0, 0, 1, 1], [], []>} : vector<24x1024xbf16>, vector<1024x128xbf16>, vector<24x128xf32> -> vector<24x128xf32>
    %c0_3 = arith.constant 0 : index
    %c0_4 = arith.constant 0 : index
    %3 = vector.load %arg3[%c0_3, %c0_4] : memref<1x128xf32, #tpu.memory_space<vmem>>, vector<1x128xf32>
    %4 = vector.broadcast %3 : vector<1x128xf32> to vector<24x128xf32>
    %5 = arith.mulf %2, %4 : vector<24x128xf32>
    %c0_5 = arith.constant 0 : index
    %c0_6 = arith.constant 0 : index
    %6 = vector.load %arg4[%c0_5, %c0_6] : memref<1x128xf32, #tpu.memory_space<vmem>>, vector<1x128xf32>
    %7 = vector.broadcast %6 : vector<1x128xf32> to vector<24x128xf32>
    %8 = arith.addf %5, %7 : vector<24x128xf32>
    %c0_7 = arith.constant 0 : index
    %c0_8 = arith.constant 0 : index
    %9 = vector.load %arg5[%c0_7, %c0_8] : memref<24x128xf32, #tpu.memory_space<vmem>>, vector<24x128xf32>
    tpu.vector_store %arg5[%c0_7, %c0_8], %8 {strides = array<i32>} : memref<24x128xf32, #tpu.memory_space<vmem>>, vector<24x128xf32>,
    return
  }
  func.func @transform_0(%arg0: i32) -> (i32, i32) {
    %c0_i32 = arith.constant 0 : i32
    %c0_i32_0 = arith.constant 0 : i32
    return %arg0, %c0_i32 : i32, i32
  }
  func.func @transform_1(%arg0: i32) -> (i32, i32) {
    %c0_i32 = arith.constant 0 : i32
    %c0_i32_0 = arith.constant 0 : i32
    %c0_i32_1 = arith.constant 0 : i32
    return %c0_i32, %c0_i32_0 : i32, i32
  }
  func.func @transform_2(%arg0: i32) -> (i32, i32) {
    %c0_i32 = arith.constant 0 : i32
    %c0_i32_0 = arith.constant 0 : i32
    %c0_i32_1 = arith.constant 0 : i32
    return %c0_i32, %c0_i32_0 : i32, i32
  }
  func.func @transform_3(%arg0: i32) -> (i32, i32) {
    %c0_i32 = arith.constant 0 : i32
    %c0_i32_0 = arith.constant 0 : i32
    %c0_i32_1 = arith.constant 0 : i32
    return %c0_i32, %c0_i32_0 : i32, i32
  }
  func.func @transform_4(%arg0: i32) -> (i32, i32) {
    %c0_i32 = arith.constant 0 : i32
    %c0_i32_0 = arith.constant 0 : i32
    return %arg0, %c0_i32 : i32, i32
  }
}

</mosaic_0001>

<bundles_post_ra>
// kernel: resnet_forward.4
= control target key start
LH: loop header
LB: loop body
LE: loop exit
PB: predicated region body
PF: predicated region fallthrough
CT: control target
= control target key end

     0   :  { %9 = vsyncpa [#allocation3], 0  ;;  %s1364_s0 = inlined_call_operand.vmem [shape: bf16[512,9], index: 0, kind: input, shape index: {}]   ;;  %s1365_s1 = inlined_call_operand.hbm [shape: bf16[9,128], index: 1, kind: input, shape index: {}]   ;;  %s1366_s2 = inlined_call_operand.hbm [shape: f32[1,128], index: 2, kind: input, shape index: {}]   ;;  %s1367_s3 = inlined_call_operand.hbm [shape: f32[1,128], index: 3, kind: input, shape index: {}]   ;;  %s1368_s4 = inlined_call_operand.vmem [shape: f32[512,128], index: 4, kind: output, shape index: {}]  }
   0x1   :  { %10 = vsyncpa [#allocation5], 0  ;;  %s1102_s15 = smov 0  }
   0x2 LB: > { %s1071_s16 = smov [#allocation4]   ;;  %s807_s18 = sadd.s32 4294967295, %s1069_s15   ;;  %s1069_s15 = sphi %s1102_s15, %s16_s15  }
   0x3   : > { %s162_s17 = sshll.u32 %s1071_s16, 4  ;;  %p809_p0 = scmp.ge.s32.totalorder %s1069_s15, 1  ;;  %s163_s17 = int_to_ptr.vmem [resolvable:$true] %s162_s17 }
   0x4   : > { %p136_p1 = scmp.lt.s32.totalorder %s1069_s15, 3  ;;  %p1112_p2 = scmp.eq.s32.totalorder %s807_s18, 0 }
   0x5   : > { %s1072_s21 = smov [#allocation2]   ;;  %s1073_s24 = smov [#allocation6]  }
   0x6   : > { %s1372_s19 = scalar_select %p1112_p2, 1, 0 }
   0x7   : > { %p1116_p3 = pnand %p809_p0, %p136_p1  ;;  %s148_s22 = sshll.u32 %s1072_s21, 4  ;;  %s1128_s22 = int_to_ptr.vmem [resolvable:$true] %s148_s22 }
   0x8   : > { %s173_s25 = sshll.u32 %s1073_s24, 4  ;;  %s971_s28 = scalar_lea.hbm %s1366_s2, 16  ;;  %s1130_s25 = int_to_ptr.vmem [resolvable:$true] %s173_s25 }
   0x9   : > { %s1373_s20 = scalar_select %p1116_p3, 1, 0 }
   0xa   : > { %p924_p4 = pneg %p1116_p3  ;;  %p972_p6 = scmp.ne.s32.totalorder %s1366_s2, %s971_s28 }
   0xb   : > { %p978_p10 = scmp.lt.u32.totalorder %s971_s28, %s1366_s2 }
   0xc   : > { %p1124_p5 = pnand %p1112_p2, %p924_p4 }
   0xe   : > { %p1140_p7 = pneg %p1124_p5 }
  0x10   : > { %p974_p8 = pnand %p1140_p7, %p972_p6 }
  0x12   : > { %p975_p9 = pneg %p974_p8 }
  0x14   : > { %p980_p11 = pnand %p978_p10, %p975_p9 }
  0x16   : > { %983 = shalt.err (!%p980_p11)
}
  0x17   : > { %s984_s8 = scalar_lea.vmem %s163_s17, 16  ;;  %s991_s9 = scalar_lea.vmem %s163_s17, 32 }
  0x18   : > { %p985_p12 = scmp.ne.s32.totalorder %s163_s17, %s984_s8  ;;  %p992_p1 = scmp.lt.s32.totalorder %s163_s17, %s163_s17 }
  0x19   : > { %p993_p4 = scmp.lt.s32.totalorder %s991_s9, %s984_s8 }
  0x1a   : > { %p987_p13 = pnand %p985_p12, %p1140_p7 }
  0x1b   : > { %p994_p2 = por %p993_p4, %p992_p1 }
  0x1c   : > { %p988_p0 = pneg %p987_p13 }
  0x1e   : > { %p995_p3 = pnand %p994_p2, %p988_p0 }
  0x20   : > { %998 = shalt.err (!%p995_p3)
}
  0x21   : > { %930 = dma.hbm_to_vmem [thread:$0]  (!%p1124_p5), %s1366_s2, 16, %s163_s17, [#allocation5]  }
  0x22   : > { %s999_s14 = scalar_lea.hbm %s1365_s1, 128 }
  0x23   : > { %p1000_p6 = scmp.ne.s32.totalorder %s1365_s1, %s999_s14  ;;  %p1006_p2 = scmp.lt.u32.totalorder %s999_s14, %s1365_s1 }
  0x25   : > { %p1002_p8 = pnand %p1000_p6, %p1140_p7 }
  0x27   : > { %p1003_p9 = pneg %p1002_p8 }
  0x29   : > { %p1008_p3 = pnand %p1006_p2, %p1003_p9 }
  0x2b   : > { %1011 = shalt.err (!%p1008_p3)
}
  0x2c   : > { %s1012_s17 = scalar_lea.vmem %s1128_s22, 128  ;;  %p1020_p13 = scmp.lt.s32.totalorder %s1128_s22, %s1128_s22 }
  0x2d   : > { %p1013_p10 = scmp.ne.s32.totalorder %s1128_s22, %s1012_s17  ;;  %p1021_p0 = scmp.lt.s32.totalorder %s1012_s17, %s1012_s17 }
  0x2f   : > { %p1015_p11 = pnand %p1013_p10, %p1140_p7  ;;  %p1022_p1 = por %p1021_p0, %p1020_p13 }
  0x31   : > { %p1016_p12 = pneg %p1015_p11 }
  0x33   : > { %p1023_p4 = pnand %p1022_p1, %p1016_p12 }
  0x35   : > { %1026 = shalt.err (!%p1023_p4)
}
  0x36   : > { %s1074_s27 = smov 64   ;;  %s1075_s28 = smov 4  }
  0x37   : > { %927 = dma.hbm_to_vmem [thread:$0]  (!%p1124_p5), %s1365_s1, 128, %s1128_s22, [#allocation3], %s1074_s27, %s1074_s27, %s1075_s28  }
  0x38   : > { %s1027_s8 = scalar_lea.hbm %s1367_s3, 16 }
  0x39   : > { %p1028_p6 = scmp.ne.s32.totalorder %s1367_s3, %s1027_s8  ;;  %p1034_p2 = scmp.lt.u32.totalorder %s1027_s8, %s1367_s3 }
  0x3b   : > { %p1030_p8 = pnand %p1028_p6, %p1140_p7 }
  0x3d   : > { %p1031_p9 = pneg %p1030_p8 }
  0x3f   : > { %p1036_p3 = pnand %p1034_p2, %p1031_p9 }
  0x41   : > { %1039 = shalt.err (!%p1036_p3)
}
  0x42   : > { %s1040_s22 = scalar_lea.vmem %s1130_s25, 16  ;;  %s1047_s13 = scalar_lea.vmem %s1130_s25, 32 }
  0x43   : > { %p1041_p10 = scmp.ne.s32.totalorder %s1130_s25, %s1040_s22  ;;  %p1048_p13 = scmp.lt.s32.totalorder %s1130_s25, %s1130_s25 }
  0x44   : > { %p1049_p0 = scmp.lt.s32.totalorder %s1047_s13, %s1040_s22 }
  0x45   : > { %p1043_p11 = pnand %p1041_p10, %p1140_p7 }
  0x46   : > { %p1050_p1 = por %p1049_p0, %p1048_p13 }
  0x47   : > { %p1044_p12 = pneg %p1043_p11 }
  0x49   : > { %p1051_p4 = pnand %p1050_p1, %p1044_p12 }
  0x4b   : > { %1054 = shalt.err (!%p1051_p4)
}
  0x4c   : > { %933 = dma.hbm_to_vmem [thread:$0]  (!%p1124_p5), %s1367_s3, 16, %s1130_s25, [#allocation5]  }
  0x4d   : > { %p1376_p6 = scmp.ne.s32.totalorder %s1373_s20, 0 }
  0x4e   : > { %p1377_p7 = scmp.ne.s32.totalorder (!%p1376_p6), %s1372_s19, 0 }
  0x4f   : > { %195 = sbr.rel (%p1376_p6) target bundleno = 344 (0x158), region = 36 }
  0x56   : > { %1060 = dma.done.wait (%p1377_p7), [#allocation3], 128  }
  0x57   : > { %1062 = vsyncadd (%p1377_p7), [#allocation3], 4294967168 }
  0x58   : > { %1064 = dma.done.wait (%p1377_p7), [#allocation5], 32  }
  0x59   : > { %1066 = vsyncadd (%p1377_p7), [#allocation5], 4294967264  ;;  %vm410_vm0 = vcmask 1043456   ;;  %s818_s23 = sshll.u32 %s807_s18, 5  ;;  %vm411_vm1 = vcmask 1044480   ;;  %v1076_v0 = vmov 65535  }
  0x5a   : > { %p230_p5 = scmp.lt.s32.totalorder %s818_s23, 63  ;;  %v412_v1 = vsel %vm410_vm0, 4294967295, %v1076_v0  ;;  %vm361_vm2 = vcmask 72704   ;;  %v954_v3 = vld [vmem:[#allocation2] sm:$0x1f]  }
  0x5b   : > { %v413_v2 = vsel %vm411_vm1, %v412_v1, 0  ;;  %v1255_v21 = vld [vmem:[#allocation4] ss:$0 sm:$0xff]  ;;  %v1257_v23 = vld [vmem:[#allocation6] ss:$0 sm:$0xff] }
  0x5c   : > { %s1379_s23 = smov (!%p230_p5, %s818_s23), 63  ;;  %v415_v5 = vand.u32 %v954_v3, %v413_v2 }
  0x5d   : > { %s819_s20 = sshll.u32 %s1379_s23, 2  ;;  %s821_s18 = sshll.u32 %s1379_s23, 3 }
  0x5e   : > { %s1221_s21 = scalar_lea.vmem %s1364_s0, %s819_s20  ;;  %876 = vmatprep.subr.bf16.mxu0 %v415_v5  ;;  %910 = vmatprep.subr.bf16.mxu1 %v415_v5  ;;  %s1271_s26 = scalar_lea.vmem %s1368_s4, %s821_s18 }
  0x5f   : > { %v955_v4 = vld [vmem:[%s1221_s21] sm:$0xff]   ;;  %v957_v7 = vld [vmem:[%s1221_s21 + $0x8] sm:$0xff]   ;;  %877 = vmatpush3.bf16.msra.mxu0 %v415_v5  ;;  %911 = vmatpush3.bf16.msra.mxu1 %v415_v5  ;;  %v959_v9 = vld [vmem:[%s1221_s21 + $0x10] sm:$0xff]  }
  0x60   : > { %v956_v6 = vld [vmem:[%s1221_s21 + $0x40] sm:$0xff]   ;;  %878 = vmatprep.mubr.msk.bf16.mxu0 %vm361_vm2, %v955_v4  ;;  %v958_v8 = vld [vmem:[%s1221_s21 + $0x48] sm:$0xff]   ;;  %v960_v10 = vld [vmem:[%s1221_s21 + $0x50] sm:$0xff]  }
  0x61   : > { %894 = vmatprep.mubr.msk.bf16.mxu1 %vm361_vm2, %v956_v6  ;;  %v961_v11 = vld [vmem:[%s1221_s21 + $0x18] sm:$0xff]   ;;  %v963_v13 = vld [vmem:[%s1221_s21 + $0x20] sm:$0xff]   ;;  %v965_v15 = vld [vmem:[%s1221_s21 + $0x28] sm:$0xff]  }
  0x62   : > { %879 = vmatmul.mubr.msk.bf16.vlgmr.msra.gmra.mrb[0].mxu0 %vm361_vm2, %v957_v7  ;;  %895 = vmatmul.mubr.msk.bf16.vlgmr.msra.gmra.mrb[0].mxu1 %vm361_vm2, %v958_v8  ;;  %v962_v12 = vld [vmem:[%s1221_s21 + $0x58] sm:$0xff]   ;;  %v964_v14 = vld [vmem:[%s1221_s21 + $0x60] sm:$0xff]   ;;  %v966_v16 = vld [vmem:[%s1221_s21 + $0x68] sm:$0xff]  }
  0x63   : > { %882 = vmatprep.mubr.msk.bf16.mxu0 %vm361_vm2, %v959_v9  ;;  %898 = vmatprep.mubr.msk.bf16.mxu1 %vm361_vm2, %v960_v10  ;;  %v967_v17 = vld [vmem:[%s1221_s21 + $0x30] sm:$0xff]   ;;  %v969_v19 = vld [vmem:[%s1221_s21 + $0x38] sm:$0xff]  }
  0x64   : > { %v968_v18 = vld [vmem:[%s1221_s21 + $0x70] sm:$0xff]   ;;  %v970_v20 = vld [vmem:[%s1221_s21 + $0x78] sm:$0xff]  }
  0x6a   : > { %883 = vmatmul.mubr.msk.bf16.gmra.mrb[4].mxu0 %vm361_vm2, %v961_v11  ;;  %899 = vmatmul.mubr.msk.bf16.gmra.mrb[4].mxu1 %vm361_vm2, %v962_v12 }
  0x6b   : > { %886 = vmatprep.mubr.msk.bf16.mxu0 %vm361_vm2, %v963_v13  ;;  %902 = vmatprep.mubr.msk.bf16.mxu1 %vm361_vm2, %v964_v14 }
  0x72   : > { %887 = vmatmul.mubr.msk.bf16.gmra.mrb[8].mxu0 %vm361_vm2, %v965_v15  ;;  %903 = vmatmul.mubr.msk.bf16.gmra.mrb[8].mxu1 %vm361_vm2, %v966_v16 }
  0x73   : > { %890 = vmatprep.mubr.msk.bf16.mxu0 %vm361_vm2, %v967_v17  ;;  %906 = vmatprep.mubr.msk.bf16.mxu1 %vm361_vm2, %v968_v18 }
  0x7a   : > { %891 = vmatmul.mubr.msk.bf16.gmra.mrb[12].mxu0 %vm361_vm2, %v969_v19  ;;  %907 = vmatmul.mubr.msk.bf16.gmra.mrb[12].mxu1 %vm361_vm2, %v970_v20 }
 0x135   : > { %v880_v22 = vpop.f32.mrb[0].mxu0  ;;  %v896_v24 = vpop.f32.mrb[0].mxu1 }
 0x136   : > { %v587_v25 = vmul.f32 %v880_v22, %v1255_v21  ;;  %v603_v26 = vmul.f32 %v896_v24, %v1255_v21  ;;  %v451_v27 = vpop.f32.mrb[1].mxu0  ;;  %v515_v28 = vpop.f32.mrb[1].mxu1 }
 0x137   : > { %v585_v29 = vmul.f32 %v1255_v21, %v451_v27  ;;  %v601_v30 = vmul.f32 %v1255_v21, %v515_v28  ;;  %v881_v31 = vpop.f32.mrb[2].mxu0  ;;  %v897_v32 = vpop.f32.mrb[2].mxu1 }
 0x138   : > { %v626_v33 = vadd.f32 %v1257_v23, %v587_v25  ;;  %v642_v34 = vadd.f32 %v1257_v23, %v603_v26  ;;  %v588_v35 = vmul.f32 %v881_v31, %v1255_v21  ;;  %v604_v36 = vmul.f32 %v897_v32, %v1255_v21  ;;  %v454_v37 = vpop.f32.mrb[3].mxu0  ;;  %v518_v38 = vpop.f32.mrb[3].mxu1 }
 0x139   : > { %v624_v39 = vadd.f32 %v1257_v23, %v585_v29  ;;  %v640_v40 = vadd.f32 %v1257_v23, %v601_v30  ;;  %v586_v41 = vmul.f32 %v1255_v21, %v454_v37  ;;  %v602_v42 = vmul.f32 %v1255_v21, %v518_v38 }
 0x13a   : > { %v658_v43 = vmax.f32 %v626_v33, 0.0  ;;  %v674_v44 = vmax.f32 %v642_v34, 0.0  ;;  %v627_v45 = vadd.f32 %v1257_v23, %v588_v35  ;;  %v643_v46 = vadd.f32 %v1257_v23, %v604_v36 }
 0x13b   : > { %v656_v47 = vmax.f32 %v624_v39, 0.0  ;;  %v672_v48 = vmax.f32 %v640_v40, 0.0  ;;  %v625_v49 = vadd.f32 %v1257_v23, %v586_v41  ;;  %v641_v50 = vadd.f32 %v1257_v23, %v602_v42 }
 0x13c   : > { %690 = vst [vmem:[%s1271_s26 + $0x10] sm:$0xff] %v658_v43  ;;  %706 = vst [vmem:[%s1271_s26 + $0x90] sm:$0xff] %v674_v44  ;;  %v659_v51 = vmax.f32 %v627_v45, 0.0  ;;  %v675_v52 = vmax.f32 %v643_v46, 0.0 }
 0x13d   : > { %688 = vst [vmem:[%s1271_s26] sm:$0xff] %v656_v47  ;;  %704 = vst [vmem:[%s1271_s26 + $0x80] sm:$0xff] %v672_v48  ;;  %v657_v53 = vmax.f32 %v625_v49, 0.0  ;;  %v673_v54 = vmax.f32 %v641_v50, 0.0  ;;  %v884_v55 = vpop.f32.mrb[4].mxu0  ;;  %v900_v56 = vpop.f32.mrb[4].mxu1 }
 0x13e   : > { %691 = vst [vmem:[%s1271_s26 + $0x18] sm:$0xff] %v659_v51  ;;  %707 = vst [vmem:[%s1271_s26 + $0x98] sm:$0xff] %v675_v52  ;;  %v591_v57 = vmul.f32 %v884_v55, %v1255_v21  ;;  %v607_v58 = vmul.f32 %v900_v56, %v1255_v21  ;;  %v467_v59 = vpop.f32.mrb[5].mxu0  ;;  %v531_v60 = vpop.f32.mrb[5].mxu1 }
 0x13f   : > { %689 = vst [vmem:[%s1271_s26 + $0x8] sm:$0xff] %v657_v53  ;;  %705 = vst [vmem:[%s1271_s26 + $0x88] sm:$0xff] %v673_v54  ;;  %v589_v61 = vmul.f32 %v1255_v21, %v467_v59  ;;  %v605_v62 = vmul.f32 %v1255_v21, %v531_v60  ;;  %v885_v63 = vpop.f32.mrb[6].mxu0  ;;  %v901_v0 = vpop.f32.mrb[6].mxu1 }
 0x140   : > { %v630_v1 = vadd.f32 %v1257_v23, %v591_v57  ;;  %v646_v2 = vadd.f32 %v1257_v23, %v607_v58  ;;  %v592_v3 = vmul.f32 %v885_v63, %v1255_v21  ;;  %v608_v4 = vmul.f32 %v901_v0, %v1255_v21  ;;  %v470_v5 = vpop.f32.mrb[7].mxu0  ;;  %v534_v6 = vpop.f32.mrb[7].mxu1 }
 0x141   : > { %v628_v7 = vadd.f32 %v1257_v23, %v589_v61  ;;  %v644_v8 = vadd.f32 %v1257_v23, %v605_v62  ;;  %v590_v9 = vmul.f32 %v1255_v21, %v470_v5  ;;  %v606_v10 = vmul.f32 %v1255_v21, %v534_v6 }
 0x142   : > { %v662_v11 = vmax.f32 %v630_v1, 0.0  ;;  %v678_v12 = vmax.f32 %v646_v2, 0.0  ;;  %v631_v13 = vadd.f32 %v1257_v23, %v592_v3  ;;  %v647_v14 = vadd.f32 %v1257_v23, %v608_v4 }
 0x143   : > { %v660_v15 = vmax.f32 %v628_v7, 0.0  ;;  %v676_v16 = vmax.f32 %v644_v8, 0.0  ;;  %v629_v17 = vadd.f32 %v1257_v23, %v590_v9  ;;  %v645_v18 = vadd.f32 %v1257_v23, %v606_v10 }
 0x144   : > { %694 = vst [vmem:[%s1271_s26 + $0x30] sm:$0xff] %v662_v11  ;;  %710 = vst [vmem:[%s1271_s26 + $0xb0] sm:$0xff] %v678_v12  ;;  %v663_v19 = vmax.f32 %v631_v13, 0.0  ;;  %v679_v20 = vmax.f32 %v647_v14, 0.0 }
 0x145   : > { %692 = vst [vmem:[%s1271_s26 + $0x20] sm:$0xff] %v660_v15  ;;  %708 = vst [vmem:[%s1271_s26 + $0xa0] sm:$0xff] %v676_v16  ;;  %v661_v22 = vmax.f32 %v629_v17, 0.0  ;;  %v677_v24 = vmax.f32 %v645_v18, 0.0  ;;  %v888_v25 = vpop.f32.mrb[8].mxu0  ;;  %v904_v26 = vpop.f32.mrb[8].mxu1 }
 0x146   : > { %695 = vst [vmem:[%s1271_s26 + $0x38] sm:$0xff] %v663_v19  ;;  %711 = vst [vmem:[%s1271_s26 + $0xb8] sm:$0xff] %v679_v20  ;;  %v595_v27 = vmul.f32 %v888_v25, %v1255_v21  ;;  %v611_v28 = vmul.f32 %v904_v26, %v1255_v21  ;;  %v483_v29 = vpop.f32.mrb[9].mxu0  ;;  %v547_v30 = vpop.f32.mrb[9].mxu1 }
 0x147   : > { %693 = vst [vmem:[%s1271_s26 + $0x28] sm:$0xff] %v661_v22  ;;  %709 = vst [vmem:[%s1271_s26 + $0xa8] sm:$0xff] %v677_v24  ;;  %v593_v31 = vmul.f32 %v1255_v21, %v483_v29  ;;  %v609_v32 = vmul.f32 %v1255_v21, %v547_v30  ;;  %v889_v33 = vpop.f32.mrb[10].mxu0  ;;  %v905_v34 = vpop.f32.mrb[10].mxu1 }
 0x148   : > { %v634_v35 = vadd.f32 %v1257_v23, %v595_v27  ;;  %v650_v36 = vadd.f32 %v1257_v23, %v611_v28  ;;  %v596_v37 = vmul.f32 %v889_v33, %v1255_v21  ;;  %v612_v38 = vmul.f32 %v905_v34, %v1255_v21  ;;  %v486_v39 = vpop.f32.mrb[11].mxu0  ;;  %v550_v40 = vpop.f32.mrb[11].mxu1 }
 0x149   : > { %v632_v41 = vadd.f32 %v1257_v23, %v593_v31  ;;  %v648_v42 = vadd.f32 %v1257_v23, %v609_v32  ;;  %v594_v43 = vmul.f32 %v1255_v21, %v486_v39  ;;  %v610_v44 = vmul.f32 %v1255_v21, %v550_v40 }
 0x14a   : > { %v666_v45 = vmax.f32 %v634_v35, 0.0  ;;  %v682_v46 = vmax.f32 %v650_v36, 0.0  ;;  %v635_v47 = vadd.f32 %v1257_v23, %v596_v37  ;;  %v651_v48 = vadd.f32 %v1257_v23, %v612_v38 }
 0x14b   : > { %v664_v49 = vmax.f32 %v632_v41, 0.0  ;;  %v680_v50 = vmax.f32 %v648_v42, 0.0  ;;  %v633_v51 = vadd.f32 %v1257_v23, %v594_v43  ;;  %v649_v52 = vadd.f32 %v1257_v23, %v610_v44 }
 0x14c   : > { %698 = vst [vmem:[%s1271_s26 + $0x50] sm:$0xff] %v666_v45  ;;  %714 = vst [vmem:[%s1271_s26 + $0xd0] sm:$0xff] %v682_v46  ;;  %v667_v53 = vmax.f32 %v635_v47, 0.0  ;;  %v683_v54 = vmax.f32 %v651_v48, 0.0 }
 0x14d   : > { %696 = vst [vmem:[%s1271_s26 + $0x40] sm:$0xff] %v664_v49  ;;  %712 = vst [vmem:[%s1271_s26 + $0xc0] sm:$0xff] %v680_v50  ;;  %v665_v55 = vmax.f32 %v633_v51, 0.0  ;;  %v681_v56 = vmax.f32 %v649_v52, 0.0  ;;  %v892_v57 = vpop.f32.mrb[12].mxu0  ;;  %v908_v58 = vpop.f32.mrb[12].mxu1 }
 0x14e   : > { %699 = vst [vmem:[%s1271_s26 + $0x58] sm:$0xff] %v667_v53  ;;  %715 = vst [vmem:[%s1271_s26 + $0xd8] sm:$0xff] %v683_v54  ;;  %v599_v59 = vmul.f32 %v892_v57, %v1255_v21  ;;  %v615_v60 = vmul.f32 %v908_v58, %v1255_v21  ;;  %v499_v61 = vpop.f32.mrb[13].mxu0  ;;  %v563_v62 = vpop.f32.mrb[13].mxu1 }
 0x14f   : > { %697 = vst [vmem:[%s1271_s26 + $0x48] sm:$0xff] %v665_v55  ;;  %713 = vst [vmem:[%s1271_s26 + $0xc8] sm:$0xff] %v681_v56  ;;  %v597_v63 = vmul.f32 %v1255_v21, %v499_v61  ;;  %v613_v0 = vmul.f32 %v1255_v21, %v563_v62  ;;  %v893_v1 = vpop.f32.mrb[14].mxu0  ;;  %v909_v2 = vpop.f32.mrb[14].mxu1 }
 0x150   : > { %v638_v3 = vadd.f32 %v1257_v23, %v599_v59  ;;  %v654_v4 = vadd.f32 %v1257_v23, %v615_v60  ;;  %v600_v5 = vmul.f32 %v893_v1, %v1255_v21  ;;  %v616_v6 = vmul.f32 %v909_v2, %v1255_v21  ;;  %v502_v7 = vpop.f32.mrb[15].mxu0  ;;  %v566_v8 = vpop.f32.mrb[15].mxu1 }
 0x151   : > { %v636_v9 = vadd.f32 %v1257_v23, %v597_v63  ;;  %v652_v10 = vadd.f32 %v1257_v23, %v613_v0  ;;  %v598_v11 = vmul.f32 %v1255_v21, %v502_v7  ;;  %v614_v12 = vmul.f32 %v1255_v21, %v566_v8 }
 0x152   : > { %v670_v13 = vmax.f32 %v638_v3, 0.0  ;;  %v686_v14 = vmax.f32 %v654_v4, 0.0  ;;  %v639_v15 = vadd.f32 %v1257_v23, %v600_v5  ;;  %v655_v16 = vadd.f32 %v1257_v23, %v616_v6 }
 0x153   : > { %v668_v17 = vmax.f32 %v636_v9, 0.0  ;;  %v684_v18 = vmax.f32 %v652_v10, 0.0  ;;  %v637_v19 = vadd.f32 %v1257_v23, %v598_v11  ;;  %v653_v20 = vadd.f32 %v1257_v23, %v614_v12 }
 0x154   : > { %702 = vst [vmem:[%s1271_s26 + $0x70] sm:$0xff] %v670_v13  ;;  %718 = vst [vmem:[%s1271_s26 + $0xf0] sm:$0xff] %v686_v14  ;;  %v671_v22 = vmax.f32 %v639_v15, 0.0  ;;  %v687_v21 = vmax.f32 %v655_v16, 0.0 }
 0x155   : > { %700 = vst [vmem:[%s1271_s26 + $0x60] sm:$0xff] %v668_v17  ;;  %716 = vst [vmem:[%s1271_s26 + $0xe0] sm:$0xff] %v684_v18  ;;  %v669_v24 = vmax.f32 %v637_v19, 0.0  ;;  %v685_v25 = vmax.f32 %v653_v20, 0.0 }
 0x156   : > { %703 = vst [vmem:[%s1271_s26 + $0x78] sm:$0xff] %v671_v22  ;;  %719 = vst [vmem:[%s1271_s26 + $0xf8] sm:$0xff] %v687_v21 }
 0x157   : > { %701 = vst [vmem:[%s1271_s26 + $0x68] sm:$0xff] %v669_v24  ;;  %717 = vst [vmem:[%s1271_s26 + $0xe8] sm:$0xff] %v685_v25 }
 0x158 PF: > { %s16_s15 = sadd.s32 1, %s1069_s15  }
 0x159   : > { %p13_p8 = scmp.ge.s32.totalorder %s16_s15, 4  }
 0x15b   :  { %15 = sbr.rel (!%p13_p8) target bundleno = 2 (0x2), region = 79 }
 0x162   :  { %742 = vsyncpa [#allocation3], 1 }
 0x163   :  { %744 = vsyncpa [#allocation3 + $0x1], 1 }
 0x164   :  { %745 = vsyncpa [#allocation5], 1 }

// kernel: resnet_forward.5
= control target key start
LH: loop header
LB: loop body
LE: loop exit
PB: predicated region body
PF: predicated region fallthrough
CT: control target
= control target key end

     0   :  { %s2185_s1 = inlined_call_operand.vmem [shape: bf16[1024,128], index: 1, kind: input, shape index: {}]   ;;  %s2186_s0 = inlined_call_operand.vmem [shape: bf16[104,1024], index: 0, kind: input, shape index: {}]   ;;  %s2187_s2 = inlined_call_operand.vmem [shape: f32[1,128], index: 2, kind: input, shape index: {}]   ;;  %s2188_s3 = inlined_call_operand.vmem [shape: f32[1,128], index: 3, kind: input, shape index: {}]   ;;  %s2189_s4 = inlined_call_operand.vmem [shape: f32[104,128], index: 4, kind: output, shape index: {}]  }
   0x1   :  { %v1626_v0 = vld [vmem:[%s2185_s1 + $0x40] sm:$0xff]   ;;  %v1630_v4 = vld [vmem:[%s2185_s1 + $0x48] sm:$0xff]   ;;  %v1634_v8 = vld [vmem:[%s2185_s1 + $0x50] sm:$0xff]  }
   0x2   :  { %v1627_v1 = vld [vmem:[%s2185_s1 + $0xc0] sm:$0xff]   ;;  %1394 = vmatprep.subr.bf16.mxu0 %v1626_v0  ;;  %v1631_v5 = vld [vmem:[%s2185_s1 + $0xc8] sm:$0xff]   ;;  %v1635_v9 = vld [vmem:[%s2185_s1 + $0xd0] sm:$0xff]  }
   0x3   :  { %v1628_v2 = vld [vmem:[%s2185_s1] sm:$0xff]   ;;  %1452 = vmatprep.subr.bf16.mxu1 %v1627_v1  ;;  %v1632_v6 = vld [vmem:[%s2185_s1 + $0x8] sm:$0xff]   ;;  %v1636_v10 = vld [vmem:[%s2185_s1 + $0x10] sm:$0xff]  }
   0x4   :  { %v1629_v3 = vld [vmem:[%s2185_s1 + $0x80] sm:$0xff]   ;;  %1395 = vmatpush3.bf16.msra.mxu0 %v1628_v2  ;;  %v1633_v7 = vld [vmem:[%s2185_s1 + $0x88] sm:$0xff]   ;;  %v1637_v11 = vld [vmem:[%s2185_s1 + $0x90] sm:$0xff]  }
   0x5   :  { %1453 = vmatpush3.bf16.msra.mxu1 %v1629_v3  ;;  %1396 = vmatprep.subr.bf16.mxu0 %v1630_v4  ;;  %v1638_v12 = vld [vmem:[%s2185_s1 + $0x58] sm:$0xff]   ;;  %v1642_v16 = vld [vmem:[%s2185_s1 + $0x60] sm:$0xff]   ;;  %v1646_v20 = vld [vmem:[%s2185_s1 + $0x68] sm:$0xff]  }
   0x6   :  { %1454 = vmatprep.subr.bf16.mxu1 %v1631_v5  ;;  %v1639_v13 = vld [vmem:[%s2185_s1 + $0xd8] sm:$0xff]   ;;  %v1643_v17 = vld [vmem:[%s2185_s1 + $0xe0] sm:$0xff]   ;;  %v1647_v21 = vld [vmem:[%s2185_s1 + $0xe8] sm:$0xff]  }
   0x7   :  { %v1640_v14 = vld [vmem:[%s2185_s1 + $0x18] sm:$0xff]   ;;  %v1644_v18 = vld [vmem:[%s2185_s1 + $0x20] sm:$0xff]   ;;  %v1648_v22 = vld [vmem:[%s2185_s1 + $0x28] sm:$0xff]  }
   0x8   :  { %1397 = vmatpush3.bf16.msra.mxu0 %v1632_v6  ;;  %v1641_v15 = vld [vmem:[%s2185_s1 + $0x98] sm:$0xff]   ;;  %v1645_v19 = vld [vmem:[%s2185_s1 + $0xa0] sm:$0xff]   ;;  %v1649_v23 = vld [vmem:[%s2185_s1 + $0xa8] sm:$0xff]  }
   0x9   :  { %1455 = vmatpush3.bf16.msra.mxu1 %v1633_v7  ;;  %1398 = vmatprep.subr.bf16.mxu0 %v1634_v8  ;;  %v1650_v24 = vld [vmem:[%s2185_s1 + $0x70] sm:$0xff]   ;;  %v1654_v28 = vld [vmem:[%s2185_s1 + $0x78] sm:$0xff]   ;;  %v18_v32 = vld [vmem:[%s2186_s0] sm:$0xff] }
   0xa   :  { %1456 = vmatprep.subr.bf16.mxu1 %v1635_v9  ;;  %v1651_v25 = vld [vmem:[%s2185_s1 + $0xf0] sm:$0xff]   ;;  %v1655_v29 = vld [vmem:[%s2185_s1 + $0xf8] sm:$0xff]   ;;  %v22_v33 = vld [vmem:[%s2186_s0 + $0x20] sm:$0xff] }
   0xb   :  { %v1652_v26 = vld [vmem:[%s2185_s1 + $0x30] sm:$0xff]   ;;  %v1656_v30 = vld [vmem:[%s2185_s1 + $0x38] sm:$0xff]   ;;  %v19_v34 = vld [vmem:[%s2186_s0 + $0x8] sm:$0xff]  ;;  %v1272_v35 = vcombine.low %v18_v32, %v22_v33  ;;  %v1273_v36 = vcombine.high %v18_v32, %v22_v33 }
   0xc   :  { %1399 = vmatpush3.bf16.msra.mxu0 %v1636_v10  ;;  %v1653_v27 = vld [vmem:[%s2185_s1 + $0xb0] sm:$0xff]   ;;  %v1657_v31 = vld [vmem:[%s2185_s1 + $0xb8] sm:$0xff]   ;;  %v23_v37 = vld [vmem:[%s2186_s0 + $0x28] sm:$0xff] }
   0xd   :  { %1457 = vmatpush3.bf16.msra.mxu1 %v1637_v11  ;;  %1400 = vmatprep.subr.bf16.mxu0 %v1638_v12  ;;  %v1274_v38 = vcombine.low %v19_v34, %v23_v37  ;;  %v1275_v39 = vcombine.high %v19_v34, %v23_v37  ;;  %v1658_v40 = vld [vmem:[%s2185_s1 + $0x140] sm:$0xff]   ;;  %v27_v47 = vld [vmem:[%s2186_s0 + $0x48] sm:$0xff]  ;;  %v1666_v56 = vld [vmem:[%s2185_s1 + $0x150] sm:$0xff]  }
   0xe   :  { %1458 = vmatprep.subr.bf16.mxu1 %v1639_v13  ;;  %882 = vmatprep.mubr.bf16.mxu0 %v1273_v36  ;;  %v1659_v41 = vld [vmem:[%s2185_s1 + $0x100] sm:$0xff]   ;;  %v31_v48 = vld [vmem:[%s2186_s0 + $0x68] sm:$0xff]  ;;  %v1667_v63 = vld [vmem:[%s2185_s1 + $0x110] sm:$0xff]  }
   0xf   :  { %970 = vmatprep.mubr.bf16.mxu1 %v1275_v39  ;;  %v1660_v42 = vld [vmem:[%s2185_s1 + $0x1c0] sm:$0xff]   ;;  %v1283_v49 = vcombine.high %v27_v47, %v31_v48  ;;  %v1662_v50 = vld [vmem:[%s2185_s1 + $0x148] sm:$0xff]   ;;  %v1282_v53 = vcombine.low %v27_v47, %v31_v48  ;;  %v1668_v0 = vld [vmem:[%s2185_s1 + $0x1d0] sm:$0xff]  }
  0x10   :  { %1401 = vmatpush3.bf16.msra.mxu0 %v1640_v14  ;;  %v1661_v43 = vld [vmem:[%s2185_s1 + $0x180] sm:$0xff]   ;;  %v1663_v52 = vld [vmem:[%s2185_s1 + $0x108] sm:$0xff]   ;;  %v1669_v1 = vld [vmem:[%s2185_s1 + $0x190] sm:$0xff]  }
  0x11   :  { %1459 = vmatpush3.bf16.msra.mxu1 %v1641_v15  ;;  %1402 = vmatprep.subr.bf16.mxu0 %v1642_v16  ;;  %v26_v44 = vld [vmem:[%s2186_s0 + $0x40] sm:$0xff]  ;;  %v1664_v54 = vld [vmem:[%s2185_s1 + $0x1c8] sm:$0xff]   ;;  %v1670_v3 = vld [vmem:[%s2185_s1 + $0x158] sm:$0xff]  }
  0x12   :  { %1460 = vmatprep.subr.bf16.mxu1 %v1643_v17  ;;  %v30_v45 = vld [vmem:[%s2186_s0 + $0x60] sm:$0xff]  ;;  %v1665_v55 = vld [vmem:[%s2185_s1 + $0x188] sm:$0xff]   ;;  %v1671_v5 = vld [vmem:[%s2185_s1 + $0x118] sm:$0xff]  }
  0x13   :  { %v1281_v46 = vcombine.high %v26_v44, %v30_v45  ;;  %v1280_v51 = vcombine.low %v26_v44, %v30_v45  ;;  %v34_v57 = vld [vmem:[%s2186_s0 + $0x80] sm:$0xff]  ;;  %v35_v59 = vld [vmem:[%s2186_s0 + $0x88] sm:$0xff]  ;;  %v1672_v12 = vld [vmem:[%s2185_s1 + $0x1d8] sm:$0xff]  }
  0x14   :  { %1403 = vmatpush3.bf16.msra.mxu0 %v1644_v18  ;;  %v38_v58 = vld [vmem:[%s2186_s0 + $0xa0] sm:$0xff]  ;;  %v39_v60 = vld [vmem:[%s2186_s0 + $0xa8] sm:$0xff]  ;;  %v1673_v13 = vld [vmem:[%s2185_s1 + $0x198] sm:$0xff]  }
  0x15   :  { %1461 = vmatpush3.bf16.msra.mxu1 %v1645_v19  ;;  %1404 = vmatprep.subr.bf16.mxu0 %v1646_v20  ;;  %v1289_v61 = vcombine.high %v34_v57, %v38_v58  ;;  %v1291_v62 = vcombine.high %v35_v59, %v39_v60  ;;  %v1288_v2 = vcombine.low %v34_v57, %v38_v58  ;;  %v42_v6 = vld [vmem:[%s2186_s0 + $0xc0] sm:$0xff]  ;;  %v43_v8 = vld [vmem:[%s2186_s0 + $0xc8] sm:$0xff]  ;;  %v1690_v44 = vld [vmem:[%s2185_s1 + $0x178] sm:$0xff]  }
  0x16   :  { %1462 = vmatprep.subr.bf16.mxu1 %v1647_v21  ;;  %v1290_v4 = vcombine.low %v35_v59, %v39_v60  ;;  %v46_v7 = vld [vmem:[%s2186_s0 + $0xe0] sm:$0xff]  ;;  %v47_v10 = vld [vmem:[%s2186_s0 + $0xe8] sm:$0xff]  ;;  %v1691_v45 = vld [vmem:[%s2185_s1 + $0x138] sm:$0xff]  }
  0x17   :  { %v1297_v9 = vcombine.high %v42_v6, %v46_v7  ;;  %v1299_v11 = vcombine.high %v43_v8, %v47_v10  ;;  %v1674_v14 = vld [vmem:[%s2185_s1 + $0x160] sm:$0xff]   ;;  %v1296_v16 = vcombine.low %v42_v6, %v46_v7  ;;  %v1298_v20 = vcombine.low %v43_v8, %v47_v10  ;;  %v59_v32 = vld [vmem:[%s2186_s0 + $0x148] sm:$0xff]  ;;  %v1693_v48 = vld [vmem:[%s2185_s1 + $0x1b8] sm:$0xff]  }
  0x18   :  { %1405 = vmatpush3.bf16.msra.mxu0 %v1648_v22  ;;  %v1675_v15 = vld [vmem:[%s2185_s1 + $0x120] sm:$0xff]   ;;  %v51_v22 = vld [vmem:[%s2186_s0 + $0x108] sm:$0xff]  ;;  %v28_v60 = vld [vmem:[%s2186_s0 + $0x50] sm:$0xff] }
  0x19   :  { %1463 = vmatpush3.bf16.msra.mxu1 %v1649_v23  ;;  %1406 = vmatprep.subr.bf16.mxu0 %v1650_v24  ;;  %v1676_v17 = vld [vmem:[%s2185_s1 + $0x1e0] sm:$0xff]   ;;  %v55_v23 = vld [vmem:[%s2186_s0 + $0x128] sm:$0xff]  ;;  %v37_v6 = vld [vmem:[%s2186_s0 + $0x98] sm:$0xff] }
  0x1a   :  { %1464 = vmatprep.subr.bf16.mxu1 %v1651_v25  ;;  %v50_v18 = vld [vmem:[%s2186_s0 + $0x100] sm:$0xff]  ;;  %v1307_v24 = vcombine.high %v51_v22, %v55_v23  ;;  %v63_v33 = vld [vmem:[%s2186_s0 + $0x168] sm:$0xff]  ;;  %v1306_v36 = vcombine.low %v51_v22, %v55_v23  ;;  %v41_v7 = vld [vmem:[%s2186_s0 + $0xb8] sm:$0xff] }
  0x1b   :  { %v54_v19 = vld [vmem:[%s2186_s0 + $0x120] sm:$0xff]  ;;  %v1315_v39 = vcombine.high %v59_v32, %v63_v33  ;;  %v53_v22 = vld [vmem:[%s2186_s0 + $0x118] sm:$0xff] }
  0x1c   :  { %1407 = vmatpush3.bf16.msra.mxu0 %v1652_v26  ;;  %v1305_v21 = vcombine.high %v50_v18, %v54_v19  ;;  %v1677_v25 = vld [vmem:[%s2185_s1 + $0x1a0] sm:$0xff]   ;;  %v1678_v26 = vld [vmem:[%s2185_s1 + $0x168] sm:$0xff]   ;;  %v1304_v34 = vcombine.low %v50_v18, %v54_v19  ;;  %v57_v23 = vld [vmem:[%s2186_s0 + $0x138] sm:$0xff] }
  0x1d   :  { %1465 = vmatpush3.bf16.msra.mxu1 %v1653_v27  ;;  %1408 = vmatprep.subr.bf16.mxu0 %v1654_v28  ;;  %v1679_v27 = vld [vmem:[%s2185_s1 + $0x128] sm:$0xff]  }
  0x1e   :  { %1466 = vmatprep.subr.bf16.mxu1 %v1655_v29  ;;  %v1680_v28 = vld [vmem:[%s2185_s1 + $0x1e8] sm:$0xff]  }
  0x1f   :  { %v1681_v29 = vld [vmem:[%s2185_s1 + $0x1a8] sm:$0xff]  }
  0x20   :  { %1409 = vmatpush3.bf16.msra.mxu0 %v1656_v30  ;;  %v58_v30 = vld [vmem:[%s2186_s0 + $0x140] sm:$0xff] }
  0x21   :  { %1467 = vmatpush3.bf16.msra.mxu1 %v1657_v31  ;;  %1510 = vmatprep.subr.bf16.mxu0 %v1658_v40  ;;  %v62_v31 = vld [vmem:[%s2186_s0 + $0x160] sm:$0xff]  ;;  %v1684_v40 = vld [vmem:[%s2185_s1 + $0x1f0] sm:$0xff]  }
  0x22   :  { %1568 = vmatprep.subr.bf16.mxu1 %v1660_v42  ;;  %v1313_v37 = vcombine.high %v58_v30, %v62_v31  ;;  %v66_v42 = vld [vmem:[%s2186_s0 + $0x180] sm:$0xff]  ;;  %v1312_v47 = vcombine.low %v58_v30, %v62_v31  ;;  %v61_v30 = vld [vmem:[%s2186_s0 + $0x158] sm:$0xff] }
  0x23   :  { %883 = vmatmul.mubr.bf16.vlgmr.msra.gmra.mrb[0].mxu0 %v1272_v35  ;;  %v1682_v35 = vld [vmem:[%s2185_s1 + $0x170] sm:$0xff]   ;;  %v65_v31 = vld [vmem:[%s2186_s0 + $0x178] sm:$0xff] }
  0x24   :  { %971 = vmatmul.mubr.bf16.vlgmr.msra.gmra.mrb[0].mxu1 %v1274_v38  ;;  %1511 = vmatpush3.bf16.msra.mxu0 %v1659_v41  ;;  %v1683_v38 = vld [vmem:[%s2185_s1 + $0x130] sm:$0xff]  }
  0x25   :  { %1569 = vmatpush3.bf16.msra.mxu1 %v1661_v43  ;;  %890 = vmatprep.mubr.bf16.mxu0 %v1281_v46  ;;  %v1685_v41 = vld [vmem:[%s2185_s1 + $0x1b0] sm:$0xff]   ;;  %v67_v43 = vld [vmem:[%s2186_s0 + $0x188] sm:$0xff]  ;;  %v1692_v46 = vld [vmem:[%s2185_s1 + $0x1f8] sm:$0xff]  }
  0x26   :  { %978 = vmatprep.mubr.bf16.mxu1 %v1283_v49  ;;  %1512 = vmatprep.subr.bf16.mxu0 %v1662_v50  ;;  %v1314_v49 = vcombine.low %v59_v32, %v63_v33  ;;  %v1321_v50 = vcombine.high %v66_v42, %v66_v42  ;;  %v1322_v57 = vcombine.low %v67_v43, %v67_v43 }
  0x27   :  { %1570 = vmatprep.subr.bf16.mxu1 %v1664_v54  ;;  %v21_v54 = vld [vmem:[%s2186_s0 + $0x18] sm:$0xff]  ;;  %v1310_v33 = vcombine.low %v53_v22, %v57_v23 }
  0x28   :  { %1513 = vmatpush3.bf16.msra.mxu0 %v1663_v52  ;;  %v20_v52 = vld [vmem:[%s2186_s0 + $0x10] sm:$0xff] }
  0x29   :  { %1571 = vmatpush3.bf16.msra.mxu1 %v1665_v55  ;;  %1514 = vmatprep.subr.bf16.mxu0 %v1666_v56  ;;  %v25_v55 = vld [vmem:[%s2186_s0 + $0x38] sm:$0xff]  ;;  %v1320_v56 = vcombine.low %v66_v42, %v66_v42 }
  0x2a   :  { %1572 = vmatprep.subr.bf16.mxu1 %v1668_v0  ;;  %v1279_v59 = vcombine.high %v21_v54, %v25_v55 }
  0x2b   :  { %891 = vmatmul.mubr.bf16.gmra.mrb[4].mxu0 %v1280_v51  ;;  %v1323_v51 = vcombine.high %v67_v43, %v67_v43 }
  0x2c   :  { %979 = vmatmul.mubr.bf16.gmra.mrb[4].mxu1 %v1282_v53  ;;  %898 = vmatprep.mubr.bf16.mxu0 %v1289_v61  ;;  %v24_v53 = vld [vmem:[%s2186_s0 + $0x30] sm:$0xff] }
  0x2d   :  { %986 = vmatprep.mubr.bf16.mxu1 %v1291_v62  ;;  %1515 = vmatpush3.bf16.msra.mxu0 %v1667_v63  ;;  %v1277_v58 = vcombine.high %v20_v52, %v24_v53  ;;  %v32_v61 = vld [vmem:[%s2186_s0 + $0x70] sm:$0xff]  ;;  %v29_v62 = vld [vmem:[%s2186_s0 + $0x58] sm:$0xff]  ;;  %v1276_v0 = vcombine.low %v20_v52, %v24_v53 }
  0x2e   :  { %1573 = vmatpush3.bf16.msra.mxu1 %v1669_v1  ;;  %1516 = vmatprep.subr.bf16.mxu0 %v1670_v3  ;;  %v33_v63 = vld [vmem:[%s2186_s0 + $0x78] sm:$0xff]  ;;  %v1278_v1 = vcombine.low %v21_v54, %v25_v55  ;;  %v1284_v8 = vcombine.low %v28_v60, %v32_v61 }
  0x2f   :  { %1574 = vmatprep.subr.bf16.mxu1 %v1672_v12  ;;  %v1287_v3 = vcombine.high %v29_v62, %v33_v63  ;;  %v44_v12 = vld [vmem:[%s2186_s0 + $0xd0] sm:$0xff] }
  0x31   :  { %1517 = vmatpush3.bf16.msra.mxu0 %v1671_v5  ;;  %v40_v5 = vld [vmem:[%s2186_s0 + $0xb0] sm:$0xff] }
  0x32   :  { %1575 = vmatpush3.bf16.msra.mxu1 %v1673_v13  ;;  %1518 = vmatprep.subr.bf16.mxu0 %v1674_v14  ;;  %v48_v13 = vld [vmem:[%s2186_s0 + $0xf0] sm:$0xff]  ;;  %v45_v14 = vld [vmem:[%s2186_s0 + $0xd8] sm:$0xff] }
  0x33   :  { %899 = vmatmul.mubr.bf16.gmra.mrb[8].mxu0 %v1288_v2  ;;  %1576 = vmatprep.subr.bf16.mxu1 %v1676_v17  ;;  %v1285_v2 = vcombine.high %v28_v60, %v32_v61  ;;  %v1294_v17 = vcombine.low %v37_v6, %v41_v7  ;;  %v1301_v18 = vcombine.high %v44_v12, %v48_v13 }
  0x34   :  { %987 = vmatmul.mubr.bf16.gmra.mrb[8].mxu1 %v1290_v4  ;;  %906 = vmatprep.mubr.bf16.mxu0 %v1297_v9  ;;  %v36_v4 = vld [vmem:[%s2186_s0 + $0x90] sm:$0xff]  ;;  %v1286_v9 = vcombine.low %v29_v62, %v33_v63 }
  0x35   :  { %994 = vmatprep.mubr.bf16.mxu1 %v1299_v11  ;;  %1519 = vmatpush3.bf16.msra.mxu0 %v1675_v15  ;;  %v1293_v10 = vcombine.high %v36_v4, %v40_v5  ;;  %v1295_v11 = vcombine.high %v37_v6, %v41_v7  ;;  %v49_v15 = vld [vmem:[%s2186_s0 + $0xf8] sm:$0xff] }
  0x36   :  { %1577 = vmatpush3.bf16.msra.mxu1 %v1677_v25  ;;  %1520 = vmatprep.subr.bf16.mxu0 %v1678_v26  ;;  %v1303_v19 = vcombine.high %v45_v14, %v49_v15  ;;  %v1302_v25 = vcombine.low %v45_v14, %v49_v15 }
  0x37   :  { %1578 = vmatprep.subr.bf16.mxu1 %v1680_v28  ;;  %v60_v28 = vld [vmem:[%s2186_s0 + $0x150] sm:$0xff] }
  0x39   :  { %1521 = vmatpush3.bf16.msra.mxu0 %v1679_v27  ;;  %v1311_v27 = vcombine.high %v53_v22, %v57_v23 }
  0x3a   :  { %1579 = vmatpush3.bf16.msra.mxu1 %v1681_v29  ;;  %1522 = vmatprep.subr.bf16.mxu0 %v1682_v35  ;;  %v64_v29 = vld [vmem:[%s2186_s0 + $0x170] sm:$0xff]  ;;  %v1319_v35 = vcombine.high %v61_v30, %v65_v31 }
  0x3b   :  { %907 = vmatmul.mubr.bf16.gmra.mrb[12].mxu0 %v1296_v16  ;;  %1580 = vmatprep.subr.bf16.mxu1 %v1684_v40  ;;  %v1292_v16 = vcombine.low %v36_v4, %v40_v5 }
  0x3c   :  { %995 = vmatmul.mubr.bf16.gmra.mrb[12].mxu1 %v1298_v20  ;;  %914 = vmatprep.mubr.bf16.mxu0 %v1305_v21  ;;  %v52_v20 = vld [vmem:[%s2186_s0 + $0x110] sm:$0xff] }
  0x3d   :  { %1002 = vmatprep.mubr.bf16.mxu1 %v1307_v24  ;;  %1523 = vmatpush3.bf16.msra.mxu0 %v1683_v38  ;;  %v56_v21 = vld [vmem:[%s2186_s0 + $0x130] sm:$0xff]  ;;  %v1300_v24 = vcombine.low %v44_v12, %v48_v13  ;;  %v1316_v38 = vcombine.low %v60_v28, %v64_v29 }
  0x3e   :  { %1581 = vmatpush3.bf16.msra.mxu1 %v1685_v41  ;;  %1524 = vmatprep.subr.bf16.mxu0 %v1690_v44  ;;  %v1309_v26 = vcombine.high %v52_v20, %v56_v21  ;;  %v1308_v32 = vcombine.low %v52_v20, %v56_v21 }
  0x3f   :  { %1582 = vmatprep.subr.bf16.mxu1 %v1692_v46 }
  0x41   :  { %1525 = vmatpush3.bf16.msra.mxu0 %v1691_v45 }
  0x42   :  { %1583 = vmatpush3.bf16.msra.mxu1 %v1693_v48 }
  0x43   :  { %915 = vmatmul.mubr.bf16.gmra.mrb[16].mxu0 %v1304_v34  ;;  %v1317_v34 = vcombine.high %v60_v28, %v64_v29 }
  0x44   :  { %1003 = vmatmul.mubr.bf16.gmra.mrb[16].mxu1 %v1306_v36  ;;  %922 = vmatprep.mubr.bf16.mxu0 %v1313_v37  ;;  %v68_v36 = vld [vmem:[%s2186_s0 + $0x190] sm:$0xff]  ;;  %v69_v37 = vld [vmem:[%s2186_s0 + $0x198] sm:$0xff] }
  0x45   :  { %1010 = vmatprep.mubr.bf16.mxu1 %v1315_v39  ;;  %v1318_v39 = vcombine.low %v61_v30, %v65_v31  ;;  %v1325_v40 = vcombine.high %v68_v36, %v68_v36  ;;  %v1327_v41 = vcombine.high %v69_v37, %v69_v37  ;;  %v1324_v42 = vcombine.low %v68_v36, %v68_v36 }
  0x46   :  { %v1326_v43 = vcombine.low %v69_v37, %v69_v37 }
  0x4b   :  { %923 = vmatmul.mubr.bf16.gmra.mrb[20].mxu0 %v1312_v47 }
  0x4c   :  { %1011 = vmatmul.mubr.bf16.gmra.mrb[20].mxu1 %v1314_v49  ;;  %930 = vmatprep.mubr.bf16.mxu0 %v1321_v50 }
  0x4d   :  { %1018 = vmatprep.mubr.bf16.mxu1 %v1323_v51 }
  0x53   :  { %931 = vmatmul.mubr.bf16.gmra.mrb[24].mxu0 %v1320_v56 }
  0x54   :  { %1019 = vmatmul.mubr.bf16.gmra.mrb[24].mxu1 %v1322_v57  ;;  %1058 = vmatprep.mubr.bf16.mxu0 %v1277_v58 }
  0x55   :  { %1146 = vmatprep.mubr.bf16.mxu1 %v1279_v59 }
  0x5b   :  { %1059 = vmatmul.mubr.bf16.vlgmr.msra.gmra.mrb[28].mxu0 %v1276_v0 }
  0x5c   :  { %1147 = vmatmul.mubr.bf16.vlgmr.msra.gmra.mrb[28].mxu1 %v1278_v1  ;;  %1066 = vmatprep.mubr.bf16.mxu0 %v1285_v2 }
  0x5d   :  { %1154 = vmatprep.mubr.bf16.mxu1 %v1287_v3 }
  0x63   :  { %1067 = vmatmul.mubr.bf16.gmra.mrb[32].mxu0 %v1284_v8 }
  0x64   :  { %1155 = vmatmul.mubr.bf16.gmra.mrb[32].mxu1 %v1286_v9  ;;  %1074 = vmatprep.mubr.bf16.mxu0 %v1293_v10 }
  0x65   :  { %1162 = vmatprep.mubr.bf16.mxu1 %v1295_v11 }
  0x6b   :  { %1075 = vmatmul.mubr.bf16.gmra.mrb[36].mxu0 %v1292_v16 }
  0x6c   :  { %1163 = vmatmul.mubr.bf16.gmra.mrb[36].mxu1 %v1294_v17  ;;  %1082 = vmatprep.mubr.bf16.mxu0 %v1301_v18 }
  0x6d   :  { %1170 = vmatprep.mubr.bf16.mxu1 %v1303_v19 }
  0x73   :  { %1083 = vmatmul.mubr.bf16.gmra.mrb[40].mxu0 %v1300_v24 }
  0x74   :  { %1171 = vmatmul.mubr.bf16.gmra.mrb[40].mxu1 %v1302_v25  ;;  %1090 = vmatprep.mubr.bf16.mxu0 %v1309_v26 }
  0x75   :  { %1178 = vmatprep.mubr.bf16.mxu1 %v1311_v27 }
  0x7b   :  { %1091 = vmatmul.mubr.bf16.gmra.mrb[44].mxu0 %v1308_v32 }
  0x7c   :  { %1179 = vmatmul.mubr.bf16.gmra.mrb[44].mxu1 %v1310_v33  ;;  %1098 = vmatprep.mubr.bf16.mxu0 %v1317_v34 }
  0x7d   :  { %1186 = vmatprep.mubr.bf16.mxu1 %v1319_v35 }
  0x83   :  { %1099 = vmatmul.mubr.bf16.gmra.mrb[48].mxu0 %v1316_v38 }
  0x84   :  { %1187 = vmatmul.mubr.bf16.gmra.mrb[48].mxu1 %v1318_v39  ;;  %1106 = vmatprep.mubr.bf16.mxu0 %v1325_v40 }
  0x85   :  { %1194 = vmatprep.mubr.bf16.mxu1 %v1327_v41 }
  0x8b   :  { %1107 = vmatmul.mubr.bf16.gmra.mrb[52].mxu0 %v1324_v42 }
  0x8c   :  { %1195 = vmatmul.mubr.bf16.gmra.mrb[52].mxu1 %v1326_v43 }
  0xf6   :  { %v1410_v44 = vpop.f32.mrb[0].mxu0 }
  0xf7   :  { %v1468_v45 = vpop.f32.mrb[0].mxu1  ;;  %v1411_v46 = vpop.f32.mrb[1].mxu0 }
  0xf8   :  { %v1412_v47 = vadd.f32 %v1411_v46, %v1410_v44  ;;  %v1469_v48 = vpop.f32.mrb[1].mxu1  ;;  %v1413_v49 = vpop.f32.mrb[2].mxu0 }
  0xf9   :  { %v1470_v50 = vadd.f32 %v1469_v48, %v1468_v45  ;;  %v1471_v51 = vpop.f32.mrb[2].mxu1  ;;  %v1414_v52 = vpop.f32.mrb[3].mxu0 }
  0xfa   :  { %v1415_v53 = vadd.f32 %v1414_v52, %v1413_v49  ;;  %v1472_v54 = vpop.f32.mrb[3].mxu1 }
  0xfb   :  { %v2071_v55 = vadd.f32 %v1470_v50, %v1412_v47  ;;  %v1473_v56 = vadd.f32 %v1472_v54, %v1471_v51 }
  0xfd   :  { %v2073_v57 = vadd.f32 %v1473_v56, %v1415_v53 }
  0xfe   :  { %v1416_v58 = vpop.f32.mrb[4].mxu0 }
  0xff   :  { %v1474_v59 = vpop.f32.mrb[4].mxu1  ;;  %v1417_v60 = vpop.f32.mrb[5].mxu0 }
 0x100   :  { %v1418_v61 = vadd.f32 %v1417_v60, %v1416_v58  ;;  %v1475_v62 = vpop.f32.mrb[5].mxu1  ;;  %v1419_v63 = vpop.f32.mrb[6].mxu0 }
 0x101   :  { %v1476_v0 = vadd.f32 %v1475_v62, %v1474_v59  ;;  %v1477_v1 = vpop.f32.mrb[6].mxu1  ;;  %v1420_v2 = vpop.f32.mrb[7].mxu0 }
 0x102   :  { %v1421_v3 = vadd.f32 %v1420_v2, %v1419_v63  ;;  %v1478_v4 = vpop.f32.mrb[7].mxu1 }
 0x103   :  { %v2075_v5 = vadd.f32 %v1476_v0, %v1418_v61  ;;  %v1479_v6 = vadd.f32 %v1478_v4, %v1477_v1 }
 0x105   :  { %v2077_v7 = vadd.f32 %v1479_v6, %v1421_v3 }
 0x106   :  { %v1422_v8 = vpop.f32.mrb[8].mxu0 }
 0x107   :  { %v1480_v9 = vpop.f32.mrb[8].mxu1  ;;  %v1423_v10 = vpop.f32.mrb[9].mxu0 }
 0x108   :  { %v1424_v11 = vadd.f32 %v1423_v10, %v1422_v8  ;;  %v1481_v12 = vpop.f32.mrb[9].mxu1  ;;  %v1425_v13 = vpop.f32.mrb[10].mxu0 }
 0x109   :  { %v1482_v14 = vadd.f32 %v1481_v12, %v1480_v9  ;;  %v1483_v15 = vpop.f32.mrb[10].mxu1  ;;  %v1426_v16 = vpop.f32.mrb[11].mxu0 }
 0x10a   :  { %v1427_v17 = vadd.f32 %v1426_v16, %v1425_v13  ;;  %v1484_v18 = vpop.f32.mrb[11].mxu1 }
 0x10b   :  { %v2079_v19 = vadd.f32 %v1482_v14, %v1424_v11  ;;  %v1485_v20 = vadd.f32 %v1484_v18, %v1483_v15 }
 0x10d   :  { %v2081_v21 = vadd.f32 %v1485_v20, %v1427_v17 }
 0x10e   :  { %v1428_v22 = vpop.f32.mrb[12].mxu0 }
 0x10f   :  { %v1486_v23 = vpop.f32.mrb[12].mxu1  ;;  %v1429_v24 = vpop.f32.mrb[13].mxu0 }
 0x110   :  { %v1430_v25 = vadd.f32 %v1429_v24, %v1428_v22  ;;  %v1487_v26 = vpop.f32.mrb[13].mxu1  ;;  %v1431_v27 = vpop.f32.mrb[14].mxu0 }
 0x111   :  { %v1488_v28 = vadd.f32 %v1487_v26, %v1486_v23  ;;  %v1489_v29 = vpop.f32.mrb[14].mxu1  ;;  %v1432_v30 = vpop.f32.mrb[15].mxu0 }
 0x112   :  { %v1433_v31 = vadd.f32 %v1432_v30, %v1431_v27  ;;  %v1490_v32 = vpop.f32.mrb[15].mxu1 }
 0x113   :  { %v2083_v33 = vadd.f32 %v1488_v28, %v1430_v25  ;;  %v1491_v34 = vadd.f32 %v1490_v32, %v1489_v29  ;;  %v2101_v29 = vld [vmem:[%s2187_s2] ss:$0 sm:$0xff] }
 0x115   :  { %v2085_v35 = vadd.f32 %v1491_v34, %v1433_v31  ;;  %v2107_v34 = vld [vmem:[%s2188_s3] ss:$0 sm:$0xff] }
 0x116   :  { %v1434_v36 = vpop.f32.mrb[16].mxu0 }
 0x117   :  { %v1492_v37 = vpop.f32.mrb[16].mxu1  ;;  %v1435_v38 = vpop.f32.mrb[17].mxu0 }
 0x118   :  { %v1436_v39 = vadd.f32 %v1435_v38, %v1434_v36  ;;  %v1493_v40 = vpop.f32.mrb[17].mxu1  ;;  %v1437_v41 = vpop.f32.mrb[18].mxu0 }
 0x119   :  { %v1494_v42 = vadd.f32 %v1493_v40, %v1492_v37  ;;  %v1495_v43 = vpop.f32.mrb[18].mxu1  ;;  %v1438_v44 = vpop.f32.mrb[19].mxu0 }
 0x11a   :  { %v1439_v45 = vadd.f32 %v1438_v44, %v1437_v41  ;;  %v1496_v46 = vpop.f32.mrb[19].mxu1 }
 0x11b   :  { %v2087_v47 = vadd.f32 %v1494_v42, %v1436_v39  ;;  %v1497_v48 = vadd.f32 %v1496_v46, %v1495_v43 }
 0x11d   :  { %v2089_v49 = vadd.f32 %v1497_v48, %v1439_v45 }
 0x11e   :  { %v1440_v50 = vpop.f32.mrb[20].mxu0 }
 0x11f   :  { %v1498_v51 = vpop.f32.mrb[20].mxu1  ;;  %v1441_v52 = vpop.f32.mrb[21].mxu0 }
 0x120   :  { %v1442_v53 = vadd.f32 %v1441_v52, %v1440_v50  ;;  %v1499_v54 = vpop.f32.mrb[21].mxu1  ;;  %v1443_v56 = vpop.f32.mrb[22].mxu0 }
 0x121   :  { %v1500_v58 = vadd.f32 %v1499_v54, %v1498_v51  ;;  %v1501_v59 = vpop.f32.mrb[22].mxu1  ;;  %v1444_v60 = vpop.f32.mrb[23].mxu0 }
 0x122   :  { %v1445_v61 = vadd.f32 %v1444_v60, %v1443_v56  ;;  %v1502_v62 = vpop.f32.mrb[23].mxu1 }
 0x123   :  { %v2091_v63 = vadd.f32 %v1500_v58, %v1442_v53  ;;  %v1503_v0 = vadd.f32 %v1502_v62, %v1501_v59 }
 0x125   :  { %v2093_v1 = vadd.f32 %v1503_v0, %v1445_v61 }
 0x126   :  { %v1446_v2 = vpop.f32.mrb[24].mxu0 }
 0x127   :  { %v1504_v3 = vpop.f32.mrb[24].mxu1  ;;  %v1447_v4 = vpop.f32.mrb[25].mxu0 }
 0x128   :  { %v1448_v6 = vadd.f32 %v1447_v4, %v1446_v2  ;;  %v1505_v8 = vpop.f32.mrb[25].mxu1  ;;  %v1449_v9 = vpop.f32.mrb[26].mxu0 }
 0x129   :  { %v1506_v10 = vadd.f32 %v1505_v8, %v1504_v3  ;;  %v1507_v11 = vpop.f32.mrb[26].mxu1  ;;  %v1450_v12 = vpop.f32.mrb[27].mxu0 }
 0x12a   :  { %v1508_v13 = vpop.f32.mrb[27].mxu1 }
 0x12b   :  { %v2095_v14 = vadd.f32 %v1506_v10, %v1448_v6 }
 0x12e   :  { %v1526_v15 = vpop.f32.mrb[28].mxu0 }
 0x12f   :  { %v1584_v16 = vpop.f32.mrb[28].mxu1  ;;  %v1527_v17 = vpop.f32.mrb[29].mxu0 }
 0x130   :  { %v1528_v18 = vadd.f32 %v1527_v17, %v1526_v15  ;;  %v1585_v20 = vpop.f32.mrb[29].mxu1  ;;  %v1529_v22 = vpop.f32.mrb[30].mxu0 }
 0x131   :  { %v1586_v23 = vadd.f32 %v1585_v20, %v1584_v16  ;;  %v1587_v24 = vpop.f32.mrb[30].mxu1  ;;  %v1530_v25 = vpop.f32.mrb[31].mxu0 }
 0x132   :  { %v1061_v26 = vadd.f32 %v1528_v18, %v2071_v55  ;;  %v1531_v27 = vadd.f32 %v1530_v25, %v1529_v22  ;;  %v1588_v28 = vpop.f32.mrb[31].mxu1 }
 0x133   :  { %v1589_v30 = vadd.f32 %v1588_v28, %v1587_v24 }
 0x134   :  { %v1149_v31 = vadd.f32 %v1586_v23, %v1061_v26  ;;  %v1064_v32 = vadd.f32 %v1531_v27, %v2073_v57 }
 0x136   :  { %v1209_v36 = vmul.f32 %v2101_v29, %v1149_v31  ;;  %v1152_v37 = vadd.f32 %v1589_v30, %v1064_v32  ;;  %v1532_v55 = vpop.f32.mrb[32].mxu0 }
 0x137   :  { %v1590_v38 = vpop.f32.mrb[32].mxu1  ;;  %v1533_v39 = vpop.f32.mrb[33].mxu0 }
 0x138   :  { %v1229_v40 = vadd.f32 %v2107_v34, %v1209_v36  ;;  %v1210_v41 = vmul.f32 %v2101_v29, %v1152_v37  ;;  %v1534_v42 = vadd.f32 %v1533_v39, %v1532_v55  ;;  %v1591_v43 = vpop.f32.mrb[33].mxu1  ;;  %v1535_v44 = vpop.f32.mrb[34].mxu0 }
 0x139   :  { %v1592_v45 = vadd.f32 %v1591_v43, %v1590_v38  ;;  %v1593_v57 = vpop.f32.mrb[34].mxu1  ;;  %v1536_v46 = vpop.f32.mrb[35].mxu0 }
 0x13a   :  { %v1242_v48 = vmax.f32 %v1229_v40, 0.0  ;;  %v1230_v50 = vadd.f32 %v2107_v34, %v1210_v41  ;;  %v1069_v51 = vadd.f32 %v1534_v42, %v2075_v5  ;;  %v1537_v52 = vadd.f32 %v1536_v46, %v1535_v44  ;;  %v1594_v53 = vpop.f32.mrb[35].mxu1 }
 0x13b   :  { %v1595_v54 = vadd.f32 %v1594_v53, %v1593_v57 }
 0x13c   :  { %1255 = vst [vmem:[%s2189_s4] sm:$0xff] %v1242_v48  ;;  %v1243_v56 = vmax.f32 %v1230_v50, 0.0  ;;  %v1157_v58 = vadd.f32 %v1592_v45, %v1069_v51  ;;  %v1072_v59 = vadd.f32 %v1537_v52, %v2077_v7 }
 0x13e   :  { %1256 = vst [vmem:[%s2189_s4 + $0x8] sm:$0xff] %v1243_v56  ;;  %v1211_v60 = vmul.f32 %v2101_v29, %v1157_v58  ;;  %v1160_v61 = vadd.f32 %v1595_v54, %v1072_v59  ;;  %v1538_v62 = vpop.f32.mrb[36].mxu0 }
 0x13f   :  { %v1596_v5 = vpop.f32.mrb[36].mxu1  ;;  %v1539_v0 = vpop.f32.mrb[37].mxu0 }
 0x140   :  { %v1231_v2 = vadd.f32 %v2107_v34, %v1211_v60  ;;  %v1212_v3 = vmul.f32 %v2101_v29, %v1160_v61  ;;  %v1540_v4 = vadd.f32 %v1539_v0, %v1538_v62  ;;  %v1597_v6 = vpop.f32.mrb[37].mxu1  ;;  %v1541_v8 = vpop.f32.mrb[38].mxu0 }
 0x141   :  { %v1598_v9 = vadd.f32 %v1597_v6, %v1596_v5  ;;  %v1599_v10 = vpop.f32.mrb[38].mxu1  ;;  %v1542_v7 = vpop.f32.mrb[39].mxu0 }
 0x142   :  { %v1244_v11 = vmax.f32 %v1231_v2, 0.0  ;;  %v1232_v12 = vadd.f32 %v2107_v34, %v1212_v3  ;;  %v1077_v13 = vadd.f32 %v1540_v4, %v2079_v19  ;;  %v1543_v15 = vadd.f32 %v1542_v7, %v1541_v8  ;;  %v1600_v16 = vpop.f32.mrb[39].mxu1 }
 0x143   :  { %v1601_v17 = vadd.f32 %v1600_v16, %v1599_v10 }
 0x144   :  { %1257 = vst [vmem:[%s2189_s4 + $0x10] sm:$0xff] %v1244_v11  ;;  %v1245_v18 = vmax.f32 %v1232_v12, 0.0  ;;  %v1165_v20 = vadd.f32 %v1598_v9, %v1077_v13  ;;  %v1080_v22 = vadd.f32 %v1543_v15, %v2081_v21 }
 0x146   :  { %1258 = vst [vmem:[%s2189_s4 + $0x18] sm:$0xff] %v1245_v18  ;;  %v1213_v23 = vmul.f32 %v2101_v29, %v1165_v20  ;;  %v1168_v24 = vadd.f32 %v1601_v17, %v1080_v22  ;;  %v1544_v25 = vpop.f32.mrb[40].mxu0 }
 0x147   :  { %v1602_v19 = vpop.f32.mrb[40].mxu1  ;;  %v1545_v26 = vpop.f32.mrb[41].mxu0 }
 0x148   :  { %v1233_v27 = vadd.f32 %v2107_v34, %v1213_v23  ;;  %v1214_v28 = vmul.f32 %v2101_v29, %v1168_v24  ;;  %v1546_v30 = vadd.f32 %v1545_v26, %v1544_v25  ;;  %v1603_v31 = vpop.f32.mrb[41].mxu1  ;;  %v1547_v32 = vpop.f32.mrb[42].mxu0 }
 0x149   :  { %v1604_v36 = vadd.f32 %v1603_v31, %v1602_v19  ;;  %v1605_v37 = vpop.f32.mrb[42].mxu1  ;;  %v1548_v21 = vpop.f32.mrb[43].mxu0 }
 0x14a   :  { %v1246_v55 = vmax.f32 %v1233_v27, 0.0  ;;  %v1234_v38 = vadd.f32 %v2107_v34, %v1214_v28  ;;  %v1085_v39 = vadd.f32 %v1546_v30, %v2083_v33  ;;  %v1549_v40 = vadd.f32 %v1548_v21, %v1547_v32  ;;  %v1606_v41 = vpop.f32.mrb[43].mxu1 }
 0x14b   :  { %v1607_v42 = vadd.f32 %v1606_v41, %v1605_v37 }
 0x14c   :  { %1259 = vst [vmem:[%s2189_s4 + $0x20] sm:$0xff] %v1246_v55  ;;  %v1247_v43 = vmax.f32 %v1234_v38, 0.0  ;;  %v1173_v44 = vadd.f32 %v1604_v36, %v1085_v39  ;;  %v1088_v45 = vadd.f32 %v1549_v40, %v2085_v35 }
 0x14e   :  { %1260 = vst [vmem:[%s2189_s4 + $0x28] sm:$0xff] %v1247_v43  ;;  %v1215_v57 = vmul.f32 %v2101_v29, %v1173_v44  ;;  %v1176_v46 = vadd.f32 %v1607_v42, %v1088_v45  ;;  %v1550_v48 = vpop.f32.mrb[44].mxu0 }
 0x14f   :  { %v1608_v33 = vpop.f32.mrb[44].mxu1  ;;  %v1551_v50 = vpop.f32.mrb[45].mxu0 }
 0x150   :  { %v1235_v51 = vadd.f32 %v2107_v34, %v1215_v57  ;;  %v1216_v52 = vmul.f32 %v2101_v29, %v1176_v46  ;;  %v1552_v53 = vadd.f32 %v1551_v50, %v1550_v48  ;;  %v1609_v54 = vpop.f32.mrb[45].mxu1  ;;  %v1553_v56 = vpop.f32.mrb[46].mxu0 }
 0x151   :  { %v1610_v58 = vadd.f32 %v1609_v54, %v1608_v33  ;;  %v1611_v59 = vpop.f32.mrb[46].mxu1  ;;  %v1554_v35 = vpop.f32.mrb[47].mxu0 }
 0x152   :  { %v1248_v60 = vmax.f32 %v1235_v51, 0.0  ;;  %v1236_v61 = vadd.f32 %v2107_v34, %v1216_v52  ;;  %v1093_v62 = vadd.f32 %v1552_v53, %v2087_v47  ;;  %v1555_v5 = vadd.f32 %v1554_v35, %v1553_v56  ;;  %v1612_v0 = vpop.f32.mrb[47].mxu1 }
 0x153   :  { %v1613_v2 = vadd.f32 %v1612_v0, %v1611_v59 }
 0x154   :  { %1261 = vst [vmem:[%s2189_s4 + $0x30] sm:$0xff] %v1248_v60  ;;  %v1249_v3 = vmax.f32 %v1236_v61, 0.0  ;;  %v1181_v4 = vadd.f32 %v1610_v58, %v1093_v62  ;;  %v1096_v6 = vadd.f32 %v1555_v5, %v2089_v49 }
 0x156   :  { %1262 = vst [vmem:[%s2189_s4 + $0x38] sm:$0xff] %v1249_v3  ;;  %v1217_v8 = vmul.f32 %v2101_v29, %v1181_v4  ;;  %v1184_v9 = vadd.f32 %v1613_v2, %v1096_v6  ;;  %v1556_v10 = vpop.f32.mrb[48].mxu0 }
 0x157   :  { %v1614_v47 = vpop.f32.mrb[48].mxu1  ;;  %v1557_v7 = vpop.f32.mrb[49].mxu0 }
 0x158   :  { %v1237_v11 = vadd.f32 %v2107_v34, %v1217_v8  ;;  %v1218_v12 = vmul.f32 %v2101_v29, %v1184_v9  ;;  %v1558_v13 = vadd.f32 %v1557_v7, %v1556_v10  ;;  %v1615_v15 = vpop.f32.mrb[49].mxu1  ;;  %v1559_v16 = vpop.f32.mrb[50].mxu0 }
 0x159   :  { %v1616_v17 = vadd.f32 %v1615_v15, %v1614_v47  ;;  %v1617_v18 = vpop.f32.mrb[50].mxu1  ;;  %v1560_v49 = vpop.f32.mrb[51].mxu0 }
 0x15a   :  { %v1250_v20 = vmax.f32 %v1237_v11, 0.0  ;;  %v1238_v22 = vadd.f32 %v2107_v34, %v1218_v12  ;;  %v1101_v23 = vadd.f32 %v1558_v13, %v2091_v63  ;;  %v1561_v24 = vadd.f32 %v1560_v49, %v1559_v16  ;;  %v1618_v25 = vpop.f32.mrb[51].mxu1 }
 0x15b   :  { %v1619_v19 = vadd.f32 %v1618_v25, %v1617_v18 }
 0x15c   :  { %1263 = vst [vmem:[%s2189_s4 + $0x40] sm:$0xff] %v1250_v20  ;;  %v1251_v26 = vmax.f32 %v1238_v22, 0.0  ;;  %v1189_v27 = vadd.f32 %v1616_v17, %v1101_v23  ;;  %v1104_v28 = vadd.f32 %v1561_v24, %v2093_v1 }
 0x15e   :  { %1264 = vst [vmem:[%s2189_s4 + $0x48] sm:$0xff] %v1251_v26  ;;  %v1219_v30 = vmul.f32 %v2101_v29, %v1189_v27  ;;  %v1192_v31 = vadd.f32 %v1619_v19, %v1104_v28  ;;  %v1562_v32 = vpop.f32.mrb[52].mxu0 }
 0x15f   :  { %v1620_v63 = vpop.f32.mrb[52].mxu1  ;;  %v1563_v36 = vpop.f32.mrb[53].mxu0 }
 0x160   :  { %v1239_v37 = vadd.f32 %v2107_v34, %v1219_v30  ;;  %v1220_v21 = vmul.f32 %v2101_v29, %v1192_v31  ;;  %v1564_v55 = vadd.f32 %v1563_v36, %v1562_v32  ;;  %v1621_v38 = vpop.f32.mrb[53].mxu1  ;;  %v1565_v39 = vpop.f32.mrb[54].mxu0 }
 0x161   :  { %v1622_v40 = vadd.f32 %v1621_v38, %v1620_v63  ;;  %v1623_v41 = vpop.f32.mrb[54].mxu1  ;;  %v1566_v1 = vpop.f32.mrb[55].mxu0 }
 0x162   :  { %v1252_v42 = vmax.f32 %v1239_v37, 0.0  ;;  %v1240_v43 = vadd.f32 %v2107_v34, %v1220_v21  ;;  %v1109_v44 = vadd.f32 %v1564_v55, %v2095_v14  ;;  %v1624_v45 = vpop.f32.mrb[55].mxu1 }
 0x164   :  { %1265 = vst [vmem:[%s2189_s4 + $0x50] sm:$0xff] %v1252_v42  ;;  %v1253_v57 = vmax.f32 %v1240_v43, 0.0  ;;  %v1197_v46 = vadd.f32 %v1622_v40, %v1109_v44 }
 0x166   :  { %1266 = vst [vmem:[%s2189_s4 + $0x58] sm:$0xff] %v1253_v57  ;;  %v1221_v48 = vmul.f32 %v2101_v29, %v1197_v46 }
 0x168   :  { %v1241_v33 = vadd.f32 %v2107_v34, %v1221_v48 }
 0x16a   :  { %v1254_v50 = vmax.f32 %v1241_v33, 0.0 }
 0x16c   :  { %1267 = vst [vmem:[%s2189_s4 + $0x60] sm:$0xff] %v1254_v50 }

// kernel: resnet_forward.6
= control target key start
LH: loop header
LB: loop body
LE: loop exit
PB: predicated region body
PF: predicated region fallthrough
CT: control target
= control target key end

     0   :  { %s1363_s1 = inlined_call_operand.vmem [shape: bf16[1024,128], index: 1, kind: input, shape index: {}]   ;;  %s1364_s0 = inlined_call_operand.vmem [shape: bf16[24,1024], index: 0, kind: input, shape index: {}]   ;;  %s1365_s2 = inlined_call_operand.vmem [shape: f32[1,128], index: 2, kind: input, shape index: {}]   ;;  %s1366_s3 = inlined_call_operand.vmem [shape: f32[1,128], index: 3, kind: input, shape index: {}]   ;;  %s1367_s4 = inlined_call_operand.vmem [shape: f32[24,128], index: 4, kind: output, shape index: {}]  }
   0x1   :  { %v1023_v0 = vld [vmem:[%s1363_s1 + $0x40] sm:$0xff]   ;;  %v1027_v4 = vld [vmem:[%s1363_s1 + $0x48] sm:$0xff]   ;;  %v1031_v8 = vld [vmem:[%s1363_s1 + $0x50] sm:$0xff]  }
   0x2   :  { %v1024_v1 = vld [vmem:[%s1363_s1 + $0xc0] sm:$0xff]   ;;  %911 = vmatprep.subr.bf16.mxu0 %v1023_v0  ;;  %v1028_v5 = vld [vmem:[%s1363_s1 + $0xc8] sm:$0xff]   ;;  %v1032_v9 = vld [vmem:[%s1363_s1 + $0xd0] sm:$0xff]  }
   0x3   :  { %v1025_v2 = vld [vmem:[%s1363_s1] sm:$0xff]   ;;  %939 = vmatprep.subr.bf16.mxu1 %v1024_v1  ;;  %v1029_v6 = vld [vmem:[%s1363_s1 + $0x8] sm:$0xff]   ;;  %v1033_v10 = vld [vmem:[%s1363_s1 + $0x10] sm:$0xff]  }
   0x4   :  { %v1026_v3 = vld [vmem:[%s1363_s1 + $0x80] sm:$0xff]   ;;  %912 = vmatpush3.bf16.msra.mxu0 %v1025_v2  ;;  %v1030_v7 = vld [vmem:[%s1363_s1 + $0x88] sm:$0xff]   ;;  %v1034_v11 = vld [vmem:[%s1363_s1 + $0x90] sm:$0xff]  }
   0x5   :  { %940 = vmatpush3.bf16.msra.mxu1 %v1026_v3  ;;  %913 = vmatprep.subr.bf16.mxu0 %v1027_v4  ;;  %v1035_v12 = vld [vmem:[%s1363_s1 + $0x58] sm:$0xff]   ;;  %v1039_v16 = vld [vmem:[%s1363_s1 + $0x60] sm:$0xff]   ;;  %v1043_v20 = vld [vmem:[%s1363_s1 + $0x68] sm:$0xff]  }
   0x6   :  { %941 = vmatprep.subr.bf16.mxu1 %v1028_v5  ;;  %v1036_v13 = vld [vmem:[%s1363_s1 + $0xd8] sm:$0xff]   ;;  %v1040_v17 = vld [vmem:[%s1363_s1 + $0xe0] sm:$0xff]   ;;  %v1044_v21 = vld [vmem:[%s1363_s1 + $0xe8] sm:$0xff]  }
   0x7   :  { %v1037_v14 = vld [vmem:[%s1363_s1 + $0x18] sm:$0xff]   ;;  %v1041_v18 = vld [vmem:[%s1363_s1 + $0x20] sm:$0xff]   ;;  %v1045_v22 = vld [vmem:[%s1363_s1 + $0x28] sm:$0xff]  }
   0x8   :  { %914 = vmatpush3.bf16.msra.mxu0 %v1029_v6  ;;  %v1038_v15 = vld [vmem:[%s1363_s1 + $0x98] sm:$0xff]   ;;  %v1042_v19 = vld [vmem:[%s1363_s1 + $0xa0] sm:$0xff]   ;;  %v1046_v23 = vld [vmem:[%s1363_s1 + $0xa8] sm:$0xff]  }
   0x9   :  { %942 = vmatpush3.bf16.msra.mxu1 %v1030_v7  ;;  %915 = vmatprep.subr.bf16.mxu0 %v1031_v8  ;;  %v1047_v24 = vld [vmem:[%s1363_s1 + $0x70] sm:$0xff]   ;;  %v1051_v28 = vld [vmem:[%s1363_s1 + $0x78] sm:$0xff]   ;;  %v18_v32 = vld [vmem:[%s1364_s0] sm:$0xff] }
   0xa   :  { %943 = vmatprep.subr.bf16.mxu1 %v1032_v9  ;;  %v1048_v25 = vld [vmem:[%s1363_s1 + $0xf0] sm:$0xff]   ;;  %v1052_v29 = vld [vmem:[%s1363_s1 + $0xf8] sm:$0xff]   ;;  %v22_v33 = vld [vmem:[%s1364_s0 + $0x20] sm:$0xff] }
   0xb   :  { %v1049_v26 = vld [vmem:[%s1363_s1 + $0x30] sm:$0xff]   ;;  %v1053_v30 = vld [vmem:[%s1363_s1 + $0x38] sm:$0xff]   ;;  %v19_v34 = vld [vmem:[%s1364_s0 + $0x8] sm:$0xff]  ;;  %v829_v35 = vcombine.low %v18_v32, %v22_v33  ;;  %v830_v36 = vcombine.high %v18_v32, %v22_v33 }
   0xc   :  { %916 = vmatpush3.bf16.msra.mxu0 %v1033_v10  ;;  %v1050_v27 = vld [vmem:[%s1363_s1 + $0xb0] sm:$0xff]   ;;  %v1054_v31 = vld [vmem:[%s1363_s1 + $0xb8] sm:$0xff]   ;;  %v23_v37 = vld [vmem:[%s1364_s0 + $0x28] sm:$0xff] }
   0xd   :  { %944 = vmatpush3.bf16.msra.mxu1 %v1034_v11  ;;  %917 = vmatprep.subr.bf16.mxu0 %v1035_v12  ;;  %v831_v38 = vcombine.low %v19_v34, %v23_v37  ;;  %v832_v39 = vcombine.high %v19_v34, %v23_v37  ;;  %v1055_v40 = vld [vmem:[%s1363_s1 + $0x140] sm:$0xff]   ;;  %v1059_v44 = vld [vmem:[%s1363_s1 + $0x148] sm:$0xff]   ;;  %v1063_v48 = vld [vmem:[%s1363_s1 + $0x150] sm:$0xff]  }
   0xe   :  { %945 = vmatprep.subr.bf16.mxu1 %v1036_v13  ;;  %642 = vmatprep.mubr.bf16.mxu0 %v830_v36  ;;  %v1056_v41 = vld [vmem:[%s1363_s1 + $0x1c0] sm:$0xff]   ;;  %v1060_v45 = vld [vmem:[%s1363_s1 + $0x1c8] sm:$0xff]   ;;  %v1064_v49 = vld [vmem:[%s1363_s1 + $0x1d0] sm:$0xff]  }
   0xf   :  { %690 = vmatprep.mubr.bf16.mxu1 %v832_v39  ;;  %v1057_v42 = vld [vmem:[%s1363_s1 + $0x100] sm:$0xff]   ;;  %v1061_v46 = vld [vmem:[%s1363_s1 + $0x108] sm:$0xff]   ;;  %v1065_v50 = vld [vmem:[%s1363_s1 + $0x110] sm:$0xff]  }
  0x10   :  { %918 = vmatpush3.bf16.msra.mxu0 %v1037_v14  ;;  %v1058_v43 = vld [vmem:[%s1363_s1 + $0x180] sm:$0xff]   ;;  %v1062_v47 = vld [vmem:[%s1363_s1 + $0x188] sm:$0xff]   ;;  %v1066_v51 = vld [vmem:[%s1363_s1 + $0x190] sm:$0xff]  }
  0x11   :  { %946 = vmatpush3.bf16.msra.mxu1 %v1038_v15  ;;  %919 = vmatprep.subr.bf16.mxu0 %v1039_v16  ;;  %v1067_v52 = vld [vmem:[%s1363_s1 + $0x158] sm:$0xff]   ;;  %v1071_v56 = vld [vmem:[%s1363_s1 + $0x160] sm:$0xff]   ;;  %v1076_v62 = vld [vmem:[%s1363_s1 + $0x168] sm:$0xff]  }
  0x12   :  { %947 = vmatprep.subr.bf16.mxu1 %v1040_v17  ;;  %v1068_v53 = vld [vmem:[%s1363_s1 + $0x1d8] sm:$0xff]   ;;  %v1072_v57 = vld [vmem:[%s1363_s1 + $0x1e0] sm:$0xff]   ;;  %v1077_v0 = vld [vmem:[%s1363_s1 + $0x1e8] sm:$0xff]  }
  0x13   :  { %v1069_v54 = vld [vmem:[%s1363_s1 + $0x118] sm:$0xff]   ;;  %v1073_v58 = vld [vmem:[%s1363_s1 + $0x120] sm:$0xff]   ;;  %v1079_v1 = vld [vmem:[%s1363_s1 + $0x128] sm:$0xff]  }
  0x14   :  { %920 = vmatpush3.bf16.msra.mxu0 %v1041_v18  ;;  %v1070_v55 = vld [vmem:[%s1363_s1 + $0x198] sm:$0xff]   ;;  %v1074_v59 = vld [vmem:[%s1363_s1 + $0x1a0] sm:$0xff]   ;;  %v1080_v2 = vld [vmem:[%s1363_s1 + $0x1a8] sm:$0xff]  }
  0x15   :  { %948 = vmatpush3.bf16.msra.mxu1 %v1042_v19  ;;  %921 = vmatprep.subr.bf16.mxu0 %v1043_v20  ;;  %v26_v60 = vld [vmem:[%s1364_s0 + $0x40] sm:$0xff]  ;;  %v27_v3 = vld [vmem:[%s1364_s0 + $0x48] sm:$0xff]  ;;  %v1083_v6 = vld [vmem:[%s1363_s1 + $0x170] sm:$0xff]  }
  0x16   :  { %949 = vmatprep.subr.bf16.mxu1 %v1044_v21  ;;  %v838_v61 = vcombine.high %v26_v60, %v26_v60  ;;  %v837_v63 = vcombine.low %v26_v60, %v26_v60  ;;  %v840_v4 = vcombine.high %v27_v3, %v27_v3  ;;  %v839_v5 = vcombine.low %v27_v3, %v27_v3  ;;  %v1084_v7 = vld [vmem:[%s1363_s1 + $0x1f0] sm:$0xff]   ;;  %v1087_v10 = vld [vmem:[%s1363_s1 + $0x178] sm:$0xff]  }
  0x17   :  { %v1085_v8 = vld [vmem:[%s1363_s1 + $0x130] sm:$0xff]   ;;  %v1088_v11 = vld [vmem:[%s1363_s1 + $0x1f8] sm:$0xff]  }
  0x18   :  { %922 = vmatpush3.bf16.msra.mxu0 %v1045_v22  ;;  %v1086_v9 = vld [vmem:[%s1363_s1 + $0x1b0] sm:$0xff]   ;;  %v1089_v12 = vld [vmem:[%s1363_s1 + $0x138] sm:$0xff]  }
  0x19   :  { %950 = vmatpush3.bf16.msra.mxu1 %v1046_v23  ;;  %923 = vmatprep.subr.bf16.mxu0 %v1047_v24  ;;  %v1090_v13 = vld [vmem:[%s1363_s1 + $0x1b8] sm:$0xff]   ;;  %v20_v14 = vld [vmem:[%s1364_s0 + $0x10] sm:$0xff] }
  0x1a   :  { %951 = vmatprep.subr.bf16.mxu1 %v1048_v25  ;;  %v24_v15 = vld [vmem:[%s1364_s0 + $0x30] sm:$0xff]  ;;  %v21_v16 = vld [vmem:[%s1364_s0 + $0x18] sm:$0xff] }
  0x1b   :  { %v833_v17 = vcombine.low %v20_v14, %v24_v15  ;;  %v834_v18 = vcombine.high %v20_v14, %v24_v15  ;;  %v25_v19 = vld [vmem:[%s1364_s0 + $0x38] sm:$0xff]  ;;  %v28_v20 = vld [vmem:[%s1364_s0 + $0x50] sm:$0xff] }
  0x1c   :  { %924 = vmatpush3.bf16.msra.mxu0 %v1049_v26  ;;  %v29_v21 = vld [vmem:[%s1364_s0 + $0x58] sm:$0xff]  ;;  %v835_v22 = vcombine.low %v21_v16, %v25_v19  ;;  %v836_v23 = vcombine.high %v21_v16, %v25_v19  ;;  %v842_v24 = vcombine.high %v28_v20, %v28_v20  ;;  %v841_v26 = vcombine.low %v28_v20, %v28_v20 }
  0x1d   :  { %952 = vmatpush3.bf16.msra.mxu1 %v1050_v27  ;;  %925 = vmatprep.subr.bf16.mxu0 %v1051_v28  ;;  %v844_v25 = vcombine.high %v29_v21, %v29_v21  ;;  %v843_v27 = vcombine.low %v29_v21, %v29_v21 }
  0x1e   :  { %953 = vmatprep.subr.bf16.mxu1 %v1052_v29 }
  0x20   :  { %926 = vmatpush3.bf16.msra.mxu0 %v1053_v30 }
  0x21   :  { %954 = vmatpush3.bf16.msra.mxu1 %v1054_v31  ;;  %967 = vmatprep.subr.bf16.mxu0 %v1055_v40 }
  0x22   :  { %995 = vmatprep.subr.bf16.mxu1 %v1056_v41 }
  0x23   :  { %643 = vmatmul.mubr.bf16.vlgmr.msra.gmra.mrb[0].mxu0 %v829_v35 }
  0x24   :  { %691 = vmatmul.mubr.bf16.vlgmr.msra.gmra.mrb[0].mxu1 %v831_v38  ;;  %968 = vmatpush3.bf16.msra.mxu0 %v1057_v42 }
  0x25   :  { %996 = vmatpush3.bf16.msra.mxu1 %v1058_v43  ;;  %969 = vmatprep.subr.bf16.mxu0 %v1059_v44 }
  0x26   :  { %997 = vmatprep.subr.bf16.mxu1 %v1060_v45  ;;  %650 = vmatprep.mubr.bf16.mxu0 %v838_v61 }
  0x27   :  { %698 = vmatprep.mubr.bf16.mxu1 %v840_v4 }
  0x28   :  { %970 = vmatpush3.bf16.msra.mxu0 %v1061_v46 }
  0x29   :  { %998 = vmatpush3.bf16.msra.mxu1 %v1062_v47  ;;  %971 = vmatprep.subr.bf16.mxu0 %v1063_v48 }
  0x2a   :  { %999 = vmatprep.subr.bf16.mxu1 %v1064_v49 }
  0x2b   :  { %651 = vmatmul.mubr.bf16.gmra.mrb[4].mxu0 %v837_v63 }
  0x2c   :  { %972 = vmatpush3.bf16.msra.mxu0 %v1065_v50  ;;  %699 = vmatmul.mubr.bf16.gmra.mrb[4].mxu1 %v839_v5  ;;  %v910_v5 = vld [vmem:[%s1366_s3] ss:$0 sm:$0xff] }
  0x2d   :  { %1000 = vmatpush3.bf16.msra.mxu1 %v1066_v51  ;;  %973 = vmatprep.subr.bf16.mxu0 %v1067_v52 }
  0x2e   :  { %1001 = vmatprep.subr.bf16.mxu1 %v1068_v53  ;;  %738 = vmatprep.mubr.bf16.mxu0 %v834_v18 }
  0x2f   :  { %786 = vmatprep.mubr.bf16.mxu1 %v836_v23 }
  0x30   :  { %974 = vmatpush3.bf16.msra.mxu0 %v1069_v54 }
  0x31   :  { %1002 = vmatpush3.bf16.msra.mxu1 %v1070_v55  ;;  %975 = vmatprep.subr.bf16.mxu0 %v1071_v56 }
  0x32   :  { %1003 = vmatprep.subr.bf16.mxu1 %v1072_v57 }
  0x34   :  { %976 = vmatpush3.bf16.msra.mxu0 %v1073_v58 }
  0x35   :  { %1004 = vmatpush3.bf16.msra.mxu1 %v1074_v59  ;;  %977 = vmatprep.subr.bf16.mxu0 %v1076_v62 }
  0x36   :  { %1005 = vmatprep.subr.bf16.mxu1 %v1077_v0 }
  0x38   :  { %978 = vmatpush3.bf16.msra.mxu0 %v1079_v1  ;;  %v909_v1 = vld [vmem:[%s1365_s2] ss:$0 sm:$0xff] }
  0x39   :  { %1006 = vmatpush3.bf16.msra.mxu1 %v1080_v2  ;;  %979 = vmatprep.subr.bf16.mxu0 %v1083_v6 }
  0x3a   :  { %1007 = vmatprep.subr.bf16.mxu1 %v1084_v7 }
  0x3c   :  { %980 = vmatpush3.bf16.msra.mxu0 %v1085_v8 }
  0x3d   :  { %1008 = vmatpush3.bf16.msra.mxu1 %v1086_v9  ;;  %981 = vmatprep.subr.bf16.mxu0 %v1087_v10 }
  0x3e   :  { %1009 = vmatprep.subr.bf16.mxu1 %v1088_v11 }
  0x40   :  { %982 = vmatpush3.bf16.msra.mxu0 %v1089_v12 }
  0x41   :  { %1010 = vmatpush3.bf16.msra.mxu1 %v1090_v13 }
  0x43   :  { %739 = vmatmul.mubr.bf16.vlgmr.msra.gmra.mrb[8].mxu0 %v833_v17 }
  0x44   :  { %787 = vmatmul.mubr.bf16.vlgmr.msra.gmra.mrb[8].mxu1 %v835_v22  ;;  %746 = vmatprep.mubr.bf16.mxu0 %v842_v24 }
  0x45   :  { %794 = vmatprep.mubr.bf16.mxu1 %v844_v25 }
  0x4b   :  { %747 = vmatmul.mubr.bf16.gmra.mrb[12].mxu0 %v841_v26 }
  0x4c   :  { %795 = vmatmul.mubr.bf16.gmra.mrb[12].mxu1 %v843_v27 }
  0xf6   :  { %v927_v28 = vpop.f32.mrb[0].mxu0 }
  0xf7   :  { %v955_v29 = vpop.f32.mrb[0].mxu1  ;;  %v928_v30 = vpop.f32.mrb[1].mxu0 }
  0xf8   :  { %v929_v31 = vadd.f32 %v928_v30, %v927_v28  ;;  %v956_v32 = vpop.f32.mrb[1].mxu1  ;;  %v930_v33 = vpop.f32.mrb[2].mxu0 }
  0xf9   :  { %v957_v34 = vadd.f32 %v956_v32, %v955_v29  ;;  %v958_v35 = vpop.f32.mrb[2].mxu1  ;;  %v931_v36 = vpop.f32.mrb[3].mxu0 }
  0xfa   :  { %v932_v37 = vadd.f32 %v931_v36, %v930_v33  ;;  %v959_v38 = vpop.f32.mrb[3].mxu1 }
  0xfb   :  { %v693_v39 = vadd.f32 %v957_v34, %v929_v31  ;;  %v960_v40 = vadd.f32 %v959_v38, %v958_v35 }
  0xfd   :  { %v696_v41 = vadd.f32 %v960_v40, %v932_v37 }
  0xfe   :  { %v933_v42 = vpop.f32.mrb[4].mxu0 }
  0xff   :  { %v934_v43 = vpop.f32.mrb[5].mxu0  ;;  %v961_v47 = vpop.f32.mrb[4].mxu1 }
 0x100   :  { %v935_v44 = vadd.f32 %v934_v43, %v933_v42  ;;  %v936_v45 = vpop.f32.mrb[6].mxu0  ;;  %v962_v48 = vpop.f32.mrb[5].mxu1 }
 0x101   :  { %v937_v46 = vpop.f32.mrb[7].mxu0  ;;  %v963_v49 = vadd.f32 %v962_v48, %v961_v47  ;;  %v964_v50 = vpop.f32.mrb[6].mxu1 }
 0x102   :  { %v965_v51 = vpop.f32.mrb[7].mxu1 }
 0x103   :  { %v701_v52 = vadd.f32 %v963_v49, %v935_v44 }
 0x116   :  { %v983_v53 = vpop.f32.mrb[8].mxu0 }
 0x117   :  { %v1011_v54 = vpop.f32.mrb[8].mxu1  ;;  %v984_v55 = vpop.f32.mrb[9].mxu0 }
 0x118   :  { %v985_v56 = vadd.f32 %v984_v55, %v983_v53  ;;  %v1012_v57 = vpop.f32.mrb[9].mxu1  ;;  %v986_v58 = vpop.f32.mrb[10].mxu0 }
 0x119   :  { %v1013_v59 = vadd.f32 %v1012_v57, %v1011_v54  ;;  %v1014_v60 = vpop.f32.mrb[10].mxu1  ;;  %v987_v61 = vpop.f32.mrb[11].mxu0 }
 0x11a   :  { %v741_v62 = vadd.f32 %v985_v56, %v693_v39  ;;  %v988_v63 = vadd.f32 %v987_v61, %v986_v58  ;;  %v1015_v0 = vpop.f32.mrb[11].mxu1 }
 0x11b   :  { %v1016_v2 = vadd.f32 %v1015_v0, %v1014_v60 }
 0x11c   :  { %v789_v3 = vadd.f32 %v1013_v59, %v741_v62  ;;  %v744_v4 = vadd.f32 %v988_v63, %v696_v41 }
 0x11e   :  { %v809_v6 = vmul.f32 %v909_v1, %v789_v3  ;;  %v792_v7 = vadd.f32 %v1016_v2, %v744_v4  ;;  %v989_v8 = vpop.f32.mrb[12].mxu0 }
 0x11f   :  { %v1017_v9 = vpop.f32.mrb[12].mxu1  ;;  %v990_v10 = vpop.f32.mrb[13].mxu0 }
 0x120   :  { %v819_v11 = vadd.f32 %v910_v5, %v809_v6  ;;  %v810_v12 = vmul.f32 %v909_v1, %v792_v7  ;;  %v991_v13 = vadd.f32 %v990_v10, %v989_v8  ;;  %v1018_v14 = vpop.f32.mrb[13].mxu1  ;;  %v992_v15 = vpop.f32.mrb[14].mxu0 }
 0x121   :  { %v1019_v16 = vadd.f32 %v1018_v14, %v1017_v9  ;;  %v1020_v17 = vpop.f32.mrb[14].mxu1  ;;  %v993_v18 = vpop.f32.mrb[15].mxu0 }
 0x122   :  { %822 = vst [vmem:[%s1367_s4] sm:$0xff] %v819_v11  ;;  %v820_v19 = vadd.f32 %v910_v5, %v810_v12  ;;  %v749_v20 = vadd.f32 %v991_v13, %v701_v52  ;;  %v1021_v21 = vpop.f32.mrb[15].mxu1 }
 0x124   :  { %823 = vst [vmem:[%s1367_s4 + $0x8] sm:$0xff] %v820_v19  ;;  %v797_v22 = vadd.f32 %v1019_v16, %v749_v20 }
 0x126   :  { %v811_v23 = vmul.f32 %v909_v1, %v797_v22 }
 0x128   :  { %v821_v24 = vadd.f32 %v910_v5, %v811_v23 }
 0x12a   :  { %824 = vst [vmem:[%s1367_s4 + $0x10] sm:$0xff] %v821_v24 }

// kernel: resnet_forward.7
= control target key start
LH: loop header
LB: loop body
LE: loop exit
PB: predicated region body
PF: predicated region fallthrough
CT: control target
= control target key end

     0   :  { %15 = vsyncpa [#allocation5], 0  ;;  %s3057_s13 = smov 0   ;;  %s3321_s0 = inlined_call_operand.vmem [shape: f32[50,128], index: 0, kind: input, shape index: {}]   ;;  %s3322_s1 = inlined_call_operand.vmem [shape: bf16[12,9,128,128], index: 1, kind: input, shape index: {}]   ;;  %s3323_s2 = inlined_call_operand.vmem [shape: f32[12,1,128], index: 2, kind: input, shape index: {}]   ;;  %s3324_s3 = inlined_call_operand.vmem [shape: f32[12,1,128], index: 3, kind: input, shape index: {}]   ;;  %s3325_s4 = inlined_call_operand.vmem [shape: f32[50,1], index: 4, kind: input, shape index: {}]   ;;  %s3326_s5 = inlined_call_operand.vmem [shape: f32[2,50], index: 5, kind: input, shape index: {}]   ;;  %s3327_s6 = inlined_call_operand.vmem [shape: f32[1,128], index: 6, kind: input, shape index: {}]   ;;  %s3328_s7 = inlined_call_operand.vmem [shape: f32[1,128], index: 7, kind: input, shape index: {}]   ;;  %s3329_s8 = inlined_call_operand.vmem [shape: f32[128,128], index: 8, kind: input, shape index: {}]   ;;  %s3330_s9 = inlined_call_operand.vmem [shape: f32[1,128], index: 9, kind: input, shape index: {}]   ;;  %s3331_s10 = inlined_call_operand.hbm [shape: f32[2,128], index: 10, kind: output, shape index: {}]  }
   0x1 LB: > { %s3063_s14 = sadd.s32 4294967295, %s2994_s13   ;;  %p2132_p0 = scmp.ge.s32.totalorder %s2994_s13, 1  ;;  %s2994_s13 = sphi %s3057_s13, %s21_s13  }
   0x2   : > { %p324_p1 = scmp.lt.s32.totalorder %s2994_s13, 13 }
   0x4   : > { %p325_p2 = pnand %p2132_p0, %p324_p1 }
   0x5   : > { %p363_p3 = scmp.lt.s32.totalorder (!%p325_p2), %s3063_s14, 11  ;;  %p2134_p4 = scmp.ne.s32.totalorder (!%p325_p2), %s3063_s14, 0 }
   0x6   : > { %328 = sbr.rel (%p325_p2) target bundleno = 902 (0x386), region = 60 }
   0xd   : > { %s3069_s15 = scalar_select %p363_p3, %s3063_s14, 11 }
   0xe   : > { %378 = sbr.rel (%p2134_p4) target bundleno = 23 (0x17), region = 64  ;;  %v387_v0 = vld [vmem:[%s3321_s0] sm:$0xff] (!%p2134_p4)  ;;  %v388_v1 = vld [vmem:[%s3321_s0 + $0x8] sm:$0xff] (!%p2134_p4)  ;;  %v389_v2 = vld [vmem:[%s3321_s0 + $0x10] sm:$0xff] (!%p2134_p4)  ;;  %v2996_v3 = vmov (!%p2134_p4), 0.0  }
   0xf   : > { %s2863_s16 = smul.u32 576, %s3069_s15  ;;  %s370_s19 = scalar_lea.vmem %s3323_s2, %s3069_s15  ;;  %379 = vst [vmem:[#allocation2] sm:$0xff] (!%p2134_p4), %v2996_v3  ;;  %380 = vst [vmem:[#allocation2 + $0x8] sm:$0xff] (!%p2134_p4), %v2996_v3  ;;  %v390_v4 = vld [vmem:[%s3321_s0 + $0x18] sm:$0xff] (!%p2134_p4)  ;;  %v391_v5 = vld [vmem:[%s3321_s0 + $0x20] sm:$0xff] (!%p2134_p4) }
  0x10   : > { %s373_s22 = scalar_lea.vmem %s3324_s3, %s3069_s15  ;;  %381 = vst [vmem:[#allocation2 + $0x10] sm:$0xff] (!%p2134_p4), %v2996_v3  ;;  %382 = vst [vmem:[#allocation2 + $0x18] sm:$0xff] (!%p2134_p4), %v2996_v3  ;;  %v392_v6 = vld [vmem:[%s3321_s0 + $0x28] sm:$0xff] (!%p2134_p4)  ;;  %v393_v7 = vld [vmem:[%s3321_s0 + $0x30] sm:$0x3] (!%p2134_p4) }
  0x11   : > { %s3083_s25 = scalar_lea.vmem %s3322_s1, %s2863_s16  ;;  %383 = vst [vmem:[#allocation2 + $0x20] sm:$0xff] (!%p2134_p4), %v2996_v3  ;;  %384 = vst [vmem:[#allocation2 + $0x28] sm:$0xff] (!%p2134_p4), %v2996_v3 }
  0x12   : > { %385 = vst [vmem:[#allocation2 + $0x30] sm:$0xff] (!%p2134_p4), %v2996_v3  ;;  %386 = vst [vmem:[#allocation2 + $0x38] sm:$0x3f] (!%p2134_p4), %v2996_v3 }
  0x13   : > { %394 = vst [vmem:[#allocation2 + $0x6] sm:$0xff] (!%p2134_p4), %v387_v0  ;;  %395 = vst [vmem:[#allocation2 + $0xe] sm:$0xff] (!%p2134_p4), %v388_v1 }
  0x14   : > { %396 = vst [vmem:[#allocation2 + $0x16] sm:$0xff] (!%p2134_p4), %v389_v2  ;;  %397 = vst [vmem:[#allocation2 + $0x1e] sm:$0xff] (!%p2134_p4), %v390_v4 }
  0x15   : > { %398 = vst [vmem:[#allocation2 + $0x26] sm:$0xff] %v391_v5  ;;  %399 = vst [vmem:[#allocation2 + $0x2e] sm:$0xff] %v392_v6 }
  0x16   : > { %400 = vst [vmem:[#allocation2 + $0x36] sm:$0x3] %v393_v7 }
  0x17 PF: > { %p401_p5 = scmp.lt.s32.totalorder %s3063_s14, 0  ;;  %s402_s26 = ssub.s32 0, %s3063_s14 }
  0x18   : > { %s2135_s27 = smin.u32 %s3063_s14, %s402_s26 }
  0x19   : > { %s404_s28 = sand.u32 1, %s2135_s27  }
  0x1a   : > { %s405_s29 = ssub.s32 0, %s404_s28 }
  0x1b   : > { %s3333_s29 = smov (!%p401_p5, %s405_s29), %s404_s28 }
  0x1c   : > { %p2137_p6 = scmp.lt.s32.totalorder %s3333_s29, 0  ;;  %s411_s30 = sadd.s32 2, %s3333_s29 }
  0x1e   : > { %s3335_s30 = smov (!%p2137_p6, %s411_s30), %s3333_s29 }
  0x1f   : > { %p2138_p7 = scmp.ne.s32.totalorder %s3335_s30, 0 }
  0x20   : > { %v417_v8 = vld [vmem:[#allocation2 + $0x6] sm:$0xff] (!%p2138_p7)  ;;  %v418_v9 = vld [vmem:[#allocation2 + $0xe] sm:$0xff] (!%p2138_p7)  ;;  %v419_v10 = vld [vmem:[#allocation2 + $0x16] sm:$0xff] (!%p2138_p7) }
  0x21   : > { %416 = sbr.rel (%p2138_p7) target bundleno = 40 (0x28), region = 68  ;;  %424 = vst [vmem:[#allocation3] sm:$0xff] (!%p2138_p7), %v417_v8  ;;  %425 = vst [vmem:[#allocation3 + $0x8] sm:$0xff] (!%p2138_p7), %v418_v9  ;;  %v420_v11 = vld [vmem:[#allocation2 + $0x1e] sm:$0xff] (!%p2138_p7)  ;;  %v421_v12 = vld [vmem:[#allocation2 + $0x26] sm:$0xff] (!%p2138_p7) }
  0x22   : > { %426 = vst [vmem:[#allocation3 + $0x10] sm:$0xff] (!%p2138_p7), %v419_v10  ;;  %v422_v13 = vld [vmem:[#allocation2 + $0x2e] sm:$0xff] (!%p2138_p7)  ;;  %427 = vst [vmem:[#allocation3 + $0x18] sm:$0xff] (!%p2138_p7), %v420_v11  ;;  %v423_v14 = vld [vmem:[#allocation2 + $0x36] sm:$0x3] (!%p2138_p7) }
  0x23   : > { %428 = vst [vmem:[#allocation3 + $0x20] sm:$0xff] (!%p2138_p7), %v421_v12  ;;  %429 = vst [vmem:[#allocation3 + $0x28] sm:$0xff] (!%p2138_p7), %v422_v13 }
  0x24   : > { %430 = vst [vmem:[#allocation3 + $0x30] sm:$0x3] (!%p2138_p7), %v423_v14 }
  0x28 PF: > { %v2886_v15 = vld [vmem:[%s3083_s25 + $0x40] sm:$0xff]   ;;  %v2888_v17 = vld [vmem:[%s3083_s25 + $0x48] sm:$0xff]   ;;  %v2890_v19 = vld [vmem:[%s3083_s25 + $0x50] sm:$0xff]   ;;  %v2997_v61 = vmov 0   ;;  %p2341_p8 = scmp.ne.s32.totalorder %s3063_s14, 11 }
  0x29   : > { %v2887_v16 = vld [vmem:[%s3083_s25 + $0x100] sm:$0xff]   ;;  %2484 = vmatprep.subr.bf16.mxu1 %v2886_v15  ;;  %v2889_v18 = vld [vmem:[%s3083_s25 + $0x108] sm:$0xff]   ;;  %v2891_v20 = vld [vmem:[%s3083_s25 + $0x110] sm:$0xff]   ;;  %2884 = vset.pattern.permute.xlu0 %v2997_v61  ;;  %vm2999_vm0 = vmmov (!%p2341_p8), 0   ;;  %vm1897_vm1 = vcmask (!%p2341_p8), 1041408   ;;  %vm1893_vm2 = vcmask (!%p2341_p8), 408576  }
  0x2a   : > { %2580 = vmatprep.subr.bf16.mxu0 %v2887_v16  ;;  %2485 = vmatpush3.bf16.msra.mxu1 %v2886_v15  ;;  %v2892_v21 = vld [vmem:[%s3083_s25 + $0x58] sm:$0xff]   ;;  %v2894_v23 = vld [vmem:[%s3083_s25 + $0x60] sm:$0xff]   ;;  %v2896_v25 = vld [vmem:[%s3083_s25 + $0x68] sm:$0xff]  }
  0x2b   : > { %2581 = vmatpush3.bf16.msra.mxu0 %v2887_v16  ;;  %2486 = vmatprep.subr.bf16.mxu1 %v2888_v17  ;;  %v2893_v22 = vld [vmem:[%s3083_s25 + $0x118] sm:$0xff]   ;;  %v2895_v24 = vld [vmem:[%s3083_s25 + $0x120] sm:$0xff]   ;;  %v459_v27 = vld [vmem:[#allocation2 + $0x9] sm:$0xff] }
  0x2c   : > { %2582 = vmatprep.subr.bf16.mxu0 %v2889_v18  ;;  %v458_v26 = vld [vmem:[#allocation2 + $0x1] sm:$0xff]  ;;  %v1005_v31 = vld [vmem:[#allocation2 + $0xe] sm:$0xff]  ;;  %v2900_v35 = vld [vmem:[%s3083_s25 + $0x78] sm:$0xff]   ;;  %2885 = vset.pattern.permute.xlu1 %v2997_v61 }
  0x2d   : > { %v2897_v28 = vld [vmem:[%s3083_s25 + $0x128] sm:$0xff]   ;;  %v465_v29 = vpack.c.bf16 %v459_v27, %v458_v26  ;;  %v2898_v33 = vld [vmem:[%s3083_s25 + $0x70] sm:$0xff]   ;;  %v2901_v36 = vld [vmem:[%s3083_s25 + $0x138] sm:$0xff]  }
  0x2e   : > { %2487 = vmatpush3.bf16.msra.mxu1 %v2888_v17  ;;  %v1004_v30 = vld [vmem:[#allocation2 + $0x6] sm:$0xff]  ;;  %v2899_v34 = vld [vmem:[%s3083_s25 + $0x130] sm:$0xff]   ;;  %v461_v39 = vld [vmem:[#allocation2 + $0x19] sm:$0xff] }
  0x2f   : > { %2583 = vmatpush3.bf16.msra.mxu0 %v2889_v18  ;;  %2488 = vmatprep.subr.bf16.mxu1 %v2890_v19  ;;  %v1011_v32 = vpack.c.bf16 %v1005_v31, %v1004_v30  ;;  %v460_v37 = vld [vmem:[#allocation2 + $0x11] sm:$0xff]  ;;  %v2902_v38 = vld [vmem:[%s3083_s25] sm:$0xff]   ;;  %v463_v46 = vld [vmem:[#allocation2 + $0x29] sm:$0xff] }
  0x30   : > { %2584 = vmatprep.subr.bf16.mxu0 %v2891_v20  ;;  %2500 = vmatprep.mubr.bf16.mxu1 %v465_v29  ;;  %v1006_v40 = vld [vmem:[#allocation2 + $0x16] sm:$0xff]  ;;  %v1007_v41 = vld [vmem:[#allocation2 + $0x1e] sm:$0xff]  ;;  %v466_v43 = vpack.c.bf16 %v461_v39, %v460_v37  ;;  %v2904_v47 = vld [vmem:[%s3083_s25 + $0x8] sm:$0xff]  }
  0x31   : > { %2596 = vmatprep.mubr.bf16.mxu0 %v1011_v32  ;;  %v2903_v42 = vld [vmem:[%s3083_s25 + $0x140] sm:$0xff]   ;;  %v1012_v45 = vpack.c.bf16 %v1007_v41, %v1006_v40  ;;  %v1009_v49 = vld [vmem:[#allocation2 + $0x2e] sm:$0xff]  ;;  %v1010_v55 = vld [vmem:[#allocation2 + $0x36] sm:$0x3] }
  0x32   : > { %2489 = vmatpush3.bf16.msra.mxu1 %v2890_v19  ;;  %v462_v44 = vld [vmem:[#allocation2 + $0x21] sm:$0xff]  ;;  %v464_v53 = vld [vmem:[#allocation2 + $0x31] sm:$0x3]  ;;  %v1014_v62 = vpack.c.bf16 %v1010_v55, %v1010_v55  ;;  %v2908_v0 = vld [vmem:[%s3083_s25 + $0x18] sm:$0xff]  }
  0x33   : > { %2585 = vmatpush3.bf16.msra.mxu0 %v2891_v20  ;;  %2490 = vmatprep.subr.bf16.mxu1 %v2892_v21  ;;  %v1008_v48 = vld [vmem:[#allocation2 + $0x26] sm:$0xff]  ;;  %v467_v51 = vpack.c.bf16 %v463_v46, %v462_v44  ;;  %v2906_v54 = vld [vmem:[%s3083_s25 + $0x10] sm:$0xff]   ;;  %v468_v57 = vpack.c.bf16 %v464_v53, %v464_v53  ;;  %v2909_v1 = vld [vmem:[%s3083_s25 + $0x158] sm:$0xff]  }
  0x34   : > { %2586 = vmatprep.subr.bf16.mxu0 %v2893_v22  ;;  %v2905_v50 = vld [vmem:[%s3083_s25 + $0x148] sm:$0xff]   ;;  %v1013_v52 = vpack.c.bf16 %v1009_v49, %v1008_v48  ;;  %v2907_v56 = vld [vmem:[%s3083_s25 + $0x150] sm:$0xff]   ;;  %v431_v58 = vld [vmem:[#allocation2] sm:$0xff] }
  0x35   : > { %v432_v59 = vld [vmem:[#allocation2 + $0x8] sm:$0xff]  ;;  %v2910_v4 = vld [vmem:[%s3083_s25 + $0x20] sm:$0xff]   ;;  %v2914_v8 = vld [vmem:[%s3083_s25 + $0x30] sm:$0xff]  }
  0x36   : > { %2491 = vmatpush3.bf16.msra.mxu1 %v2892_v21  ;;  %v1151_v60 = vld [vmem:[#allocation2 + $0x7] sm:$0xff]  ;;  %v1152_v63 = vld [vmem:[#allocation2 + $0xf] sm:$0xff]  ;;  %v438_v2 = vpack.c.bf16 %v432_v59, %v431_v58  ;;  %v2916_v10 = vld [vmem:[%s3083_s25 + $0x38] sm:$0xff]  }
  0x37   : > { %2587 = vmatpush3.bf16.msra.mxu0 %v2893_v22  ;;  %2492 = vmatprep.subr.bf16.mxu1 %v2894_v23  ;;  %v1158_v3 = vpack.c.bf16 %v1152_v63, %v1151_v60  ;;  %v2911_v5 = vld [vmem:[%s3083_s25 + $0x160] sm:$0xff]   ;;  %v2912_v6 = vld [vmem:[%s3083_s25 + $0x28] sm:$0xff]   ;;  %v2915_v9 = vld [vmem:[%s3083_s25 + $0x170] sm:$0xff]  }
  0x38   : > { %2588 = vmatprep.subr.bf16.mxu0 %v2895_v24  ;;  %v2913_v7 = vld [vmem:[%s3083_s25 + $0x168] sm:$0xff]   ;;  %v2917_v11 = vld [vmem:[%s3083_s25 + $0x178] sm:$0xff]   ;;  %v2918_v12 = vld [vmem:[%s3083_s25 + $0x80] sm:$0xff]  }
  0x39   : > { %v433_v13 = vld [vmem:[#allocation2 + $0x10] sm:$0xff]  ;;  %v2919_v14 = vld [vmem:[%s3083_s25 + $0x180] sm:$0xff]   ;;  %v434_v15 = vld [vmem:[#allocation2 + $0x18] sm:$0xff] }
  0x3a   : > { %2493 = vmatpush3.bf16.msra.mxu1 %v2894_v23  ;;  %v1153_v16 = vld [vmem:[#allocation2 + $0x17] sm:$0xff]  ;;  %v1154_v17 = vld [vmem:[#allocation2 + $0x1f] sm:$0xff]  ;;  %v436_v19 = vld [vmem:[#allocation2 + $0x28] sm:$0xff]  ;;  %v439_v20 = vpack.c.bf16 %v434_v15, %v433_v13 }
  0x3b   : > { %2589 = vmatpush3.bf16.msra.mxu0 %v2895_v24  ;;  %2494 = vmatprep.subr.bf16.mxu1 %v2896_v25  ;;  %v435_v18 = vld [vmem:[#allocation2 + $0x20] sm:$0xff]  ;;  %v1159_v22 = vpack.c.bf16 %v1154_v17, %v1153_v16  ;;  %v1156_v23 = vld [vmem:[#allocation2 + $0x2f] sm:$0xff]  ;;  %v1157_v31 = vld [vmem:[#allocation2 + $0x37] sm:$0x3] }
  0x3c   : > { %2590 = vmatprep.subr.bf16.mxu0 %v2897_v28  ;;  %v1155_v21 = vld [vmem:[#allocation2 + $0x27] sm:$0xff]  ;;  %v440_v26 = vpack.c.bf16 %v436_v19, %v435_v18  ;;  %v2922_v27 = vld [vmem:[%s3083_s25 + $0x90] sm:$0xff]   ;;  %v2924_v37 = vld [vmem:[%s3083_s25 + $0x98] sm:$0xff]  }
  0x3d   : > { %v2920_v24 = vld [vmem:[%s3083_s25 + $0x88] sm:$0xff]   ;;  %v2923_v29 = vld [vmem:[%s3083_s25 + $0x190] sm:$0xff]   ;;  %v2926_v41 = vld [vmem:[%s3083_s25 + $0xa0] sm:$0xff]  }
  0x3e   : > { %2495 = vmatpush3.bf16.msra.mxu1 %v2896_v25  ;;  %v2921_v25 = vld [vmem:[%s3083_s25 + $0x188] sm:$0xff]   ;;  %v437_v30 = vld [vmem:[#allocation2 + $0x30] sm:$0x3]  ;;  %v2933_v48 = vld [vmem:[%s3083_s25 + $0x1b8] sm:$0xff]  }
  0x3f   : > { %2591 = vmatpush3.bf16.msra.mxu0 %v2897_v28  ;;  %2496 = vmatprep.subr.bf16.mxu1 %v2898_v33  ;;  %v1160_v28 = vpack.c.bf16 %v1156_v23, %v1155_v21  ;;  %v710_v32 = vld [vmem:[#allocation2 + $0x2] sm:$0xff]  ;;  %v2931_v46 = vld [vmem:[%s3083_s25 + $0x1b0] sm:$0xff]   ;;  %v713_v49 = vld [vmem:[#allocation2 + $0x1a] sm:$0xff] }
  0x40   : > { %2592 = vmatprep.subr.bf16.mxu0 %v2899_v34  ;;  %v2929_v44 = vld [vmem:[%s3083_s25 + $0x1a8] sm:$0xff]   ;;  %v1799_v53 = vld [vmem:[%s3325_s4 + $0x10] sm:$0xff]  ;;  %v1800_v60 = vld [vmem:[%s3325_s4 + $0x18] sm:$0xff] }
  0x41   : > { %1816 = vperm.xlu1 %2885, %v1799_v53   ;;  %v1303_v59 = vld [vmem:[#allocation2 + $0x32] sm:$0xff]  ;;  %v2936_v61 = vld [vmem:[%s3083_s25 + $0xc8] sm:$0xff]   ;;  %v1803_v13 = vld [vmem:[%s3325_s4 + $0x30] sm:$0x3] }
  0x42   : > { %2497 = vmatpush3.bf16.msra.mxu1 %v2898_v33  ;;  %v441_v33 = vpack.c.bf16 %v437_v30, %v437_v30  ;;  %v2941_v15 = vld [vmem:[%s3083_s25 + $0x1d8] sm:$0xff]   ;;  %v2942_v18 = vld [vmem:[%s3083_s25 + $0xe0] sm:$0xff]   ;;  %v2945_v21 = vld [vmem:[%s3083_s25 + $0x1e8] sm:$0xff]  }
  0x43   : > { %2593 = vmatpush3.bf16.msra.mxu0 %v2899_v34  ;;  %2498 = vmatprep.subr.bf16.mxu1 %v2900_v35  ;;  %v711_v34 = vld [vmem:[#allocation2 + $0xa] sm:$0xff]  ;;  %v2943_v19 = vld [vmem:[%s3083_s25 + $0x1e0] sm:$0xff]  }
  0x44   : > { %2594 = vmatprep.subr.bf16.mxu0 %v2901_v36  ;;  %v717_v39 = vpack.c.bf16 %v711_v34, %v710_v32  ;;  %v2947_v23 = vld [vmem:[%s3083_s25 + $0x1f0] sm:$0xff]   ;;  %v2950_v30 = vld [vmem:[%s3083_s25 + $0x200] sm:$0xff]   ;;  %v2955_v53 = vld [vmem:[%s3083_s25 + $0x228] sm:$0xff]  }
  0x45   : > { %1821 = vperm.xlu1 %2885, %v1800_v60   ;;  %v861_v32 = vld [vmem:[#allocation2 + $0x25] sm:$0xff] }
  0x46   : > { %2499 = vmatpush3.bf16.msra.mxu1 %v2900_v35  ;;  %v1161_v35 = vpack.c.bf16 %v1157_v31, %v1157_v31 }
  0x47   : > { %2595 = vmatpush3.bf16.msra.mxu0 %v2901_v36  ;;  %2508 = vmatprep.subr.bf16.mxu1 %v2902_v38  ;;  %v1299_v36 = vld [vmem:[#allocation2 + $0x12] sm:$0xff] }
  0x48   : > { %2604 = vmatprep.subr.bf16.mxu0 %v2903_v42  ;;  %v1305_v40 = vpack.c.bf16 %v1299_v36, %v711_v34  ;;  %v718_v55 = vpack.c.bf16 %v713_v49, %v1299_v36  ;;  %v1450_v36 = vld [vmem:[#allocation2 + $0x33] sm:$0xff] }
  0x49   : > { %2501 = vmatmul.mubr.bf16.vlgmr.msra.gmra.mrb[0].mxu1 %v466_v43  ;;  %v2928_v43 = vld [vmem:[%s3083_s25 + $0xa8] sm:$0xff]  }
  0x4a   : > { %2509 = vmatpush3.bf16.msra.mxu1 %v2902_v38  ;;  %2597 = vmatmul.mubr.bf16.vlgmr.msra.gmra.mrb[0].mxu0 %v1012_v45  ;;  %v2925_v38 = vld [vmem:[%s3083_s25 + $0x198] sm:$0xff]   ;;  %v2930_v45 = vld [vmem:[%s3083_s25 + $0xb0] sm:$0xff]  }
  0x4b   : > { %2605 = vmatpush3.bf16.msra.mxu0 %v2903_v42  ;;  %2510 = vmatprep.subr.bf16.mxu1 %v2904_v47  ;;  %v2927_v42 = vld [vmem:[%s3083_s25 + $0x1a0] sm:$0xff]  }
  0x4c   : > { %2606 = vmatprep.subr.bf16.mxu0 %v2905_v50  ;;  %2504 = vmatprep.mubr.bf16.mxu1 %v467_v51  ;;  %v2934_v51 = vld [vmem:[%s3083_s25 + $0xc0] sm:$0xff]  }
  0x4d   : > { %2600 = vmatprep.mubr.bf16.mxu0 %v1013_v52  ;;  %v1301_v52 = vld [vmem:[#allocation2 + $0x22] sm:$0xff] }
  0x4e   : > { %2511 = vmatpush3.bf16.msra.mxu1 %v2904_v47  ;;  %v2932_v47 = vld [vmem:[%s3083_s25 + $0xb8] sm:$0xff]   ;;  %v1306_v58 = vpack.c.bf16 %v1301_v52, %v713_v49 }
  0x4f   : > { %2607 = vmatpush3.bf16.msra.mxu0 %v2905_v50  ;;  %2512 = vmatprep.subr.bf16.mxu1 %v2906_v54  ;;  %v1797_v50 = vld [vmem:[%s3325_s4] sm:$0xff]  ;;  %v2953_v49 = vld [vmem:[%s3083_s25 + $0x218] sm:$0xff]  }
  0x50   : > { %2608 = vmatprep.subr.bf16.mxu0 %v2907_v56  ;;  %1806 = vperm.xlu0 %2884, %v1797_v50  }
  0x51   : > { %2505 = vmatmul.mubr.bf16.gmra.mrb[4].mxu1 %v468_v57  ;;  %v1798_v57 = vld [vmem:[%s3325_s4 + $0x8] sm:$0xff] }
  0x52   : > { %2513 = vmatpush3.bf16.msra.mxu1 %v2906_v54  ;;  %2601 = vmatmul.mubr.bf16.gmra.mrb[4].mxu0 %v1014_v62  ;;  %v2935_v54 = vld [vmem:[%s3083_s25 + $0x1c0] sm:$0xff]   ;;  %v2937_v62 = vld [vmem:[%s3083_s25 + $0x1c8] sm:$0xff]  }
  0x53   : > { %2609 = vmatpush3.bf16.msra.mxu0 %v2907_v56  ;;  %2514 = vmatprep.subr.bf16.mxu1 %v2908_v0  ;;  %v715_v56 = vld [vmem:[#allocation2 + $0x2a] sm:$0xff] }
  0x54   : > { %2610 = vmatprep.subr.bf16.mxu0 %v2909_v1  ;;  %2524 = vmatprep.mubr.bf16.mxu1 %v438_v2  ;;  %v719_v63 = vpack.c.bf16 %v715_v56, %v1301_v52  ;;  %v1801_v2 = vld [vmem:[%s3325_s4 + $0x20] sm:$0xff] }
  0x55   : > { %2620 = vmatprep.mubr.bf16.mxu0 %v1158_v3  ;;  %1811 = vperm.xlu0 %2884, %v1798_v57   ;;  %v2938_v3 = vld [vmem:[%s3083_s25 + $0xd0] sm:$0xff]   ;;  %v2954_v52 = vld [vmem:[%s3083_s25 + $0x220] sm:$0xff]  }
  0x56   : > { %2515 = vmatpush3.bf16.msra.mxu1 %v2908_v0  ;;  %v1307_v0 = vpack.c.bf16 %v1303_v59, %v715_v56  ;;  %v1598_v56 = vld [vmem:[#allocation2 + $0x3c] sm:$0x3] }
  0x57   : > { %2611 = vmatpush3.bf16.msra.mxu0 %v2909_v1  ;;  %2516 = vmatprep.subr.bf16.mxu1 %v2910_v4  ;;  %v716_v1 = vld [vmem:[#allocation2 + $0x32] sm:$0x3]  ;;  %v1594_v57 = vld [vmem:[#allocation2 + $0x1c] sm:$0xff]  ;;  %v1602_v59 = vpack.c.bf16 %v1598_v56, %v1598_v56 }
  0x58   : > { %2612 = vmatprep.subr.bf16.mxu0 %v2911_v5 }
  0x59   : > { %1826 = vperm.xlu0 %2884, %v1801_v2  }
  0x5a   : > { %2517 = vmatpush3.bf16.msra.mxu1 %v2910_v4  ;;  %v1304_v4 = vld [vmem:[#allocation2 + $0x3a] sm:$0x3] }
  0x5b   : > { %2613 = vmatpush3.bf16.msra.mxu0 %v2911_v5  ;;  %2518 = vmatprep.subr.bf16.mxu1 %v2912_v6  ;;  %v1802_v5 = vld [vmem:[%s3325_s4 + $0x28] sm:$0xff] }
  0x5c   : > { %2614 = vmatprep.subr.bf16.mxu0 %v2913_v7  ;;  %1831 = vperm.xlu1 %2885, %v1802_v5  }
  0x5d   : > { %1836 = vperm.xlu0 %2884, %v1803_v13  }
  0x5e   : > { %2519 = vmatpush3.bf16.msra.mxu1 %v2912_v6  ;;  %v2939_v6 = vld [vmem:[%s3083_s25 + $0x1d0] sm:$0xff]  }
  0x5f   : > { %2615 = vmatpush3.bf16.msra.mxu0 %v2913_v7  ;;  %2520 = vmatprep.subr.bf16.mxu1 %v2914_v8  ;;  %v720_v7 = vpack.c.bf16 %v716_v1, %v716_v1 }
  0x60   : > { %2616 = vmatprep.subr.bf16.mxu0 %v2915_v9 }
  0x62   : > { %2521 = vmatpush3.bf16.msra.mxu1 %v2914_v8  ;;  %v857_v8 = vld [vmem:[#allocation2 + $0x5] sm:$0xff] }
  0x63   : > { %2617 = vmatpush3.bf16.msra.mxu0 %v2915_v9  ;;  %2522 = vmatprep.subr.bf16.mxu1 %v2916_v10  ;;  %v858_v9 = vld [vmem:[#allocation2 + $0xd] sm:$0xff] }
  0x64   : > { %2618 = vmatprep.subr.bf16.mxu0 %v2917_v11  ;;  %v864_v16 = vpack.c.bf16 %v858_v9, %v857_v8 }
  0x66   : > { %2523 = vmatpush3.bf16.msra.mxu1 %v2916_v10  ;;  %v1308_v10 = vpack.c.bf16 %v1304_v4, %v1304_v4 }
  0x67   : > { %2619 = vmatpush3.bf16.msra.mxu0 %v2917_v11  ;;  %2532 = vmatprep.subr.bf16.mxu1 %v2918_v12  ;;  %v1445_v11 = vld [vmem:[#allocation2 + $0xb] sm:$0xff] }
  0x68   : > { %2628 = vmatprep.subr.bf16.mxu0 %v2919_v14 }
  0x69   : > { %2525 = vmatmul.mubr.bf16.vlgmr.msra.gmra.mrb[0].mxu1 %v439_v20  ;;  %v2944_v20 = vld [vmem:[%s3083_s25 + $0xe8] sm:$0xff]  }
  0x6a   : > { %2533 = vmatpush3.bf16.msra.mxu1 %v2918_v12  ;;  %2621 = vmatmul.mubr.bf16.vlgmr.msra.gmra.mrb[0].mxu0 %v1159_v22  ;;  %v1446_v12 = vld [vmem:[#allocation2 + $0x13] sm:$0xff] }
  0x6b   : > { %2629 = vmatpush3.bf16.msra.mxu0 %v2919_v14  ;;  %2534 = vmatprep.subr.bf16.mxu1 %v2920_v24  ;;  %v2940_v14 = vld [vmem:[%s3083_s25 + $0xd8] sm:$0xff]   ;;  %v1452_v17 = vpack.c.bf16 %v1446_v12, %v1445_v11  ;;  %v2946_v22 = vld [vmem:[%s3083_s25 + $0xf0] sm:$0xff]  }
  0x6c   : > { %2630 = vmatprep.subr.bf16.mxu0 %v2921_v25  ;;  %2528 = vmatprep.mubr.bf16.mxu1 %v440_v26  ;;  %v859_v26 = vld [vmem:[#allocation2 + $0x15] sm:$0xff] }
  0x6d   : > { %2624 = vmatprep.mubr.bf16.mxu0 %v1160_v28  ;;  %v1447_v28 = vld [vmem:[#allocation2 + $0x1b] sm:$0xff] }
  0x6e   : > { %2535 = vmatpush3.bf16.msra.mxu1 %v2920_v24  ;;  %v2948_v24 = vld [vmem:[%s3083_s25 + $0xf8] sm:$0xff]  }
  0x6f   : > { %2631 = vmatpush3.bf16.msra.mxu0 %v2921_v25  ;;  %2536 = vmatprep.subr.bf16.mxu1 %v2922_v27  ;;  %v2949_v25 = vld [vmem:[%s3083_s25 + $0x1f8] sm:$0xff]  }
  0x70   : > { %2632 = vmatprep.subr.bf16.mxu0 %v2923_v29 }
  0x71   : > { %2529 = vmatmul.mubr.bf16.gmra.mrb[4].mxu1 %v441_v33  ;;  %v862_v33 = vld [vmem:[#allocation2 + $0x2d] sm:$0xff] }
  0x72   : > { %2537 = vmatpush3.bf16.msra.mxu1 %v2922_v27  ;;  %2625 = vmatmul.mubr.bf16.gmra.mrb[4].mxu0 %v1161_v35  ;;  %v860_v27 = vld [vmem:[#allocation2 + $0x1d] sm:$0xff]  ;;  %v1449_v35 = vld [vmem:[#allocation2 + $0x2b] sm:$0xff] }
  0x73   : > { %2633 = vmatpush3.bf16.msra.mxu0 %v2923_v29  ;;  %2538 = vmatprep.subr.bf16.mxu1 %v2924_v37  ;;  %v1448_v29 = vld [vmem:[#allocation2 + $0x23] sm:$0xff]  ;;  %v865_v31 = vpack.c.bf16 %v860_v27, %v859_v26 }
  0x74   : > { %2634 = vmatprep.subr.bf16.mxu0 %v2925_v38  ;;  %2548 = vmatprep.mubr.bf16.mxu1 %v717_v39  ;;  %v1453_v34 = vpack.c.bf16 %v1448_v29, %v1447_v28  ;;  %v1454_v39 = vpack.c.bf16 %v1450_v36, %v1449_v35  ;;  %v2340_v28 = vld [vmem:[%s373_s22] ss:$0 sm:$0xff] }
  0x75   : > { %2644 = vmatprep.mubr.bf16.mxu0 %v1305_v40  ;;  %v863_v40 = vld [vmem:[#allocation2 + $0x35] sm:$0x3] }
  0x76   : > { %2539 = vmatpush3.bf16.msra.mxu1 %v2924_v37  ;;  %v2951_v37 = vld [vmem:[%s3083_s25 + $0x208] sm:$0xff]  }
  0x77   : > { %2635 = vmatpush3.bf16.msra.mxu0 %v2925_v38  ;;  %2540 = vmatprep.subr.bf16.mxu1 %v2926_v41  ;;  %v866_v38 = vpack.c.bf16 %v862_v33, %v861_v32 }
  0x78   : > { %2636 = vmatprep.subr.bf16.mxu0 %v2927_v42 }
  0x7a   : > { %2541 = vmatpush3.bf16.msra.mxu1 %v2926_v41  ;;  %v1451_v41 = vld [vmem:[#allocation2 + $0x3b] sm:$0x3] }
  0x7b   : > { %2637 = vmatpush3.bf16.msra.mxu0 %v2927_v42  ;;  %2542 = vmatprep.subr.bf16.mxu1 %v2928_v43  ;;  %v2952_v42 = vld [vmem:[%s3083_s25 + $0x210] sm:$0xff]  }
  0x7c   : > { %2638 = vmatprep.subr.bf16.mxu0 %v2929_v44 }
  0x7e   : > { %2543 = vmatpush3.bf16.msra.mxu1 %v2928_v43  ;;  %v867_v43 = vpack.c.bf16 %v863_v40, %v863_v40 }
  0x7f   : > { %2639 = vmatpush3.bf16.msra.mxu0 %v2929_v44  ;;  %2544 = vmatprep.subr.bf16.mxu1 %v2930_v45  ;;  %v1592_v44 = vld [vmem:[#allocation2 + $0xc] sm:$0xff] }
  0x80   : > { %2640 = vmatprep.subr.bf16.mxu0 %v2931_v46 }
  0x82   : > { %2545 = vmatpush3.bf16.msra.mxu1 %v2930_v45  ;;  %v1593_v45 = vld [vmem:[#allocation2 + $0x14] sm:$0xff] }
  0x83   : > { %2641 = vmatpush3.bf16.msra.mxu0 %v2931_v46  ;;  %2546 = vmatprep.subr.bf16.mxu1 %v2932_v47  ;;  %v1455_v46 = vpack.c.bf16 %v1451_v41, %v1451_v41  ;;  %v1599_v50 = vpack.c.bf16 %v1593_v45, %v1592_v44 }
  0x84   : > { %2642 = vmatprep.subr.bf16.mxu0 %v2933_v48 }
  0x86   : > { %2547 = vmatpush3.bf16.msra.mxu1 %v2932_v47  ;;  %v1596_v47 = vld [vmem:[#allocation2 + $0x2c] sm:$0xff] }
  0x87   : > { %2643 = vmatpush3.bf16.msra.mxu0 %v2933_v48  ;;  %2556 = vmatprep.subr.bf16.mxu1 %v2934_v51  ;;  %v1597_v48 = vld [vmem:[#allocation2 + $0x34] sm:$0xff] }
  0x88   : > { %2652 = vmatprep.subr.bf16.mxu0 %v2935_v54 }
  0x89   : > { %2549 = vmatmul.mubr.bf16.vlgmr.msra.gmra.mrb[0].mxu1 %v718_v55  ;;  %v2957_v55 = vld [vmem:[%s3083_s25 + $0x238] sm:$0xff]  }
  0x8a   : > { %2557 = vmatpush3.bf16.msra.mxu1 %v2934_v51  ;;  %2645 = vmatmul.mubr.bf16.vlgmr.msra.gmra.mrb[0].mxu0 %v1306_v58  ;;  %v1601_v51 = vpack.c.bf16 %v1597_v48, %v1596_v47  ;;  %v1595_v58 = vld [vmem:[#allocation2 + $0x24] sm:$0xff] }
  0x8b   : > { %2653 = vmatpush3.bf16.msra.mxu0 %v2935_v54  ;;  %2558 = vmatprep.subr.bf16.mxu1 %v2936_v61  ;;  %v2956_v54 = vld [vmem:[%s3083_s25 + $0x230] sm:$0xff]   ;;  %v1600_v60 = vpack.c.bf16 %v1595_v58, %v1594_v57  ;;  %s1767_s25 = scvt.s32.f32 %s3335_s30 }
  0x8c   : > { %2654 = vmatprep.subr.bf16.mxu0 %v2937_v62  ;;  %2552 = vmatprep.mubr.bf16.mxu1 %v719_v63 }
  0x8d   : > { %2648 = vmatprep.mubr.bf16.mxu0 %v1307_v0 }
  0x8e   : > { %2559 = vmatpush3.bf16.msra.mxu1 %v2936_v61 }
  0x8f   : > { %2655 = vmatpush3.bf16.msra.mxu0 %v2937_v62  ;;  %2560 = vmatprep.subr.bf16.mxu1 %v2938_v3 }
  0x90   : > { %2656 = vmatprep.subr.bf16.mxu0 %v2939_v6 }
  0x91   : > { %2553 = vmatmul.mubr.bf16.gmra.mrb[4].mxu1 %v720_v7 }
  0x92   : > { %2561 = vmatpush3.bf16.msra.mxu1 %v2938_v3  ;;  %2649 = vmatmul.mubr.bf16.gmra.mrb[4].mxu0 %v1308_v10 }
  0x93   : > { %2657 = vmatpush3.bf16.msra.mxu0 %v2939_v6  ;;  %2562 = vmatprep.subr.bf16.mxu1 %v2940_v14 }
  0x94   : > { %2658 = vmatprep.subr.bf16.mxu0 %v2941_v15  ;;  %2572 = vmatprep.mubr.bf16.mxu1 %v864_v16  ;;  %v1774_v16 = vld [vmem:[#allocation3 + $0x30] sm:$0x3] }
  0x95   : > { %2668 = vmatprep.mubr.bf16.mxu0 %v1452_v17  ;;  %v1768_v17 = vld [vmem:[#allocation3] sm:$0xff] }
  0x96   : > { %2563 = vmatpush3.bf16.msra.mxu1 %v2940_v14  ;;  %v1770_v14 = vld [vmem:[#allocation3 + $0x10] sm:$0xff] }
  0x97   : > { %2659 = vmatpush3.bf16.msra.mxu0 %v2941_v15  ;;  %2564 = vmatprep.subr.bf16.mxu1 %v2942_v18  ;;  %v1775_v15 = vstv %s1767_s25 }
  0x98   : > { %2660 = vmatprep.subr.bf16.mxu0 %v2943_v19  ;;  %v1782_v29 = vmul.f32 %v1775_v15, %v1774_v16 }
  0x9a   : > { %2565 = vmatpush3.bf16.msra.mxu1 %v2942_v18 }
  0x9b   : > { %2661 = vmatpush3.bf16.msra.mxu0 %v2943_v19  ;;  %2566 = vmatprep.subr.bf16.mxu1 %v2944_v20  ;;  %v2339_v19 = vld [vmem:[%s370_s19] ss:$0 sm:$0xff] }
  0x9c   : > { %2662 = vmatprep.subr.bf16.mxu0 %v2945_v21 }
  0x9e   : > { %2567 = vmatpush3.bf16.msra.mxu1 %v2944_v20 }
  0x9f   : > { %2663 = vmatpush3.bf16.msra.mxu0 %v2945_v21  ;;  %2568 = vmatprep.subr.bf16.mxu1 %v2946_v22  ;;  %v1772_v21 = vld [vmem:[#allocation3 + $0x20] sm:$0xff] }
  0xa0   : > { %2664 = vmatprep.subr.bf16.mxu0 %v2947_v23 }
  0xa2   : > { %2569 = vmatpush3.bf16.msra.mxu1 %v2946_v22  ;;  %v1771_v22 = vld [vmem:[#allocation3 + $0x18] sm:$0xff] }
  0xa3   : > { %2665 = vmatpush3.bf16.msra.mxu0 %v2947_v23  ;;  %2570 = vmatprep.subr.bf16.mxu1 %v2948_v24 }
  0xa4   : > { %2666 = vmatprep.subr.bf16.mxu0 %v2949_v25 }
  0xa6   : > { %2571 = vmatpush3.bf16.msra.mxu1 %v2948_v24  ;;  %v1778_v24 = vmul.f32 %v1775_v15, %v1770_v14 }
  0xa7   : > { %2667 = vmatpush3.bf16.msra.mxu0 %v2949_v25  ;;  %2785 = vmatprep.subr.bf16.mxu1 %v2950_v30 }
  0xa8   : > { %2676 = vmatprep.subr.bf16.mxu0 %v2950_v30 }
  0xa9   : > { %2573 = vmatmul.mubr.bf16.vlgmr.msra.gmra.mrb[0].mxu1 %v865_v31  ;;  %v1776_v31 = vmul.f32 %v1775_v15, %v1768_v17 }
  0xaa   : > { %2669 = vmatmul.mubr.bf16.vlgmr.msra.gmra.mrb[0].mxu0 %v1453_v34  ;;  %2793 = vmatpush3.bf16.msra.mxu1 %v2950_v30  ;;  %v1773_v34 = vld [vmem:[#allocation3 + $0x28] sm:$0xff] }
  0xab   : > { %2677 = vmatpush3.bf16.msra.mxu0 %v2950_v30  ;;  %2786 = vmatprep.subr.bf16.mxu1 %v2951_v37 }
  0xac   : > { %2678 = vmatprep.subr.bf16.mxu0 %v2951_v37  ;;  %2576 = vmatprep.mubr.bf16.mxu1 %v866_v38 }
  0xad   : > { %2672 = vmatprep.mubr.bf16.mxu0 %v1454_v39  ;;  %v1779_v39 = vmul.f32 %v1775_v15, %v1771_v22 }
  0xae   : > { %2794 = vmatpush3.bf16.msra.mxu1 %v2951_v37 }
  0xaf   : > { %2679 = vmatpush3.bf16.msra.mxu0 %v2951_v37  ;;  %2787 = vmatprep.subr.bf16.mxu1 %v2952_v42  ;;  %v1780_v37 = vmul.f32 %v1775_v15, %v1772_v21 }
  0xb0   : > { %2680 = vmatprep.subr.bf16.mxu0 %v2952_v42 }
  0xb1   : > { %2577 = vmatmul.mubr.bf16.gmra.mrb[4].mxu1 %v867_v43 }
  0xb2   : > { %2673 = vmatmul.mubr.bf16.gmra.mrb[4].mxu0 %v1455_v46  ;;  %2795 = vmatpush3.bf16.msra.mxu1 %v2952_v42  ;;  %v1769_v46 = vld [vmem:[#allocation3 + $0x8] sm:$0xff] }
  0xb3   : > { %2681 = vmatpush3.bf16.msra.mxu0 %v2952_v42  ;;  %2788 = vmatprep.subr.bf16.mxu1 %v2953_v49 }
  0xb4   : > { %2682 = vmatprep.subr.bf16.mxu0 %v2953_v49  ;;  %2692 = vmatprep.mubr.bf16.mxu0 %v1599_v50 }
  0xb5   : > { %2696 = vmatprep.mubr.bf16.mxu1 %v1601_v51  ;;  %v1781_v51 = vmul.f32 %v1775_v15, %v1773_v34 }
  0xb6   : > { %2796 = vmatpush3.bf16.msra.mxu1 %v2953_v49 }
  0xb7   : > { %2683 = vmatpush3.bf16.msra.mxu0 %v2953_v49  ;;  %2789 = vmatprep.subr.bf16.mxu1 %v2954_v52 }
  0xb8   : > { %2684 = vmatprep.subr.bf16.mxu0 %v2954_v52 }
  0xba   : > { %2797 = vmatpush3.bf16.msra.mxu1 %v2954_v52 }
  0xbb   : > { %2685 = vmatpush3.bf16.msra.mxu0 %v2954_v52  ;;  %2790 = vmatprep.subr.bf16.mxu1 %v2955_v53 }
  0xbc   : > { %2686 = vmatprep.subr.bf16.mxu0 %v2955_v53 }
  0xbe   : > { %2798 = vmatpush3.bf16.msra.mxu1 %v2955_v53 }
  0xbf   : > { %2687 = vmatpush3.bf16.msra.mxu0 %v2955_v53  ;;  %2791 = vmatprep.subr.bf16.mxu1 %v2956_v54 }
  0xc0   : > { %2688 = vmatprep.subr.bf16.mxu0 %v2956_v54  ;;  %v1817_v18 = vpop.permute.xlu1 %1816 }
  0xc2   : > { %2799 = vmatpush3.bf16.msra.mxu1 %v2956_v54 }
  0xc3   : > { %2689 = vmatpush3.bf16.msra.mxu0 %v2956_v54  ;;  %2792 = vmatprep.subr.bf16.mxu1 %v2957_v55 }
  0xc4   : > { %2690 = vmatprep.subr.bf16.mxu0 %v2957_v55  ;;  %v1822_v56 = vpop.permute.xlu1 %1821 }
  0xc6   : > { %2800 = vmatpush3.bf16.msra.mxu1 %v2957_v55 }
  0xc7   : > { %2691 = vmatpush3.bf16.msra.mxu0 %v2957_v55 }
  0xc9   : > { %2697 = vmatmul.mubr.bf16.vlgmr.msra.gmra.mrb[8].mxu1 %v1602_v59 }
  0xca   : > { %2693 = vmatmul.mubr.bf16.vlgmr.msra.gmra.mrb[0].mxu0 %v1600_v60  ;;  %v1777_v60 = vmul.f32 %v1775_v15, %v1769_v46 }
  0xcf   : > { %v3206_v12 = vpop.permute.xlu0 %1806 }
  0xd4   : > { %v3209_v13 = vpop.permute.xlu0 %1811 }
  0xd8   : > { %v1827_v41 = vpop.permute.xlu0 %1826 }
  0xdb   : > { %v1832_v21 = vpop.permute.xlu1 %1831 }
 0x17c   : > { %v2574_v61 = vpop.f32.mrb[0].mxu1 }
 0x17d   : > { %v967_v62 = vpop.f32.mrb[1].mxu1 }
 0x17e   : > { %v2575_v63 = vpop.f32.mrb[2].mxu1 }
 0x17f   : > { %v970_v0 = vpop.f32.mrb[3].mxu1 }
 0x184   : > { %v2578_v1 = vpop.f32.mrb[4].mxu1 }
 0x185   : > { %v2674_v2 = vpop.f32.mrb[4].mxu0  ;;  %v983_v3 = vpop.f32.mrb[5].mxu1 }
 0x186   : > { %v2805_v4 = vadd.f32 %v2674_v2, %v2578_v1  ;;  %v1571_v5 = vpop.f32.mrb[5].mxu0  ;;  %v2579_v6 = vpop.f32.mrb[6].mxu1 }
 0x187   : > { %v2807_v7 = vadd.f32 %v1571_v5, %v983_v3  ;;  %v2675_v8 = vpop.f32.mrb[6].mxu0  ;;  %v986_v9 = vpop.f32.mrb[7].mxu1 }
 0x188   : > { %v1574_v10 = vpop.f32.mrb[7].mxu0  ;;  %v1837_v6 = vpop.permute.xlu0 %1836 }
 0x189   : > { %v2809_v11 = vadd.f32 %v1574_v10, %v986_v9 }
 0x19c   : > { %v2698_v20 = vpop.f32.mrb[8].mxu1 }
 0x19d   : > { %v2694_v23 = vpop.f32.mrb[0].mxu0  ;;  %v2806_v25 = vadd.f32 %v2805_v4, %v2698_v20  ;;  %v1718_v26 = vpop.f32.mrb[9].mxu1 }
 0x19e   : > { %v2801_v27 = vadd.f32 %v2694_v23, %v2574_v61  ;;  %v1702_v30 = vpop.f32.mrb[1].mxu0  ;;  %v2808_v32 = vadd.f32 %v2807_v7, %v1718_v26  ;;  %v2699_v33 = vpop.f32.mrb[10].mxu1 }
 0x19f   : > { %v1752_v35 = vmul.f32 %v2806_v25, %v2339_v19  ;;  %v2802_v36 = vadd.f32 %v1702_v30, %v967_v62  ;;  %v2695_v38 = vpop.f32.mrb[2].mxu0  ;;  %v1721_v40 = vpop.f32.mrb[11].mxu1  ;;  %v2998_v25 = vmov (!%p2341_p8), 0.0|0.0  }
 0x1a0   : > { %v1748_v42 = vmul.f32 %v2801_v27, %v2339_v19  ;;  %v1750_v43 = vmul.f32 %v2808_v32, %v2339_v19  ;;  %v2803_v44 = vadd.f32 %v2695_v38, %v2575_v63  ;;  %v1705_v45 = vpop.f32.mrb[3].mxu0  ;;  %v2810_v47 = vadd.f32 %v2809_v11, %v1721_v40  ;;  %2752 = vmatprep.subr.bf16.mxu0 (!%p2341_p8), %v2998_v25  ;;  %v1972_v38 = vld [vmem:[%s3329_s8 + $0x8] sm:$0xff] (!%p2341_p8) }
 0x1a1   : > { %v1766_v48 = vadd.f32 %v2340_v28, %v1752_v35  ;;  %v1746_v49 = vmul.f32 %v2802_v36, %v2339_v19  ;;  %v2804_v50 = vadd.f32 %v1705_v45, %v970_v0  ;;  %2761 = vmatprep.subr.bf16.mxu1 (!%p2341_p8), %v2998_v25  ;;  %v1974_v45 = vld [vmem:[%s3329_s8 + $0x18] sm:$0xff] (!%p2341_p8) }
 0x1a2   : > { %v1762_v52 = vadd.f32 %v2340_v28, %v1748_v42  ;;  %v1764_v53 = vadd.f32 %v2340_v28, %v1750_v43  ;;  %v1749_v54 = vmul.f32 %v2803_v44, %v2339_v19  ;;  %v1751_v55 = vmul.f32 %v2810_v47, %v2339_v19  ;;  %v1973_v44 = vld [vmem:[%s3329_s8 + $0x10] sm:$0xff] (!%p2341_p8) }
 0x1a3   : > { %v1789_v57 = vadd.f32 %v1782_v29, %v1766_v48  ;;  %v1760_v58 = vadd.f32 %v2340_v28, %v1746_v49  ;;  %v1747_v59 = vmul.f32 %v2804_v50, %v2339_v19  ;;  %v3000_v43 = vmov (!%p2341_p8), 0.0  }
 0x1a4   : > { %v1785_v61 = vadd.f32 %v1778_v24, %v1762_v52  ;;  %v1787_v62 = vadd.f32 %v1780_v37, %v1764_v53  ;;  %v1763_v1 = vadd.f32 %v2340_v28, %v1749_v54  ;;  %v1765_v63 = vadd.f32 %v2340_v28, %v1751_v55  ;;  %v1971_v37 = vld [vmem:[%s3329_s8] sm:$0xff] (!%p2341_p8)  ;;  %2714 = vmatprep.mubr.msk.f32.mxu0 (!%p2341_p8), %vm2999_vm0, %v3000_v43  ;;  %v1976_v54 = vld [vmem:[%s3329_s8 + $0x28] sm:$0xff] (!%p2341_p8) }
 0x1a5   : > { %v1796_v2 = vmax.f32 %v1789_v57, 0.0  ;;  %v1783_v3 = vadd.f32 %v1776_v31, %v1760_v58  ;;  %v1761_v4 = vadd.f32 %v2340_v28, %v1747_v59  ;;  %2749 = vmatprep.mubr.msk.f32.mxu1 (!%p2341_p8), %vm2999_vm0, %v3000_v43  ;;  %v2762_v47 = vpack.c.bf16 (!%p2341_p8), %v1972_v38, %v1971_v37  ;;  %v1975_v53 = vld [vmem:[%s3329_s8 + $0x20] sm:$0xff] (!%p2341_p8)  ;;  %v1977_v58 = vld [vmem:[%s3329_s8 + $0x30] sm:$0xff] (!%p2341_p8)  ;;  %v1978_v59 = vld [vmem:[%s3329_s8 + $0x38] sm:$0xff] (!%p2341_p8) }
 0x1a6   : > { %v1792_v5 = vmax.f32 %v1785_v61, 0.0  ;;  %v1794_v0 = vmax.f32 %v1787_v62, 0.0  ;;  %v1786_v7 = vadd.f32 %v1779_v39, %v1763_v1  ;;  %v1788_v8 = vadd.f32 %v1781_v51, %v1765_v63  ;;  %v1979_v62 = vld [vmem:[%s3329_s8 + $0x40] sm:$0xff] (!%p2341_p8)  ;;  %v1980_v1 = vld [vmem:[%s3329_s8 + $0x48] sm:$0xff] (!%p2341_p8) }
 0x1a7   : > { %v1845_v9 = vmul.f32 %v1837_v6, %v1796_v2  ;;  %v1790_v10 = vmax.f32 %v1783_v3, 0.0  ;;  %v1784_v11 = vadd.f32 %v1777_v60, %v1761_v4  ;;  %1856 = sbr.rel (%p2341_p8) target bundleno = 877 (0x36d), region = 72  ;;  %2763 = vmatpush3.bf16.msra.mxu1 (!%p2341_p8), %v2762_v47  ;;  %v2765_v52 = vpack.c.bf16 (!%p2341_p8), %v1974_v45, %v1973_v44  ;;  %v1892_v63 = vld [vmem:[%s3326_s5] sm:$0x3] (!%p2341_p8)  ;;  %v1981_v3 = vld [vmem:[%s3329_s8 + $0x50] sm:$0xff] (!%p2341_p8)  ;;  %v1982_v4 = vld [vmem:[%s3329_s8 + $0x58] sm:$0xff] (!%p2341_p8) }
 0x1a8   : > { %v1841_v14 = vmul.f32 %v1817_v18, %v1792_v5  ;;  %v1843_v16 = vmul.f32 %v1827_v41, %v1794_v0  ;;  %v1793_v17 = vmax.f32 %v1786_v7, 0.0  ;;  %v1795_v19 = vmax.f32 %v1788_v8, 0.0  ;;  %v2342_v18 = vld [vmem:[%s3327_s6] ss:$0 sm:$0xff] (!%p2341_p8)  ;;  %2764 = vmatprep.subr.bf16.mxu1 (!%p2341_p8), %v2998_v25  ;;  %v1984_v0 = vld [vmem:[%s3329_s8 + $0x68] sm:$0xff] (!%p2341_p8)  ;;  %v1985_v8 = vld [vmem:[%s3329_s8 + $0x70] sm:$0xff] (!%p2341_p8) }
 0x1a9   : > { %1852 = vst [vmem:[#allocation2 + $0x36] sm:$0x3] %v1845_v9  ;;  %v1839_v15 = vmul.f32 %v3206_v12, %v1790_v10  ;;  %v1791_v20 = vmax.f32 %v1784_v11, 0.0  ;;  %v2343_v12 = vld [vmem:[%s3328_s7] ss:$0 sm:$0xff] (!%p2341_p8)  ;;  %v1870_v48 = vmul.f32 (!%p2341_p8), %v2342_v18, %v1845_v9  ;;  %v2768_v57 = vpack.c.bf16 (!%p2341_p8), %v1976_v54, %v1975_v53  ;;  %v1986_v9 = vld [vmem:[%s3329_s8 + $0x78] sm:$0xff] (!%p2341_p8) }
 0x1aa   : > { %1848 = vst [vmem:[#allocation2 + $0x16] sm:$0xff] %v1841_v14  ;;  %1850 = vst [vmem:[#allocation2 + $0x26] sm:$0xff] %v1843_v16  ;;  %v1842_v22 = vmul.f32 %v1822_v56, %v1793_v17  ;;  %v1844_v23 = vmul.f32 %v1832_v21, %v1795_v19  ;;  %v1868_v29 = vmul.f32 (!%p2341_p8), %v2342_v18, %v1843_v16  ;;  %v1983_v6 = vld [vmem:[%s3329_s8 + $0x60] sm:$0xff] (!%p2341_p8) }
 0x1ab   : > { %1846 = vst [vmem:[#allocation2 + $0x6] sm:$0xff] %v1839_v15  ;;  %v1840_v24 = vmul.f32 %v3209_v13, %v1791_v20  ;;  %v1864_v26 = vmul.f32 (!%p2341_p8), %v2342_v18, %v1839_v15  ;;  %v1866_v13 = vmul.f32 (!%p2341_p8), %v2342_v18, %v1841_v14  ;;  %v1884_v56 = vadd.f32 (!%p2341_p8), %v2343_v12, %v1870_v48  ;;  %v2346_v16 = vld [vmem:[%s3330_s9] ss:$0 sm:$0xff] (!%p2341_p8) }
 0x1ac   : > { %1849 = vst [vmem:[#allocation2 + $0x1e] sm:$0xff] %v1842_v22  ;;  %1851 = vst [vmem:[#allocation2 + $0x2e] sm:$0xff] %v1844_v23  ;;  %v1867_v28 = vmul.f32 (!%p2341_p8), %v2342_v18, %v1842_v22  ;;  %v1869_v30 = vmul.f32 (!%p2341_p8), %v2342_v18, %v1844_v23  ;;  %v1882_v35 = vadd.f32 (!%p2341_p8), %v2343_v12, %v1868_v29  ;;  %2766 = vmatpush3.bf16.msra.mxu1 (!%p2341_p8), %v2765_v52 }
 0x1ad   : > { %1847 = vst [vmem:[#allocation2 + $0xe] sm:$0xff] %v1840_v24  ;;  %v1865_v27 = vmul.f32 (!%p2341_p8), %v2342_v18, %v1840_v24  ;;  %v1878_v31 = vadd.f32 (!%p2341_p8), %v2343_v12, %v1864_v26  ;;  %v1880_v33 = vadd.f32 (!%p2341_p8), %v2343_v12, %v1866_v13  ;;  %2767 = vmatprep.subr.bf16.mxu1 (!%p2341_p8), %v2998_v25  ;;  %v1891_v60 = vmax.f32 (!%p2341_p8), %v1884_v56, 0.0 }
 0x1ae   : > { %v1881_v34 = vadd.f32 %v2343_v12, %v1867_v28  ;;  %v1883_v36 = vadd.f32 %v2343_v12, %v1869_v30  ;;  %v1889_v50 = vmax.f32 %v1882_v35, 0.0  ;;  %v2771_v61 = vpack.c.bf16 %v1978_v59, %v1977_v58 }
 0x1af   : > { %v1879_v32 = vadd.f32 %v2343_v12, %v1865_v27  ;;  %v1885_v39 = vmax.f32 %v1878_v31, 0.0  ;;  %v1887_v41 = vmax.f32 %v1880_v33, 0.0  ;;  %v2774_v2 = vpack.c.bf16 %v1980_v1, %v1979_v62 }
 0x1b0   : > { %v1888_v42 = vmax.f32 %v1881_v34, 0.0  ;;  %v1890_v51 = vmax.f32 %v1883_v36, 0.0  ;;  %2769 = vmatpush3.bf16.msra.mxu1 %v2768_v57  ;;  %v2777_v5 = vpack.c.bf16 %v1982_v4, %v1981_v3  ;;  %v2780_v7 = vpack.c.bf16 %v1984_v0, %v1983_v6 }
 0x1b1   : > { %v1886_v40 = vmax.f32 %v1879_v32, 0.0  ;;  %2770 = vmatprep.subr.bf16.mxu1 %v2998_v25  ;;  %v2783_v10 = vpack.c.bf16 %v1986_v9, %v1985_v8 }
 0x1b2   : > { %v2756_v49 = vpack.c.bf16 %v1888_v42, %v1887_v41  ;;  %v2759_v55 = vpack.c.bf16 %v1890_v51, %v1889_v50 }
 0x1b3   : > { %v2753_v46 = vpack.c.bf16 %v1886_v40, %v1885_v39 }
 0x1b4   : > { %2772 = vmatpush3.bf16.msra.mxu1 %v2771_v61 }
 0x1b5   : > { %2754 = vmatpush3.bf16.msra.mxu0 %v2753_v46  ;;  %2773 = vmatprep.subr.bf16.mxu1 %v2998_v25 }
 0x1b6   : > { %2755 = vmatprep.subr.bf16.mxu0 %v2998_v25 }
 0x1b8   : > { %2775 = vmatpush3.bf16.msra.mxu1 %v2774_v2 }
 0x1b9   : > { %2757 = vmatpush3.bf16.msra.mxu0 %v2756_v49  ;;  %2776 = vmatprep.subr.bf16.mxu1 %v2998_v25 }
 0x1ba   : > { %2758 = vmatprep.subr.bf16.mxu0 %v2998_v25 }
 0x1bc   : > { %2778 = vmatpush3.bf16.msra.mxu1 %v2777_v5 }
 0x1bd   : > { %2760 = vmatpush3.bf16.msra.mxu0 %v2759_v55  ;;  %2779 = vmatprep.subr.bf16.mxu1 %v2998_v25 }
 0x1be   : > { %2712 = vmatprep.subr.mxu0 %v3000_v43 }
 0x1c0   : > { %2781 = vmatpush3.bf16.msra.mxu1 %v2780_v7 }
 0x1c1   : > { %2713 = vmatpush3.msk.msra.mxu0 %vm1897_vm1, %v1891_v60  ;;  %2782 = vmatprep.subr.bf16.mxu1 %v2998_v25 }
 0x1c2   : > { %2715 = vmatmul.mubr.msk.f32.vlgmr.msra.gmra.mrb[0].mxu0 %vm1893_vm2, %v1892_v63 }
 0x1c4   : > { %2784 = vmatpush3.bf16.msra.mxu1 %v2783_v10 }
 0x295   : > { %v1967_v11 = vpop.f32.mrb[0].mxu0 }
 0x296   : > { %v2716_v14 = vpop.f32.mrb[1].mxu0  ;;  %2750 = vmatmul.mubr.f32.vlgmr.msra.gmra.mrb[0].mxu1 %v1967_v11 }
 0x369   : > { %v2060_v17 = vpop.f32.mrb[0].mxu1 }
 0x36a   : > { %v2061_v19 = vadd.f32 %v2346_v16, %v2060_v17  ;;  %v2751_v15 = vpop.f32.mrb[1].mxu1 }
 0x36c   : > { %2064 = vst [vmem:[#allocation4] sm:$0x3] %v2061_v19 }
 0x36d PF: > { %p2868_p9 = scmp.eq.s32.totalorder %s3063_s14, 11  ;;  %s3001_s20 = smov [#allocation4]  }
 0x36e   : > { %s2072_s21 = sshll.u32 %s3001_s20, 4  ;;  %s2073_s21 = int_to_ptr.vmem [resolvable:$true] %s2072_s21 }
 0x36f   : > { %s2958_s23 = scalar_lea.vmem %s2073_s21, 32  ;;  %p2965_p13 = scmp.lt.s32.totalorder %s2073_s21, %s2073_s21 }
 0x370   : > { %p2959_p10 = scmp.ne.s32.totalorder %s2073_s21, %s2958_s23  ;;  %p2966_p0 = scmp.lt.s32.totalorder %s2958_s23, %s2958_s23 }
 0x372   : > { %p2960_p11 = pnand %p2959_p10, %p2868_p9  ;;  %p2967_p1 = por %p2966_p0, %p2965_p13 }
 0x374   : > { %p2961_p12 = pneg %p2960_p11 }
 0x376   : > { %p2968_p2 = pnand %p2967_p1, %p2961_p12 }
 0x378   : > { %2971 = shalt.err (!%p2968_p2)
}
 0x379   : > { %s2972_s27 = scalar_lea.hbm %s3331_s10, 32 }
 0x37a   : > { %p2973_p3 = scmp.ne.s32.totalorder %s3331_s10, %s2972_s27  ;;  %p2978_p6 = scmp.lt.u32.totalorder %s2972_s27, %s3331_s10 }
 0x37c   : > { %p2974_p4 = pnand %p2973_p3, %p2868_p9 }
 0x37e   : > { %p2975_p5 = pneg %p2974_p4 }
 0x380   : > { %p2980_p7 = pnand %p2978_p6, %p2975_p5 }
 0x382   : > { %2983 = shalt.err (!%p2980_p7)
}
 0x383   : > { %2865 = dma.vmem_to_hbm [thread:$0]  (%p2868_p9), %s2073_s21, 32, %s3331_s10, [#allocation5]  }
 0x384   : > { %2989 = dma.done.wait (%p2868_p9), [#allocation5], 32  }
 0x385   : > { %2991 = vsyncadd (%p2868_p9), [#allocation5], 4294967264 }
 0x386 PF: > { %s21_s13 = sadd.s32 1, %s2994_s13  }
 0x387   : > { %p18_p8 = scmp.ge.s32.totalorder %s21_s13, 14  }
 0x389   :  { %20 = sbr.rel (!%p18_p8) target bundleno = 1 (0x1), region = 113 }
 0x390   :  { %2085 = vsyncpa [#allocation5], 1 }
 0x391   :  { %2087 = vsyncpa [#allocation5 + $0x1], 1 }

</bundles_post_ra>
